<compile_context>
chip_gen: v7x
topology: tpu7x:2x2x1
jax: 0.10.0
libtpu: 0.0.40
codegen_flags: <defaults>
</compile_context>

<pallas_src>
import math

import jax
import jax.numpy as jnp
import numpy as np
from jax.experimental import pallas as pl
from jax.experimental.pallas import tpu as pltpu

_EPS = 1e-5
_INV_SQRT2 = 0.7071067811865475


def _rup(x, m):
    return ((x + m - 1) // m) * m


def _k_tiling(K):
    """Return (tk, Kp): K-tile size and padded K for the matmul.

    For K <= 2048 a single full-K block fits easily in VMEM for our tile_m,
    so skip K tiling entirely (fewer grid steps, less padding).
    """
    if K <= 2048:
        kp = _rup(K, 8) if K < 128 else _rup(K, 128)
        return kp, kp
    return 256, _rup(K, 256)


# ------------------------- Pallas kernels -------------------------

def _acc_store(o_ref, prod):
    """Write on the first K step, accumulate afterwards (no zero-init pass)."""
    @pl.when(pl.program_id(1) == 0)
    def _():
        o_ref[...] = prod

    @pl.when(pl.program_id(1) != 0)
    def _():
        o_ref[...] += prod


def _matmul_kernel(a_ref, b_ref, o_ref):
    prod = jnp.dot(a_ref[...], b_ref[...], preferred_element_type=jnp.float32)
    _acc_store(o_ref, prod)


def _matmul_bias_kernel(a_ref, b_ref, bias_ref, o_ref):
    prod = jnp.dot(a_ref[...], b_ref[...], preferred_element_type=jnp.float32)
    _acc_store(o_ref, prod)

    @pl.when(pl.program_id(1) == pl.num_programs(1) - 1)
    def _():
        o_ref[...] += bias_ref[...]


def _matmul_stats_kernel(a_ref, b_ref, o_ref, csum_ref, csq_ref):
    """Matmul + per-column (per-channel) sum / sum-of-squares epilogue.

    Padded (zero) M rows and N columns contribute zero to both sums, so the
    wrapper divides by the true row count.
    """
    prod = jnp.dot(a_ref[...], b_ref[...], preferred_element_type=jnp.float32)
    _acc_store(o_ref, prod)

    @pl.when(pl.program_id(1) == pl.num_programs(1) - 1)
    def _():
        y = o_ref[...]
        csum_ref[...] = jnp.broadcast_to(
            jnp.sum(y, axis=0, keepdims=True), csum_ref.shape)
        csq_ref[...] = jnp.broadcast_to(
            jnp.sum(y * y, axis=0, keepdims=True), csq_ref.shape)


def _bn_gelu_kernel(x_ref, scale_ref, shift_ref, o_ref):
    # f32 math (v5e VPU/EUP have no bf16 fast path); downcast only at store.
    y = x_ref[...] * scale_ref[...] + shift_ref[...]
    o_ref[...] = (0.5 * y * (1.0 + jax.lax.erf(y * _INV_SQRT2))).astype(o_ref.dtype)


def _bn_kernel(x_ref, scale_ref, shift_ref, o_ref):
    o_ref[...] = (x_ref[...] * scale_ref[...] + shift_ref[...]).astype(o_ref.dtype)


# ------------------------- Pallas wrappers -------------------------

def pack_rhs(w_mat):
    """(K, N) f32 weight matrix -> (Kp, Np) bf16, padded to the matmul tiling."""
    K, N = w_mat.shape
    _, Kp = _k_tiling(K)
    Np = _rup(N, 128)
    return jnp.pad(w_mat, ((0, Kp - K), (0, Np - N))).astype(jnp.bfloat16)


def pallas_matmul(a, b_packed, *, n_out, bias_packed=None, col_stats=False,
                  tile_m=256):
    """(M,K) @ pre-packed (Kp,Np) bf16 weights, f32 accumulation on the MXU.

    Grid = (M tiles ["parallel"], K tiles ["arbitrary"]).  Optionally adds a
    padded bias at the last K step, or emits per-column sum / sum-of-squares.
    """
    M, K = a.shape
    tk, Kp = _k_tiling(K)
    Np = _rup(n_out, 128)
    assert b_packed.shape == (Kp, Np), (b_packed.shape, (Kp, Np))

    tm = min(_rup(M, 8), tile_m)
    Mp = _rup(M, tm)
    num_m, num_k = Mp // tm, Kp // tk

    ap = jnp.pad(a.astype(jnp.bfloat16), ((0, Mp - M), (0, Kp - K)))

    in_specs = [pl.BlockSpec((tm, tk), lambda m, k: (m, k)),
                pl.BlockSpec((tk, Np), lambda m, k: (k, 0))]
    args = [ap, b_packed]
    out_shapes = [jax.ShapeDtypeStruct((Mp, Np), jnp.float32)]
    out_specs = [pl.BlockSpec((tm, Np), lambda m, k: (m, 0))]

    if bias_packed is not None:
        assert not col_stats
        kernel = _matmul_bias_kernel
        in_specs.append(pl.BlockSpec((1, Np), lambda m, k: (0, 0)))
        args.append(bias_packed)
    elif col_stats:
        kernel = _matmul_stats_kernel
        for _ in range(2):
            out_shapes.append(jax.ShapeDtypeStruct((num_m * 8, Np), jnp.float32))
            out_specs.append(pl.BlockSpec((8, Np), lambda m, k: (m, 0)))
    else:
        kernel = _matmul_kernel

    multi = len(out_shapes) > 1
    res = pl.pallas_call(
        kernel,
        out_shape=tuple(out_shapes) if multi else out_shapes[0],
        grid=(num_m, num_k),
        in_specs=in_specs,
        out_specs=tuple(out_specs) if multi else out_specs[0],
        compiler_params=pltpu.CompilerParams(
            dimension_semantics=("parallel", "arbitrary")),
    )(*args)

    if col_stats:
        out, cs, cq = res
        cs = cs.reshape(num_m, 8, Np)[:, 0, :n_out].sum(axis=0)
        cq = cq.reshape(num_m, 8, Np)[:, 0, :n_out].sum(axis=0)
        return out[:M, :n_out], cs, cq
    return res[:M, :n_out]


def pallas_bn_act(x2d, scale, shift, apply_gelu, out_dtype=jnp.bfloat16,
                  tile_r=512):
    """y = x * scale + shift (per-feature BN affine), optionally exact GELU.

    Row-tiled ("parallel") grid, lane-dense feature axis, bf16 output so the
    consumer matmul reads half-width operands.
    """
    M, C = x2d.shape
    Cp = _rup(C, 128)
    tr = min(_rup(M, 8), tile_r)
    Mp = _rup(M, tr)
    xp = jnp.pad(x2d.astype(jnp.float32), ((0, Mp - M), (0, Cp - C)))
    sp = jnp.pad(scale.astype(jnp.float32), (0, Cp - C)).reshape(1, Cp)
    bp = jnp.pad(shift.astype(jnp.float32), (0, Cp - C)).reshape(1, Cp)
    kernel = _bn_gelu_kernel if apply_gelu else _bn_kernel
    out = pl.pallas_call(
        kernel,
        out_shape=jax.ShapeDtypeStruct((Mp, Cp), out_dtype),
        grid=(Mp // tr,),
        in_specs=[pl.BlockSpec((tr, Cp), lambda r: (r, 0)),
                  pl.BlockSpec((1, Cp), lambda r: (0, 0)),
                  pl.BlockSpec((1, Cp), lambda r: (0, 0))],
        out_specs=pl.BlockSpec((tr, Cp), lambda r: (r, 0)),
        compiler_params=pltpu.CompilerParams(dimension_semantics=("parallel",)),
    )(xp, sp, bp)
    return out[:M, :C]


# ------------------------- model building blocks -------------------------

def conv2d_pallas(x, w_packed, *, ksize, cout, stride, col_stats):
    """NHWC conv, padding=K//2, no bias: im2col (XLA glue, bf16) + MXU matmul.

    Returns the flat (N*Ho*Wo, Cout) f32 output (+ per-channel sum/sumsq when
    col_stats) and the output spatial shape.
    """
    # TODO(synk): im2col stays in XLA; folding it into the matmul DMA needs
    # per-tap element-offset index maps.
    N, H, W, Cin = x.shape
    P = ksize // 2
    Hout = (H + 2 * P - ksize) // stride + 1
    Wout = (W + 2 * P - ksize) // stride + 1
    xp = jnp.pad(x, ((0, 0), (P, P), (P, P), (0, 0)))
    cols = []
    for kh in range(ksize):
        for kw in range(ksize):
            cols.append(jax.lax.slice(
                xp,
                (0, kh, kw, 0),
                (N, kh + stride * (Hout - 1) + 1,
                 kw + stride * (Wout - 1) + 1, Cin),
                (1, stride, stride, 1)))
    patches = jnp.stack(cols, axis=3)                  # [N,Ho,Wo,K*K,Cin] bf16
    patches = patches.reshape(N * Hout * Wout, ksize * ksize * Cin)
    res = pallas_matmul(patches, w_packed, n_out=cout, col_stats=col_stats)
    if col_stats:
        out2d, csum, csumsq = res
        return out2d, csum, csumsq, (N, Hout, Wout)
    return res, (N, Hout, Wout)


def bn2d_gelu_from_stats(x2d, colsum, colsumsq, count, gamma, beta):
    # training-mode BatchNorm2d: batch statistics come from the conv matmul
    # epilogue (sum / sum-of-squares over N*H*W), then fused affine + exact GELU.
    mean = colsum / count
    var = colsumsq / count - mean * mean
    scale = gamma * jax.lax.rsqrt(var + _EPS)
    shift = beta - mean * scale
    return pallas_bn_act(x2d, scale, shift, apply_gelu=True)


def bn1d(x2d, gamma, beta):
    # training-mode BatchNorm1d: stats over the batch axis only (tiny (N,2048)
    # reduction, kept in XLA), affine applied by the fused Pallas kernel.
    mean = jnp.mean(x2d, axis=0)
    var = jnp.var(x2d, axis=0)
    scale = gamma * jax.lax.rsqrt(var + _EPS)
    shift = beta - mean * scale
    return pallas_bn_act(x2d, scale, shift, apply_gelu=False)


def init_params(key):
    def conv_w(k, cout, cin, ksz):
        bound = 1.0 / math.sqrt(cin * ksz * ksz)
        return jax.random.uniform(k, (cout, cin, ksz, ksz), jnp.float32,
                                  -bound, bound)
    ks = jax.random.split(key, 6)
    p = {}
    p["conv1_w"] = conv_w(ks[0], 32, 1, 7)
    p["bn1_g"], p["bn1_b"] = jnp.ones((32,), jnp.float32), jnp.zeros((32,), jnp.float32)
    p["conv2_w"] = conv_w(ks[1], 64, 32, 5)
    p["bn2_g"], p["bn2_b"] = jnp.ones((64,), jnp.float32), jnp.zeros((64,), jnp.float32)
    p["conv3_w"] = conv_w(ks[2], 128, 64, 5)
    p["bn3_g"], p["bn3_b"] = jnp.ones((128,), jnp.float32), jnp.zeros((128,), jnp.float32)
    p["conv4_w"] = conv_w(ks[3], 128, 128, 3)
    p["bn4_g"], p["bn4_b"] = jnp.ones((2048,), jnp.float32), jnp.zeros((2048,), jnp.float32)
    bound = 1.0 / math.sqrt(2048)
    p["fc_w"] = jax.random.uniform(ks[4], (10, 2048), jnp.float32, -bound, bound)
    p["fc_b"] = jax.random.uniform(ks[5], (10,), jnp.float32, -bound, bound)
    return p


def pack_params(p):
    """Pre-transpose / pre-pad / pre-cast the static weights once (outside jit)."""
    q = {}
    for name in ("conv1", "conv2", "conv3", "conv4"):
        w = p[name + "_w"]                                   # (Cout, Cin, K, K)
        cout, cin, ksz, _ = w.shape
        wm = jnp.transpose(w, (2, 3, 1, 0)).reshape(ksz * ksz * cin, cout)
        q[name + "_wm"] = pack_rhs(wm)                       # (Kp, Np) bf16
    for name in ("bn1_g", "bn1_b", "bn2_g", "bn2_b", "bn3_g", "bn3_b",
                 "bn4_g", "bn4_b"):
        q[name] = p[name]
    q["fc_wm"] = pack_rhs(p["fc_w"].T)                       # (2048, 128) bf16
    q["fc_bp"] = jnp.pad(p["fc_b"],
                         (0, _rup(10, 128) - 10)).reshape(1, -1).astype(jnp.float32)
    return q


@jax.jit
def mymodel_forward(params, x_nhwc):
    # PyTorch permutes NHWC -> NCHW; here we compute directly in NHWC.
    p = params
    x = x_nhwc.astype(jnp.bfloat16)

    y, cs, cq, (n, h, w) = conv2d_pallas(x, p["conv1_wm"], ksize=7, cout=32,
                                         stride=2, col_stats=True)      # 32 -> 16
    x = bn2d_gelu_from_stats(y, cs, cq, n * h * w,
                             p["bn1_g"], p["bn1_b"]).reshape(n, h, w, 32)

    y, cs, cq, (n, h, w) = conv2d_pallas(x, p["conv2_wm"], ksize=5, cout=64,
                                         stride=2, col_stats=True)      # 16 -> 8
    x = bn2d_gelu_from_stats(y, cs, cq, n * h * w,
                             p["bn2_g"], p["bn2_b"]).reshape(n, h, w, 64)

    y, cs, cq, (n, h, w) = conv2d_pallas(x, p["conv3_wm"], ksize=5, cout=128,
                                         stride=2, col_stats=True)      # 8 -> 4
    x = bn2d_gelu_from_stats(y, cs, cq, n * h * w,
                             p["bn3_g"], p["bn3_b"]).reshape(n, h, w, 128)

    y, (n, h, w) = conv2d_pallas(x, p["conv4_wm"], ksize=3, cout=128,
                                 stride=1, col_stats=False)             # 4 -> 4
    x = y.reshape(n, h, w, 128)
    # Flatten in NCHW order to match nn.Flatten on the NCHW tensor -> [N, 2048]
    x = jnp.transpose(x, (0, 3, 1, 2)).reshape(n, -1)
    x = bn1d(x, p["bn4_g"], p["bn4_b"])
    return pallas_matmul(x, p["fc_wm"], n_out=10, bias_packed=p["fc_bp"])  # [N, 10]


# ------------------------- pure-JAX reference -------------------------

def reference_forward(params, x_nhwc):
    def conv_ref(x, w, stride):
        K = w.shape[-1]
        P = K // 2
        return jax.lax.conv_general_dilated(
            x, jnp.transpose(w, (2, 3, 1, 0)),
            window_strides=(stride, stride), padding=[(P, P), (P, P)],
            dimension_numbers=("NHWC", "HWIO", "NHWC"),
            precision=jax.lax.Precision.HIGHEST)

    def bn(x, gamma, beta, axes):
        mean = jnp.mean(x, axis=axes, keepdims=True)
        var = jnp.var(x, axis=axes, keepdims=True)
        return (x - mean) * (gamma * jax.lax.rsqrt(var + _EPS)) + beta

    def gelu(x):
        return 0.5 * x * (1.0 + jax.lax.erf(x * _INV_SQRT2))

    x = conv_ref(x_nhwc, params["conv1_w"], 2)
    x = conv_ref(gelu(bn(x, params["bn1_g"], params["bn1_b"], (0, 1, 2))), params["conv2_w"], 2)
    x = conv_ref(gelu(bn(x, params["bn2_g"], params["bn2_b"], (0, 1, 2))), params["conv3_w"], 2)
    x = conv_ref(gelu(bn(x, params["bn3_g"], params["bn3_b"], (0, 1, 2))), params["conv4_w"], 1)
    N = x.shape[0]
    x = jnp.transpose(x, (0, 3, 1, 2)).reshape(N, -1)
    x = bn(x, params["bn4_g"], params["bn4_b"], (0,))
    return x @ params["fc_w"].T + params["fc_b"]


if __name__ == "__main__":
    key = jax.random.PRNGKey(0)
    pkey, xkey = jax.random.split(key)
    params = init_params(pkey)
    packed = pack_params(params)
    # NHWC input (forward permutes NHWC -> NCHW in PyTorch).  Spatial 32x32 is
    # required so that Flatten yields exactly 2048 features (128 * 4 * 4).
    x = jax.random.normal(xkey, (2, 32, 32, 1), dtype=jnp.float32)

    out = jax.block_until_ready(mymodel_forward(packed, x))
    assert out.shape == (2, 10) and out.dtype == jnp.float32

    ref = jax.block_until_ready(reference_forward(params, x))
    # Tolerance accounts for bf16 MXU operands (f32 accumulation) vs f32 reference.
    np.testing.assert_allclose(np.asarray(out), np.asarray(ref),
                               rtol=3e-2, atol=3e-2)
    print("KERNEL_OK")
</pallas_src>

<mosaic_0001>
module attributes {stable_mosaic.version = 11 : i64} {
  func.func @_matmul_stats_kernel(%arg0: i32, %arg1: i32, %arg2: memref<256x56xbf16, #tpu.memory_space<vmem>>, %arg3: memref<56x128xbf16, #tpu.memory_space<vmem>>, %arg4: memref<256x128xf32, #tpu.memory_space<vmem>>, %arg5: memref<8x128xf32, #tpu.memory_space<vmem>>, %arg6: memref<8x128xf32, #tpu.memory_space<vmem>>) attributes {dimension_semantics = [#tpu.dimension_semantics<parallel>, #tpu.dimension_semantics<arbitrary>], iteration_bounds = array<i64: 2, 1>, scalar_prefetch = 0 : i64, scratch_operands = 0 : i64, tpu.core_type = #tpu.core_type<tc>, window_params = [{transform_indices = @transform_0, window_bounds = array<i64: 256, 56>}, {transform_indices = @transform_1, window_bounds = array<i64: 56, 128>}, {transform_indices = @transform_2, window_bounds = array<i64: 256, 128>}, {transform_indices = @transform_3, window_bounds = array<i64: 8, 128>}, {transform_indices = @transform_4, window_bounds = array<i64: 8, 128>}]} {
    %c0 = arith.constant 0 : index
    %c0_0 = arith.constant 0 : index
    %0 = vector.load %arg2[%c0, %c0_0] : memref<256x56xbf16, #tpu.memory_space<vmem>>, vector<256x56xbf16>
    %c0_1 = arith.constant 0 : index
    %c0_2 = arith.constant 0 : index
    %1 = vector.load %arg3[%c0_1, %c0_2] : memref<56x128xbf16, #tpu.memory_space<vmem>>, vector<56x128xbf16>
    %cst = arith.constant dense<0.000000e+00> : vector<256x128xf32>
    %2 = tpu.matmul %0, %1, %cst {dimension_numbers = #tpu.dot_dimension_numbers<[1], [0], [0], [1], [0, 0, 1, 1], [], []>} : vector<256x56xbf16>, vector<56x128xbf16>, vector<256x128xf32> -> vector<256x128xf32>
    %c0_i32 = arith.constant 0 : i32
    %3 = arith.cmpi eq, %arg1, %c0_i32 : i32
    %4 = arith.extui %3 : i1 to i32
    %c0_i32_3 = arith.constant 0 : i32
    %5 = arith.cmpi ne, %4, %c0_i32_3 : i32
    scf.if %5 {
      %c0_8 = arith.constant 0 : index
      %c0_9 = arith.constant 0 : index
      %12 = vector.load %arg4[%c0_8, %c0_9] : memref<256x128xf32, #tpu.memory_space<vmem>>, vector<256x128xf32>
      tpu.vector_store %arg4[%c0_8, %c0_9], %2 {strides = array<i32>} : memref<256x128xf32, #tpu.memory_space<vmem>>, vector<256x128xf32>,
    } else {
    }
    %c0_i32_4 = arith.constant 0 : i32
    %6 = arith.cmpi ne, %arg1, %c0_i32_4 : i32
    %7 = arith.extui %6 : i1 to i32
    %c0_i32_5 = arith.constant 0 : i32
    %8 = arith.cmpi ne, %7, %c0_i32_5 : i32
    scf.if %8 {
      %c0_8 = arith.constant 0 : index
      %c0_9 = arith.constant 0 : index
      %12 = vector.load %arg4[%c0_8, %c0_9] : memref<256x128xf32, #tpu.memory_space<vmem>>, vector<256x128xf32>
      %13 = arith.addf %12, %2 : vector<256x128xf32>
      %c0_10 = arith.constant 0 : index
      %c0_11 = arith.constant 0 : index
      %14 = vector.load %arg4[%c0_10, %c0_11] : memref<256x128xf32, #tpu.memory_space<vmem>>, vector<256x128xf32>
      tpu.vector_store %arg4[%c0_10, %c0_11], %13 {strides = array<i32>} : memref<256x128xf32, #tpu.memory_space<vmem>>, vector<256x128xf32>,
    } else {
    }
    %c0_i32_6 = arith.constant 0 : i32
    %9 = arith.cmpi eq, %arg1, %c0_i32_6 : i32
    %10 = arith.extui %9 : i1 to i32
    %c0_i32_7 = arith.constant 0 : i32
    %11 = arith.cmpi ne, %10, %c0_i32_7 : i32
    scf.if %11 {
      %c0_8 = arith.constant 0 : index
      %c0_9 = arith.constant 0 : index
      %12 = vector.load %arg4[%c0_8, %c0_9] : memref<256x128xf32, #tpu.memory_space<vmem>>, vector<256x128xf32>
      %cst_10 = arith.constant dense<0.000000e+00> : vector<128xf32>
      %13 = vector.multi_reduction <add>, %12, %cst_10 [0] : vector<256x128xf32> to vector<128xf32>
      %14 = vector.shape_cast %13 : vector<128xf32> to vector<1x128xf32>
      %15 = vector.shape_cast %14 : vector<1x128xf32> to vector<1x128xf32>
      %16 = vector.broadcast %15 : vector<1x128xf32> to vector<8x128xf32>
      %c0_11 = arith.constant 0 : index
      %c0_12 = arith.constant 0 : index
      %17 = vector.load %arg5[%c0_11, %c0_12] : memref<8x128xf32, #tpu.memory_space<vmem>>, vector<8x128xf32>
      tpu.vector_store %arg5[%c0_11, %c0_12], %16 {strides = array<i32>} : memref<8x128xf32, #tpu.memory_space<vmem>>, vector<8x128xf32>,
      %18 = arith.mulf %12, %12 : vector<256x128xf32>
      %cst_13 = arith.constant dense<0.000000e+00> : vector<128xf32>
      %19 = vector.multi_reduction <add>, %18, %cst_13 [0] : vector<256x128xf32> to vector<128xf32>
      %20 = vector.shape_cast %19 : vector<128xf32> to vector<1x128xf32>
      %21 = vector.shape_cast %20 : vector<1x128xf32> to vector<1x128xf32>
      %22 = vector.broadcast %21 : vector<1x128xf32> to vector<8x128xf32>
      %c0_14 = arith.constant 0 : index
      %c0_15 = arith.constant 0 : index
      %23 = vector.load %arg6[%c0_14, %c0_15] : memref<8x128xf32, #tpu.memory_space<vmem>>, vector<8x128xf32>
      tpu.vector_store %arg6[%c0_14, %c0_15], %22 {strides = array<i32>} : memref<8x128xf32, #tpu.memory_space<vmem>>, vector<8x128xf32>,
    } else {
    }
    return
  }
  func.func @transform_0(%arg0: i32, %arg1: i32) -> (i32, i32) {
    %c0_i32 = arith.constant 0 : i32
    return %arg0, %arg1 : i32, i32
  }
  func.func @transform_1(%arg0: i32, %arg1: i32) -> (i32, i32) {
    %c0_i32 = arith.constant 0 : i32
    %c0_i32_0 = arith.constant 0 : i32
    return %arg1, %c0_i32 : i32, i32
  }
  func.func @transform_2(%arg0: i32, %arg1: i32) -> (i32, i32) {
    %c0_i32 = arith.constant 0 : i32
    %c0_i32_0 = arith.constant 0 : i32
    return %arg0, %c0_i32 : i32, i32
  }
  func.func @transform_3(%arg0: i32, %arg1: i32) -> (i32, i32) {
    %c0_i32 = arith.constant 0 : i32
    %c0_i32_0 = arith.constant 0 : i32
    return %arg0, %c0_i32 : i32, i32
  }
  func.func @transform_4(%arg0: i32, %arg1: i32) -> (i32, i32) {
    %c0_i32 = arith.constant 0 : i32
    %c0_i32_0 = arith.constant 0 : i32
    return %arg0, %c0_i32 : i32, i32
  }
}

module attributes {stable_mosaic.version = 11 : i64} {
  func.func @_bn_gelu_kernel(%arg0: i32, %arg1: memref<512x128xf32, #tpu.memory_space<vmem>>, %arg2: memref<1x128xf32, #tpu.memory_space<vmem>>, %arg3: memref<1x128xf32, #tpu.memory_space<vmem>>, %arg4: memref<512x128xbf16, #tpu.memory_space<vmem>>) attributes {dimension_semantics = [#tpu.dimension_semantics<parallel>], iteration_bounds = array<i64: 1>, scalar_prefetch = 0 : i64, scratch_operands = 0 : i64, tpu.core_type = #tpu.core_type<tc>, window_params = [{transform_indices = @transform_0, window_bounds = array<i64: 512, 128>}, {pipeline_mode = #tpu.pipeline_mode<synchronous>, transform_indices = @transform_1, window_bounds = array<i64: 1, 128>}, {pipeline_mode = #tpu.pipeline_mode<synchronous>, transform_indices = @transform_2, window_bounds = array<i64: 1, 128>}, {transform_indices = @transform_3, window_bounds = array<i64: 512, 128>}]} {
    %c0 = arith.constant 0 : index
    %c0_0 = arith.constant 0 : index
    %0 = vector.load %arg1[%c0, %c0_0] : memref<512x128xf32, #tpu.memory_space<vmem>>, vector<512x128xf32>
    %c0_1 = arith.constant 0 : index
    %c0_2 = arith.constant 0 : index
    %1 = vector.load %arg2[%c0_1, %c0_2] : memref<1x128xf32, #tpu.memory_space<vmem>>, vector<1x128xf32>
    %2 = vector.broadcast %1 : vector<1x128xf32> to vector<512x128xf32>
    %3 = arith.mulf %0, %2 : vector<512x128xf32>
    %c0_3 = arith.constant 0 : index
    %c0_4 = arith.constant 0 : index
    %4 = vector.load %arg3[%c0_3, %c0_4] : memref<1x128xf32, #tpu.memory_space<vmem>>, vector<1x128xf32>
    %5 = vector.broadcast %4 : vector<1x128xf32> to vector<512x128xf32>
    %6 = arith.addf %3, %5 : vector<512x128xf32>
    %cst = arith.constant 5.000000e-01 : f32
    %7 = vector.broadcast %cst : f32 to vector<512x128xf32>
    %8 = arith.mulf %7, %6 : vector<512x128xf32>
    %cst_5 = arith.constant 0.707106769 : f32
    %9 = vector.broadcast %cst_5 : f32 to vector<512x128xf32>
    %10 = arith.mulf %6, %9 : vector<512x128xf32>
    %11 = math.erf %10 : vector<512x128xf32>
    %cst_6 = arith.constant 1.000000e+00 : f32
    %12 = vector.broadcast %cst_6 : f32 to vector<512x128xf32>
    %13 = arith.addf %12, %11 : vector<512x128xf32>
    %14 = arith.mulf %8, %13 : vector<512x128xf32>
    %15 = arith.truncf %14 : vector<512x128xf32> to vector<512x128xbf16>
    %c0_7 = arith.constant 0 : index
    %c0_8 = arith.constant 0 : index
    %16 = vector.load %arg4[%c0_7, %c0_8] : memref<512x128xbf16, #tpu.memory_space<vmem>>, vector<512x128xbf16>
    tpu.vector_store %arg4[%c0_7, %c0_8], %15 {strides = array<i32>} : memref<512x128xbf16, #tpu.memory_space<vmem>>, vector<512x128xbf16>,
    return
  }
  func.func @transform_0(%arg0: i32) -> (i32, i32) {
    %c0_i32 = arith.constant 0 : i32
    %c0_i32_0 = arith.constant 0 : i32
    return %arg0, %c0_i32 : i32, i32
  }
  func.func @transform_1(%arg0: i32) -> (i32, i32) {
    %c0_i32 = arith.constant 0 : i32
    %c0_i32_0 = arith.constant 0 : i32
    %c0_i32_1 = arith.constant 0 : i32
    return %c0_i32, %c0_i32_0 : i32, i32
  }
  func.func @transform_2(%arg0: i32) -> (i32, i32) {
    %c0_i32 = arith.constant 0 : i32
    %c0_i32_0 = arith.constant 0 : i32
    %c0_i32_1 = arith.constant 0 : i32
    return %c0_i32, %c0_i32_0 : i32, i32
  }
  func.func @transform_3(%arg0: i32) -> (i32, i32) {
    %c0_i32 = arith.constant 0 : i32
    %c0_i32_0 = arith.constant 0 : i32
    return %arg0, %c0_i32 : i32, i32
  }
}

module attributes {stable_mosaic.version = 11 : i64} {
  func.func @_matmul_stats_kernel(%arg0: i32, %arg1: i32, %arg2: memref<128x896xbf16, #tpu.memory_space<vmem>>, %arg3: memref<896x128xbf16, #tpu.memory_space<vmem>>, %arg4: memref<128x128xf32, #tpu.memory_space<vmem>>, %arg5: memref<8x128xf32, #tpu.memory_space<vmem>>, %arg6: memref<8x128xf32, #tpu.memory_space<vmem>>) attributes {dimension_semantics = [#tpu.dimension_semantics<parallel>, #tpu.dimension_semantics<arbitrary>], iteration_bounds = array<i64: 1, 1>, scalar_prefetch = 0 : i64, scratch_operands = 0 : i64, tpu.core_type = #tpu.core_type<tc>, window_params = [{transform_indices = @transform_0, window_bounds = array<i64: 128, 896>}, {transform_indices = @transform_1, window_bounds = array<i64: 896, 128>}, {transform_indices = @transform_2, window_bounds = array<i64: 128, 128>}, {transform_indices = @transform_3, window_bounds = array<i64: 8, 128>}, {transform_indices = @transform_4, window_bounds = array<i64: 8, 128>}]} {
    %c0 = arith.constant 0 : index
    %c0_0 = arith.constant 0 : index
    %0 = vector.load %arg2[%c0, %c0_0] : memref<128x896xbf16, #tpu.memory_space<vmem>>, vector<128x896xbf16>
    %c0_1 = arith.constant 0 : index
    %c0_2 = arith.constant 0 : index
    %1 = vector.load %arg3[%c0_1, %c0_2] : memref<896x128xbf16, #tpu.memory_space<vmem>>, vector<896x128xbf16>
    %cst = arith.constant dense<0.000000e+00> : vector<128x128xf32>
    %2 = tpu.matmul %0, %1, %cst {dimension_numbers = #tpu.dot_dimension_numbers<[1], [0], [0], [1], [0, 0, 1, 1], [], []>} : vector<128x896xbf16>, vector<896x128xbf16>, vector<128x128xf32> -> vector<128x128xf32>
    %c0_i32 = arith.constant 0 : i32
    %3 = arith.cmpi eq, %arg1, %c0_i32 : i32
    %4 = arith.extui %3 : i1 to i32
    %c0_i32_3 = arith.constant 0 : i32
    %5 = arith.cmpi ne, %4, %c0_i32_3 : i32
    scf.if %5 {
      %c0_8 = arith.constant 0 : index
      %c0_9 = arith.constant 0 : index
      %12 = vector.load %arg4[%c0_8, %c0_9] : memref<128x128xf32, #tpu.memory_space<vmem>>, vector<128x128xf32>
      tpu.vector_store %arg4[%c0_8, %c0_9], %2 {strides = array<i32>} : memref<128x128xf32, #tpu.memory_space<vmem>>, vector<128x128xf32>,
    } else {
    }
    %c0_i32_4 = arith.constant 0 : i32
    %6 = arith.cmpi ne, %arg1, %c0_i32_4 : i32
    %7 = arith.extui %6 : i1 to i32
    %c0_i32_5 = arith.constant 0 : i32
    %8 = arith.cmpi ne, %7, %c0_i32_5 : i32
    scf.if %8 {
      %c0_8 = arith.constant 0 : index
      %c0_9 = arith.constant 0 : index
      %12 = vector.load %arg4[%c0_8, %c0_9] : memref<128x128xf32, #tpu.memory_space<vmem>>, vector<128x128xf32>
      %13 = arith.addf %12, %2 : vector<128x128xf32>
      %c0_10 = arith.constant 0 : index
      %c0_11 = arith.constant 0 : index
      %14 = vector.load %arg4[%c0_10, %c0_11] : memref<128x128xf32, #tpu.memory_space<vmem>>, vector<128x128xf32>
      tpu.vector_store %arg4[%c0_10, %c0_11], %13 {strides = array<i32>} : memref<128x128xf32, #tpu.memory_space<vmem>>, vector<128x128xf32>,
    } else {
    }
    %c0_i32_6 = arith.constant 0 : i32
    %9 = arith.cmpi eq, %arg1, %c0_i32_6 : i32
    %10 = arith.extui %9 : i1 to i32
    %c0_i32_7 = arith.constant 0 : i32
    %11 = arith.cmpi ne, %10, %c0_i32_7 : i32
    scf.if %11 {
      %c0_8 = arith.constant 0 : index
      %c0_9 = arith.constant 0 : index
      %12 = vector.load %arg4[%c0_8, %c0_9] : memref<128x128xf32, #tpu.memory_space<vmem>>, vector<128x128xf32>
      %cst_10 = arith.constant dense<0.000000e+00> : vector<128xf32>
      %13 = vector.multi_reduction <add>, %12, %cst_10 [0] : vector<128x128xf32> to vector<128xf32>
      %14 = vector.shape_cast %13 : vector<128xf32> to vector<1x128xf32>
      %15 = vector.shape_cast %14 : vector<1x128xf32> to vector<1x128xf32>
      %16 = vector.broadcast %15 : vector<1x128xf32> to vector<8x128xf32>
      %c0_11 = arith.constant 0 : index
      %c0_12 = arith.constant 0 : index
      %17 = vector.load %arg5[%c0_11, %c0_12] : memref<8x128xf32, #tpu.memory_space<vmem>>, vector<8x128xf32>
      tpu.vector_store %arg5[%c0_11, %c0_12], %16 {strides = array<i32>} : memref<8x128xf32, #tpu.memory_space<vmem>>, vector<8x128xf32>,
      %18 = arith.mulf %12, %12 : vector<128x128xf32>
      %cst_13 = arith.constant dense<0.000000e+00> : vector<128xf32>
      %19 = vector.multi_reduction <add>, %18, %cst_13 [0] : vector<128x128xf32> to vector<128xf32>
      %20 = vector.shape_cast %19 : vector<128xf32> to vector<1x128xf32>
      %21 = vector.shape_cast %20 : vector<1x128xf32> to vector<1x128xf32>
      %22 = vector.broadcast %21 : vector<1x128xf32> to vector<8x128xf32>
      %c0_14 = arith.constant 0 : index
      %c0_15 = arith.constant 0 : index
      %23 = vector.load %arg6[%c0_14, %c0_15] : memref<8x128xf32, #tpu.memory_space<vmem>>, vector<8x128xf32>
      tpu.vector_store %arg6[%c0_14, %c0_15], %22 {strides = array<i32>} : memref<8x128xf32, #tpu.memory_space<vmem>>, vector<8x128xf32>,
    } else {
    }
    return
  }
  func.func @transform_0(%arg0: i32, %arg1: i32) -> (i32, i32) {
    %c0_i32 = arith.constant 0 : i32
    return %arg0, %arg1 : i32, i32
  }
  func.func @transform_1(%arg0: i32, %arg1: i32) -> (i32, i32) {
    %c0_i32 = arith.constant 0 : i32
    %c0_i32_0 = arith.constant 0 : i32
    return %arg1, %c0_i32 : i32, i32
  }
  func.func @transform_2(%arg0: i32, %arg1: i32) -> (i32, i32) {
    %c0_i32 = arith.constant 0 : i32
    %c0_i32_0 = arith.constant 0 : i32
    return %arg0, %c0_i32 : i32, i32
  }
  func.func @transform_3(%arg0: i32, %arg1: i32) -> (i32, i32) {
    %c0_i32 = arith.constant 0 : i32
    %c0_i32_0 = arith.constant 0 : i32
    return %arg0, %c0_i32 : i32, i32
  }
  func.func @transform_4(%arg0: i32, %arg1: i32) -> (i32, i32) {
    %c0_i32 = arith.constant 0 : i32
    %c0_i32_0 = arith.constant 0 : i32
    return %arg0, %c0_i32 : i32, i32
  }
}

module attributes {stable_mosaic.version = 11 : i64} {
  func.func @_bn_gelu_kernel(%arg0: i32, %arg1: memref<128x128xf32, #tpu.memory_space<vmem>>, %arg2: memref<1x128xf32, #tpu.memory_space<vmem>>, %arg3: memref<1x128xf32, #tpu.memory_space<vmem>>, %arg4: memref<128x128xbf16, #tpu.memory_space<vmem>>) attributes {dimension_semantics = [#tpu.dimension_semantics<parallel>], iteration_bounds = array<i64: 1>, scalar_prefetch = 0 : i64, scratch_operands = 0 : i64, tpu.core_type = #tpu.core_type<tc>, window_params = [{transform_indices = @transform_0, window_bounds = array<i64: 128, 128>}, {pipeline_mode = #tpu.pipeline_mode<synchronous>, transform_indices = @transform_1, window_bounds = array<i64: 1, 128>}, {pipeline_mode = #tpu.pipeline_mode<synchronous>, transform_indices = @transform_2, window_bounds = array<i64: 1, 128>}, {transform_indices = @transform_3, window_bounds = array<i64: 128, 128>}]} {
    %c0 = arith.constant 0 : index
    %c0_0 = arith.constant 0 : index
    %0 = vector.load %arg1[%c0, %c0_0] : memref<128x128xf32, #tpu.memory_space<vmem>>, vector<128x128xf32>
    %c0_1 = arith.constant 0 : index
    %c0_2 = arith.constant 0 : index
    %1 = vector.load %arg2[%c0_1, %c0_2] : memref<1x128xf32, #tpu.memory_space<vmem>>, vector<1x128xf32>
    %2 = vector.broadcast %1 : vector<1x128xf32> to vector<128x128xf32>
    %3 = arith.mulf %0, %2 : vector<128x128xf32>
    %c0_3 = arith.constant 0 : index
    %c0_4 = arith.constant 0 : index
    %4 = vector.load %arg3[%c0_3, %c0_4] : memref<1x128xf32, #tpu.memory_space<vmem>>, vector<1x128xf32>
    %5 = vector.broadcast %4 : vector<1x128xf32> to vector<128x128xf32>
    %6 = arith.addf %3, %5 : vector<128x128xf32>
    %cst = arith.constant 5.000000e-01 : f32
    %7 = vector.broadcast %cst : f32 to vector<128x128xf32>
    %8 = arith.mulf %7, %6 : vector<128x128xf32>
    %cst_5 = arith.constant 0.707106769 : f32
    %9 = vector.broadcast %cst_5 : f32 to vector<128x128xf32>
    %10 = arith.mulf %6, %9 : vector<128x128xf32>
    %11 = math.erf %10 : vector<128x128xf32>
    %cst_6 = arith.constant 1.000000e+00 : f32
    %12 = vector.broadcast %cst_6 : f32 to vector<128x128xf32>
    %13 = arith.addf %12, %11 : vector<128x128xf32>
    %14 = arith.mulf %8, %13 : vector<128x128xf32>
    %15 = arith.truncf %14 : vector<128x128xf32> to vector<128x128xbf16>
    %c0_7 = arith.constant 0 : index
    %c0_8 = arith.constant 0 : index
    %16 = vector.load %arg4[%c0_7, %c0_8] : memref<128x128xbf16, #tpu.memory_space<vmem>>, vector<128x128xbf16>
    tpu.vector_store %arg4[%c0_7, %c0_8], %15 {strides = array<i32>} : memref<128x128xbf16, #tpu.memory_space<vmem>>, vector<128x128xbf16>,
    return
  }
  func.func @transform_0(%arg0: i32) -> (i32, i32) {
    %c0_i32 = arith.constant 0 : i32
    %c0_i32_0 = arith.constant 0 : i32
    return %arg0, %c0_i32 : i32, i32
  }
  func.func @transform_1(%arg0: i32) -> (i32, i32) {
    %c0_i32 = arith.constant 0 : i32
    %c0_i32_0 = arith.constant 0 : i32
    %c0_i32_1 = arith.constant 0 : i32
    return %c0_i32, %c0_i32_0 : i32, i32
  }
  func.func @transform_2(%arg0: i32) -> (i32, i32) {
    %c0_i32 = arith.constant 0 : i32
    %c0_i32_0 = arith.constant 0 : i32
    %c0_i32_1 = arith.constant 0 : i32
    return %c0_i32, %c0_i32_0 : i32, i32
  }
  func.func @transform_3(%arg0: i32) -> (i32, i32) {
    %c0_i32 = arith.constant 0 : i32
    %c0_i32_0 = arith.constant 0 : i32
    return %arg0, %c0_i32 : i32, i32
  }
}

module attributes {stable_mosaic.version = 11 : i64} {
  func.func @_matmul_stats_kernel(%arg0: i32, %arg1: i32, %arg2: memref<32x1664xbf16, #tpu.memory_space<vmem>>, %arg3: memref<1664x128xbf16, #tpu.memory_space<vmem>>, %arg4: memref<32x128xf32, #tpu.memory_space<vmem>>, %arg5: memref<8x128xf32, #tpu.memory_space<vmem>>, %arg6: memref<8x128xf32, #tpu.memory_space<vmem>>) attributes {dimension_semantics = [#tpu.dimension_semantics<parallel>, #tpu.dimension_semantics<arbitrary>], iteration_bounds = array<i64: 1, 1>, scalar_prefetch = 0 : i64, scratch_operands = 0 : i64, tpu.core_type = #tpu.core_type<tc>, window_params = [{transform_indices = @transform_0, window_bounds = array<i64: 32, 1664>}, {transform_indices = @transform_1, window_bounds = array<i64: 1664, 128>}, {transform_indices = @transform_2, window_bounds = array<i64: 32, 128>}, {transform_indices = @transform_3, window_bounds = array<i64: 8, 128>}, {transform_indices = @transform_4, window_bounds = array<i64: 8, 128>}]} {
    %c0 = arith.constant 0 : index
    %c0_0 = arith.constant 0 : index
    %0 = vector.load %arg2[%c0, %c0_0] : memref<32x1664xbf16, #tpu.memory_space<vmem>>, vector<32x1664xbf16>
    %c0_1 = arith.constant 0 : index
    %c0_2 = arith.constant 0 : index
    %1 = vector.load %arg3[%c0_1, %c0_2] : memref<1664x128xbf16, #tpu.memory_space<vmem>>, vector<1664x128xbf16>
    %cst = arith.constant dense<0.000000e+00> : vector<32x128xf32>
    %2 = tpu.matmul %0, %1, %cst {dimension_numbers = #tpu.dot_dimension_numbers<[1], [0], [0], [1], [0, 0, 1, 1], [], []>} : vector<32x1664xbf16>, vector<1664x128xbf16>, vector<32x128xf32> -> vector<32x128xf32>
    %c0_i32 = arith.constant 0 : i32
    %3 = arith.cmpi eq, %arg1, %c0_i32 : i32
    %4 = arith.extui %3 : i1 to i32
    %c0_i32_3 = arith.constant 0 : i32
    %5 = arith.cmpi ne, %4, %c0_i32_3 : i32
    scf.if %5 {
      %c0_8 = arith.constant 0 : index
      %c0_9 = arith.constant 0 : index
      %12 = vector.load %arg4[%c0_8, %c0_9] : memref<32x128xf32, #tpu.memory_space<vmem>>, vector<32x128xf32>
      tpu.vector_store %arg4[%c0_8, %c0_9], %2 {strides = array<i32>} : memref<32x128xf32, #tpu.memory_space<vmem>>, vector<32x128xf32>,
    } else {
    }
    %c0_i32_4 = arith.constant 0 : i32
    %6 = arith.cmpi ne, %arg1, %c0_i32_4 : i32
    %7 = arith.extui %6 : i1 to i32
    %c0_i32_5 = arith.constant 0 : i32
    %8 = arith.cmpi ne, %7, %c0_i32_5 : i32
    scf.if %8 {
      %c0_8 = arith.constant 0 : index
      %c0_9 = arith.constant 0 : index
      %12 = vector.load %arg4[%c0_8, %c0_9] : memref<32x128xf32, #tpu.memory_space<vmem>>, vector<32x128xf32>
      %13 = arith.addf %12, %2 : vector<32x128xf32>
      %c0_10 = arith.constant 0 : index
      %c0_11 = arith.constant 0 : index
      %14 = vector.load %arg4[%c0_10, %c0_11] : memref<32x128xf32, #tpu.memory_space<vmem>>, vector<32x128xf32>
      tpu.vector_store %arg4[%c0_10, %c0_11], %13 {strides = array<i32>} : memref<32x128xf32, #tpu.memory_space<vmem>>, vector<32x128xf32>,
    } else {
    }
    %c0_i32_6 = arith.constant 0 : i32
    %9 = arith.cmpi eq, %arg1, %c0_i32_6 : i32
    %10 = arith.extui %9 : i1 to i32
    %c0_i32_7 = arith.constant 0 : i32
    %11 = arith.cmpi ne, %10, %c0_i32_7 : i32
    scf.if %11 {
      %c0_8 = arith.constant 0 : index
      %c0_9 = arith.constant 0 : index
      %12 = vector.load %arg4[%c0_8, %c0_9] : memref<32x128xf32, #tpu.memory_space<vmem>>, vector<32x128xf32>
      %cst_10 = arith.constant dense<0.000000e+00> : vector<128xf32>
      %13 = vector.multi_reduction <add>, %12, %cst_10 [0] : vector<32x128xf32> to vector<128xf32>
      %14 = vector.shape_cast %13 : vector<128xf32> to vector<1x128xf32>
      %15 = vector.shape_cast %14 : vector<1x128xf32> to vector<1x128xf32>
      %16 = vector.broadcast %15 : vector<1x128xf32> to vector<8x128xf32>
      %c0_11 = arith.constant 0 : index
      %c0_12 = arith.constant 0 : index
      %17 = vector.load %arg5[%c0_11, %c0_12] : memref<8x128xf32, #tpu.memory_space<vmem>>, vector<8x128xf32>
      tpu.vector_store %arg5[%c0_11, %c0_12], %16 {strides = array<i32>} : memref<8x128xf32, #tpu.memory_space<vmem>>, vector<8x128xf32>,
      %18 = arith.mulf %12, %12 : vector<32x128xf32>
      %cst_13 = arith.constant dense<0.000000e+00> : vector<128xf32>
      %19 = vector.multi_reduction <add>, %18, %cst_13 [0] : vector<32x128xf32> to vector<128xf32>
      %20 = vector.shape_cast %19 : vector<128xf32> to vector<1x128xf32>
      %21 = vector.shape_cast %20 : vector<1x128xf32> to vector<1x128xf32>
      %22 = vector.broadcast %21 : vector<1x128xf32> to vector<8x128xf32>
      %c0_14 = arith.constant 0 : index
      %c0_15 = arith.constant 0 : index
      %23 = vector.load %arg6[%c0_14, %c0_15] : memref<8x128xf32, #tpu.memory_space<vmem>>, vector<8x128xf32>
      tpu.vector_store %arg6[%c0_14, %c0_15], %22 {strides = array<i32>} : memref<8x128xf32, #tpu.memory_space<vmem>>, vector<8x128xf32>,
    } else {
    }
    return
  }
  func.func @transform_0(%arg0: i32, %arg1: i32) -> (i32, i32) {
    %c0_i32 = arith.constant 0 : i32
    return %arg0, %arg1 : i32, i32
  }
  func.func @transform_1(%arg0: i32, %arg1: i32) -> (i32, i32) {
    %c0_i32 = arith.constant 0 : i32
    %c0_i32_0 = arith.constant 0 : i32
    return %arg1, %c0_i32 : i32, i32
  }
  func.func @transform_2(%arg0: i32, %arg1: i32) -> (i32, i32) {
    %c0_i32 = arith.constant 0 : i32
    %c0_i32_0 = arith.constant 0 : i32
    return %arg0, %c0_i32 : i32, i32
  }
  func.func @transform_3(%arg0: i32, %arg1: i32) -> (i32, i32) {
    %c0_i32 = arith.constant 0 : i32
    %c0_i32_0 = arith.constant 0 : i32
    return %arg0, %c0_i32 : i32, i32
  }
  func.func @transform_4(%arg0: i32, %arg1: i32) -> (i32, i32) {
    %c0_i32 = arith.constant 0 : i32
    %c0_i32_0 = arith.constant 0 : i32
    return %arg0, %c0_i32 : i32, i32
  }
}

module attributes {stable_mosaic.version = 11 : i64} {
  func.func @_bn_gelu_kernel(%arg0: i32, %arg1: memref<32x128xf32, #tpu.memory_space<vmem>>, %arg2: memref<1x128xf32, #tpu.memory_space<vmem>>, %arg3: memref<1x128xf32, #tpu.memory_space<vmem>>, %arg4: memref<32x128xbf16, #tpu.memory_space<vmem>>) attributes {dimension_semantics = [#tpu.dimension_semantics<parallel>], iteration_bounds = array<i64: 1>, scalar_prefetch = 0 : i64, scratch_operands = 0 : i64, tpu.core_type = #tpu.core_type<tc>, window_params = [{transform_indices = @transform_0, window_bounds = array<i64: 32, 128>}, {pipeline_mode = #tpu.pipeline_mode<synchronous>, transform_indices = @transform_1, window_bounds = array<i64: 1, 128>}, {pipeline_mode = #tpu.pipeline_mode<synchronous>, transform_indices = @transform_2, window_bounds = array<i64: 1, 128>}, {transform_indices = @transform_3, window_bounds = array<i64: 32, 128>}]} {
    %c0 = arith.constant 0 : index
    %c0_0 = arith.constant 0 : index
    %0 = vector.load %arg1[%c0, %c0_0] : memref<32x128xf32, #tpu.memory_space<vmem>>, vector<32x128xf32>
    %c0_1 = arith.constant 0 : index
    %c0_2 = arith.constant 0 : index
    %1 = vector.load %arg2[%c0_1, %c0_2] : memref<1x128xf32, #tpu.memory_space<vmem>>, vector<1x128xf32>
    %2 = vector.broadcast %1 : vector<1x128xf32> to vector<32x128xf32>
    %3 = arith.mulf %0, %2 : vector<32x128xf32>
    %c0_3 = arith.constant 0 : index
    %c0_4 = arith.constant 0 : index
    %4 = vector.load %arg3[%c0_3, %c0_4] : memref<1x128xf32, #tpu.memory_space<vmem>>, vector<1x128xf32>
    %5 = vector.broadcast %4 : vector<1x128xf32> to vector<32x128xf32>
    %6 = arith.addf %3, %5 : vector<32x128xf32>
    %cst = arith.constant 5.000000e-01 : f32
    %7 = vector.broadcast %cst : f32 to vector<32x128xf32>
    %8 = arith.mulf %7, %6 : vector<32x128xf32>
    %cst_5 = arith.constant 0.707106769 : f32
    %9 = vector.broadcast %cst_5 : f32 to vector<32x128xf32>
    %10 = arith.mulf %6, %9 : vector<32x128xf32>
    %11 = math.erf %10 : vector<32x128xf32>
    %cst_6 = arith.constant 1.000000e+00 : f32
    %12 = vector.broadcast %cst_6 : f32 to vector<32x128xf32>
    %13 = arith.addf %12, %11 : vector<32x128xf32>
    %14 = arith.mulf %8, %13 : vector<32x128xf32>
    %15 = arith.truncf %14 : vector<32x128xf32> to vector<32x128xbf16>
    %c0_7 = arith.constant 0 : index
    %c0_8 = arith.constant 0 : index
    %16 = vector.load %arg4[%c0_7, %c0_8] : memref<32x128xbf16, #tpu.memory_space<vmem>>, vector<32x128xbf16>
    tpu.vector_store %arg4[%c0_7, %c0_8], %15 {strides = array<i32>} : memref<32x128xbf16, #tpu.memory_space<vmem>>, vector<32x128xbf16>,
    return
  }
  func.func @transform_0(%arg0: i32) -> (i32, i32) {
    %c0_i32 = arith.constant 0 : i32
    %c0_i32_0 = arith.constant 0 : i32
    return %arg0, %c0_i32 : i32, i32
  }
  func.func @transform_1(%arg0: i32) -> (i32, i32) {
    %c0_i32 = arith.constant 0 : i32
    %c0_i32_0 = arith.constant 0 : i32
    %c0_i32_1 = arith.constant 0 : i32
    return %c0_i32, %c0_i32_0 : i32, i32
  }
  func.func @transform_2(%arg0: i32) -> (i32, i32) {
    %c0_i32 = arith.constant 0 : i32
    %c0_i32_0 = arith.constant 0 : i32
    %c0_i32_1 = arith.constant 0 : i32
    return %c0_i32, %c0_i32_0 : i32, i32
  }
  func.func @transform_3(%arg0: i32) -> (i32, i32) {
    %c0_i32 = arith.constant 0 : i32
    %c0_i32_0 = arith.constant 0 : i32
    return %arg0, %c0_i32 : i32, i32
  }
}

module attributes {stable_mosaic.version = 11 : i64} {
  func.func @_matmul_kernel(%arg0: i32, %arg1: i32, %arg2: memref<32x1152xbf16, #tpu.memory_space<vmem>>, %arg3: memref<1152x128xbf16, #tpu.memory_space<vmem>>, %arg4: memref<32x128xf32, #tpu.memory_space<vmem>>) attributes {dimension_semantics = [#tpu.dimension_semantics<parallel>, #tpu.dimension_semantics<arbitrary>], iteration_bounds = array<i64: 1, 1>, scalar_prefetch = 0 : i64, scratch_operands = 0 : i64, tpu.core_type = #tpu.core_type<tc>, window_params = [{transform_indices = @transform_0, window_bounds = array<i64: 32, 1152>}, {transform_indices = @transform_1, window_bounds = array<i64: 1152, 128>}, {transform_indices = @transform_2, window_bounds = array<i64: 32, 128>}]} {
    %c0 = arith.constant 0 : index
    %c0_0 = arith.constant 0 : index
    %0 = vector.load %arg2[%c0, %c0_0] : memref<32x1152xbf16, #tpu.memory_space<vmem>>, vector<32x1152xbf16>
    %c0_1 = arith.constant 0 : index
    %c0_2 = arith.constant 0 : index
    %1 = vector.load %arg3[%c0_1, %c0_2] : memref<1152x128xbf16, #tpu.memory_space<vmem>>, vector<1152x128xbf16>
    %cst = arith.constant dense<0.000000e+00> : vector<32x128xf32>
    %2 = tpu.matmul %0, %1, %cst {dimension_numbers = #tpu.dot_dimension_numbers<[1], [0], [0], [1], [0, 0, 1, 1], [], []>} : vector<32x1152xbf16>, vector<1152x128xbf16>, vector<32x128xf32> -> vector<32x128xf32>
    %c0_i32 = arith.constant 0 : i32
    %3 = arith.cmpi eq, %arg1, %c0_i32 : i32
    %4 = arith.extui %3 : i1 to i32
    %c0_i32_3 = arith.constant 0 : i32
    %5 = arith.cmpi ne, %4, %c0_i32_3 : i32
    scf.if %5 {
      %c0_6 = arith.constant 0 : index
      %c0_7 = arith.constant 0 : index
      %9 = vector.load %arg4[%c0_6, %c0_7] : memref<32x128xf32, #tpu.memory_space<vmem>>, vector<32x128xf32>
      tpu.vector_store %arg4[%c0_6, %c0_7], %2 {strides = array<i32>} : memref<32x128xf32, #tpu.memory_space<vmem>>, vector<32x128xf32>,
    } else {
    }
    %c0_i32_4 = arith.constant 0 : i32
    %6 = arith.cmpi ne, %arg1, %c0_i32_4 : i32
    %7 = arith.extui %6 : i1 to i32
    %c0_i32_5 = arith.constant 0 : i32
    %8 = arith.cmpi ne, %7, %c0_i32_5 : i32
    scf.if %8 {
      %c0_6 = arith.constant 0 : index
      %c0_7 = arith.constant 0 : index
      %9 = vector.load %arg4[%c0_6, %c0_7] : memref<32x128xf32, #tpu.memory_space<vmem>>, vector<32x128xf32>
      %10 = arith.addf %9, %2 : vector<32x128xf32>
      %c0_8 = arith.constant 0 : index
      %c0_9 = arith.constant 0 : index
      %11 = vector.load %arg4[%c0_8, %c0_9] : memref<32x128xf32, #tpu.memory_space<vmem>>, vector<32x128xf32>
      tpu.vector_store %arg4[%c0_8, %c0_9], %10 {strides = array<i32>} : memref<32x128xf32, #tpu.memory_space<vmem>>, vector<32x128xf32>,
    } else {
    }
    return
  }
  func.func @transform_0(%arg0: i32, %arg1: i32) -> (i32, i32) {
    %c0_i32 = arith.constant 0 : i32
    return %arg0, %arg1 : i32, i32
  }
  func.func @transform_1(%arg0: i32, %arg1: i32) -> (i32, i32) {
    %c0_i32 = arith.constant 0 : i32
    %c0_i32_0 = arith.constant 0 : i32
    return %arg1, %c0_i32 : i32, i32
  }
  func.func @transform_2(%arg0: i32, %arg1: i32) -> (i32, i32) {
    %c0_i32 = arith.constant 0 : i32
    %c0_i32_0 = arith.constant 0 : i32
    return %arg0, %c0_i32 : i32, i32
  }
}

module attributes {stable_mosaic.version = 11 : i64} {
  func.func @_bn_kernel(%arg0: i32, %arg1: memref<8x2048xf32, #tpu.memory_space<vmem>>, %arg2: memref<1x2048xf32, #tpu.memory_space<vmem>>, %arg3: memref<1x2048xf32, #tpu.memory_space<vmem>>, %arg4: memref<8x2048xbf16, #tpu.memory_space<vmem>>) attributes {dimension_semantics = [#tpu.dimension_semantics<parallel>], iteration_bounds = array<i64: 1>, scalar_prefetch = 0 : i64, scratch_operands = 0 : i64, tpu.core_type = #tpu.core_type<tc>, window_params = [{transform_indices = @transform_0, window_bounds = array<i64: 8, 2048>}, {pipeline_mode = #tpu.pipeline_mode<synchronous>, transform_indices = @transform_1, window_bounds = array<i64: 1, 2048>}, {pipeline_mode = #tpu.pipeline_mode<synchronous>, transform_indices = @transform_2, window_bounds = array<i64: 1, 2048>}, {transform_indices = @transform_3, window_bounds = array<i64: 8, 2048>}]} {
    %c0 = arith.constant 0 : index
    %c0_0 = arith.constant 0 : index
    %0 = vector.load %arg1[%c0, %c0_0] : memref<8x2048xf32, #tpu.memory_space<vmem>>, vector<8x2048xf32>
    %c0_1 = arith.constant 0 : index
    %c0_2 = arith.constant 0 : index
    %1 = vector.load %arg2[%c0_1, %c0_2] : memref<1x2048xf32, #tpu.memory_space<vmem>>, vector<1x2048xf32>
    %2 = vector.broadcast %1 : vector<1x2048xf32> to vector<8x2048xf32>
    %3 = arith.mulf %0, %2 : vector<8x2048xf32>
    %c0_3 = arith.constant 0 : index
    %c0_4 = arith.constant 0 : index
    %4 = vector.load %arg3[%c0_3, %c0_4] : memref<1x2048xf32, #tpu.memory_space<vmem>>, vector<1x2048xf32>
    %5 = vector.broadcast %4 : vector<1x2048xf32> to vector<8x2048xf32>
    %6 = arith.addf %3, %5 : vector<8x2048xf32>
    %7 = arith.truncf %6 : vector<8x2048xf32> to vector<8x2048xbf16>
    %c0_5 = arith.constant 0 : index
    %c0_6 = arith.constant 0 : index
    %8 = vector.load %arg4[%c0_5, %c0_6] : memref<8x2048xbf16, #tpu.memory_space<vmem>>, vector<8x2048xbf16>
    tpu.vector_store %arg4[%c0_5, %c0_6], %7 {strides = array<i32>} : memref<8x2048xbf16, #tpu.memory_space<vmem>>, vector<8x2048xbf16>,
    return
  }
  func.func @transform_0(%arg0: i32) -> (i32, i32) {
    %c0_i32 = arith.constant 0 : i32
    %c0_i32_0 = arith.constant 0 : i32
    return %arg0, %c0_i32 : i32, i32
  }
  func.func @transform_1(%arg0: i32) -> (i32, i32) {
    %c0_i32 = arith.constant 0 : i32
    %c0_i32_0 = arith.constant 0 : i32
    %c0_i32_1 = arith.constant 0 : i32
    return %c0_i32, %c0_i32_0 : i32, i32
  }
  func.func @transform_2(%arg0: i32) -> (i32, i32) {
    %c0_i32 = arith.constant 0 : i32
    %c0_i32_0 = arith.constant 0 : i32
    %c0_i32_1 = arith.constant 0 : i32
    return %c0_i32, %c0_i32_0 : i32, i32
  }
  func.func @transform_3(%arg0: i32) -> (i32, i32) {
    %c0_i32 = arith.constant 0 : i32
    %c0_i32_0 = arith.constant 0 : i32
    return %arg0, %c0_i32 : i32, i32
  }
}

module attributes {stable_mosaic.version = 11 : i64} {
  func.func @_matmul_bias_kernel(%arg0: i32, %arg1: i32, %arg2: memref<8x2048xbf16, #tpu.memory_space<vmem>>, %arg3: memref<2048x128xbf16, #tpu.memory_space<vmem>>, %arg4: memref<1x128xf32, #tpu.memory_space<vmem>>, %arg5: memref<8x128xf32, #tpu.memory_space<vmem>>) attributes {dimension_semantics = [#tpu.dimension_semantics<parallel>, #tpu.dimension_semantics<arbitrary>], iteration_bounds = array<i64: 1, 1>, scalar_prefetch = 0 : i64, scratch_operands = 0 : i64, tpu.core_type = #tpu.core_type<tc>, window_params = [{transform_indices = @transform_0, window_bounds = array<i64: 8, 2048>}, {transform_indices = @transform_1, window_bounds = array<i64: 2048, 128>}, {pipeline_mode = #tpu.pipeline_mode<synchronous>, transform_indices = @transform_2, window_bounds = array<i64: 1, 128>}, {transform_indices = @transform_3, window_bounds = array<i64: 8, 128>}]} {
    %c0 = arith.constant 0 : index
    %c0_0 = arith.constant 0 : index
    %0 = vector.load %arg2[%c0, %c0_0] : memref<8x2048xbf16, #tpu.memory_space<vmem>>, vector<8x2048xbf16>
    %c0_1 = arith.constant 0 : index
    %c0_2 = arith.constant 0 : index
    %1 = vector.load %arg3[%c0_1, %c0_2] : memref<2048x128xbf16, #tpu.memory_space<vmem>>, vector<2048x128xbf16>
    %cst = arith.constant dense<0.000000e+00> : vector<8x128xf32>
    %2 = tpu.matmul %0, %1, %cst {dimension_numbers = #tpu.dot_dimension_numbers<[1], [0], [0], [1], [0, 0, 1, 1], [], []>} : vector<8x2048xbf16>, vector<2048x128xbf16>, vector<8x128xf32> -> vector<8x128xf32>
    %c0_i32 = arith.constant 0 : i32
    %3 = arith.cmpi eq, %arg1, %c0_i32 : i32
    %4 = arith.extui %3 : i1 to i32
    %c0_i32_3 = arith.constant 0 : i32
    %5 = arith.cmpi ne, %4, %c0_i32_3 : i32
    scf.if %5 {
      %c0_8 = arith.constant 0 : index
      %c0_9 = arith.constant 0 : index
      %12 = vector.load %arg5[%c0_8, %c0_9] : memref<8x128xf32, #tpu.memory_space<vmem>>, vector<8x128xf32>
      tpu.vector_store %arg5[%c0_8, %c0_9], %2 {strides = array<i32>} : memref<8x128xf32, #tpu.memory_space<vmem>>, vector<8x128xf32>,
    } else {
    }
    %c0_i32_4 = arith.constant 0 : i32
    %6 = arith.cmpi ne, %arg1, %c0_i32_4 : i32
    %7 = arith.extui %6 : i1 to i32
    %c0_i32_5 = arith.constant 0 : i32
    %8 = arith.cmpi ne, %7, %c0_i32_5 : i32
    scf.if %8 {
      %c0_8 = arith.constant 0 : index
      %c0_9 = arith.constant 0 : index
      %12 = vector.load %arg5[%c0_8, %c0_9] : memref<8x128xf32, #tpu.memory_space<vmem>>, vector<8x128xf32>
      %13 = arith.addf %12, %2 : vector<8x128xf32>
      %c0_10 = arith.constant 0 : index
      %c0_11 = arith.constant 0 : index
      %14 = vector.load %arg5[%c0_10, %c0_11] : memref<8x128xf32, #tpu.memory_space<vmem>>, vector<8x128xf32>
      tpu.vector_store %arg5[%c0_10, %c0_11], %13 {strides = array<i32>} : memref<8x128xf32, #tpu.memory_space<vmem>>, vector<8x128xf32>,
    } else {
    }
    %c0_i32_6 = arith.constant 0 : i32
    %9 = arith.cmpi eq, %arg1, %c0_i32_6 : i32
    %10 = arith.extui %9 : i1 to i32
    %c0_i32_7 = arith.constant 0 : i32
    %11 = arith.cmpi ne, %10, %c0_i32_7 : i32
    scf.if %11 {
      %c0_8 = arith.constant 0 : index
      %c0_9 = arith.constant 0 : index
      %12 = vector.load %arg5[%c0_8, %c0_9] : memref<8x128xf32, #tpu.memory_space<vmem>>, vector<8x128xf32>
      %c0_10 = arith.constant 0 : index
      %c0_11 = arith.constant 0 : index
      %13 = vector.load %arg4[%c0_10, %c0_11] : memref<1x128xf32, #tpu.memory_space<vmem>>, vector<1x128xf32>
      %14 = vector.broadcast %13 : vector<1x128xf32> to vector<8x128xf32>
      %15 = arith.addf %12, %14 : vector<8x128xf32>
      %c0_12 = arith.constant 0 : index
      %c0_13 = arith.constant 0 : index
      %16 = vector.load %arg5[%c0_12, %c0_13] : memref<8x128xf32, #tpu.memory_space<vmem>>, vector<8x128xf32>
      tpu.vector_store %arg5[%c0_12, %c0_13], %15 {strides = array<i32>} : memref<8x128xf32, #tpu.memory_space<vmem>>, vector<8x128xf32>,
    } else {
    }
    return
  }
  func.func @transform_0(%arg0: i32, %arg1: i32) -> (i32, i32) {
    %c0_i32 = arith.constant 0 : i32
    return %arg0, %arg1 : i32, i32
  }
  func.func @transform_1(%arg0: i32, %arg1: i32) -> (i32, i32) {
    %c0_i32 = arith.constant 0 : i32
    %c0_i32_0 = arith.constant 0 : i32
    return %arg1, %c0_i32 : i32, i32
  }
  func.func @transform_2(%arg0: i32, %arg1: i32) -> (i32, i32) {
    %c0_i32 = arith.constant 0 : i32
    %c0_i32_0 = arith.constant 0 : i32
    %c0_i32_1 = arith.constant 0 : i32
    return %c0_i32, %c0_i32_0 : i32, i32
  }
  func.func @transform_3(%arg0: i32, %arg1: i32) -> (i32, i32) {
    %c0_i32 = arith.constant 0 : i32
    %c0_i32_0 = arith.constant 0 : i32
    return %arg0, %c0_i32 : i32, i32
  }
}

</mosaic_0001>

<bundles_post_ra>
// kernel: mymodel_forward.10
= control target key start
LH: loop header
LB: loop body
LE: loop exit
PB: predicated region body
PF: predicated region fallthrough
CT: control target
= control target key end

     0   :  { %s1809_s0 = inlined_call_operand.vmem [shape: f32[512,128], index: 0, kind: input, shape index: {}]   ;;  %s1810_s1 = inlined_call_operand.vmem [shape: f32[1,128], index: 1, kind: input, shape index: {}]   ;;  %s1811_s2 = inlined_call_operand.vmem [shape: f32[1,128], index: 2, kind: input, shape index: {}]   ;;  %s1812_s3 = inlined_call_operand.vmem [shape: bf16[512,128], index: 3, kind: output, shape index: {}]  }
   0x1   :  { %v14_v0 = vld [vmem:[%s1809_s0] sm:$0xff]  ;;  %v15_v1 = vld [vmem:[%s1809_s0 + $0x8] sm:$0xff]  ;;  %v16_v6 = vld [vmem:[%s1809_s0 + $0x10] sm:$0xff] }
   0x2   :  { %v1344_v2 = vld [vmem:[%s1810_s1] ss:$0 sm:$0xff]  ;;  %v17_v7 = vld [vmem:[%s1809_s0 + $0x18] sm:$0xff]  ;;  %v19_v11 = vld [vmem:[%s1809_s0 + $0x28] sm:$0xff] }
   0x3   :  { %v85_v3 = vmul.f32 %v1344_v2, %v14_v0  ;;  %v86_v4 = vmul.f32 %v1344_v2, %v15_v1  ;;  %v1351_v5 = vld [vmem:[%s1811_s2] ss:$0 sm:$0xff]  ;;  %v87_v8 = vmul.f32 %v1344_v2, %v16_v6  ;;  %v88_v9 = vmul.f32 %v1344_v2, %v17_v7  ;;  %v20_v12 = vld [vmem:[%s1809_s0 + $0x30] sm:$0xff]  ;;  %v21_v17 = vld [vmem:[%s1809_s0 + $0x38] sm:$0xff] }
   0x4   :  { %v18_v10 = vld [vmem:[%s1809_s0 + $0x20] sm:$0xff]  ;;  %v90_v16 = vmul.f32 %v1344_v2, %v19_v11  ;;  %v91_v20 = vmul.f32 %v1344_v2, %v20_v12  ;;  %v92_v21 = vmul.f32 %v1344_v2, %v21_v17  ;;  %v23_v25 = vld [vmem:[%s1809_s0 + $0x48] sm:$0xff]  ;;  %v24_v37 = vld [vmem:[%s1809_s0 + $0x50] sm:$0xff] }
   0x5   :  { %v156_v13 = vadd.f32 %v1351_v5, %v85_v3  ;;  %v157_v14 = vadd.f32 %v1351_v5, %v86_v4  ;;  %v89_v15 = vmul.f32 %v1344_v2, %v18_v10  ;;  %v158_v18 = vadd.f32 %v1351_v5, %v87_v8  ;;  %v22_v24 = vld [vmem:[%s1809_s0 + $0x40] sm:$0xff]  ;;  %v25_v38 = vld [vmem:[%s1809_s0 + $0x58] sm:$0xff]  ;;  %v27_v49 = vld [vmem:[%s1809_s0 + $0x68] sm:$0xff] }
   0x6   :  { %v159_v19 = vadd.f32 %v1351_v5, %v88_v9  ;;  %v161_v29 = vadd.f32 %v1351_v5, %v90_v16  ;;  %v162_v30 = vadd.f32 %v1351_v5, %v91_v20  ;;  %v163_v31 = vadd.f32 %v1351_v5, %v92_v21  ;;  %v26_v42 = vld [vmem:[%s1809_s0 + $0x60] sm:$0xff]  ;;  %v28_v53 = vld [vmem:[%s1809_s0 + $0x70] sm:$0xff]  ;;  %v29_v60 = vld [vmem:[%s1809_s0 + $0x78] sm:$0xff] }
   0x7   :  { %v284_v22 = vmul.f32 0.70710677, %v156_v13  ;;  %v285_v23 = vmul.f32 0.70710677, %v157_v14  ;;  %v286_v26 = vmul.f32 0.70710677, %v158_v18  ;;  %v160_v28 = vadd.f32 %v1351_v5, %v89_v15 }
   0x8   :  { %v287_v27 = vmul.f32 0.70710677, %v159_v19  ;;  %v93_v32 = vmul.f32 %v1344_v2, %v22_v24  ;;  %v94_v33 = vmul.f32 %v1344_v2, %v23_v25  ;;  %v220_v34 = vmul.f32 0.5, %v156_v13 }
   0x9   :  { %1185 = verf.f32 %v284_v22  ;;  %v221_v35 = vmul.f32 0.5, %v157_v14  ;;  %v288_v36 = vmul.f32 0.70710677, %v160_v28  ;;  %v222_v39 = vmul.f32 0.5, %v158_v18 }
   0xa   :  { %1187 = verf.f32 %v285_v23  ;;  %v1399_v40 = vmul.f32 0.5, %v159_v19  ;;  %v289_v41 = vmul.f32 0.70710677, %v161_v29  ;;  %v290_v43 = vmul.f32 0.70710677, %v162_v30 }
   0xb   :  { %1189 = verf.f32 %v286_v26  ;;  %v291_v44 = vmul.f32 0.70710677, %v163_v31  ;;  %v164_v45 = vadd.f32 %v1351_v5, %v93_v32  ;;  %v165_v46 = vadd.f32 %v1351_v5, %v94_v33 }
   0xc   :  { %1191 = verf.f32 %v287_v27  ;;  %v95_v47 = vmul.f32 %v1344_v2, %v24_v37  ;;  %v96_v48 = vmul.f32 %v1344_v2, %v25_v38  ;;  %v224_v50 = vmul.f32 0.5, %v160_v28  ;;  %v30_v28 = vld [vmem:[%s1809_s0 + $0x80] sm:$0xff] }
   0xd   :  { %1193 = verf.f32 %v288_v36  ;;  %v292_v51 = vmul.f32 0.70710677, %v164_v45  ;;  %v97_v52 = vmul.f32 %v1344_v2, %v26_v42  ;;  %v225_v54 = vmul.f32 0.5, %v161_v29 }
   0xe   :  { %1195 = verf.f32 %v289_v41  ;;  %v293_v55 = vmul.f32 0.70710677, %v165_v46  ;;  %v166_v56 = vadd.f32 %v1351_v5, %v95_v47  ;;  %v167_v57 = vadd.f32 %v1351_v5, %v96_v48 }
   0xf   :  { %1197 = verf.f32 %v290_v43  ;;  %v98_v58 = vmul.f32 %v1344_v2, %v27_v49  ;;  %v1419_v59 = vadd.f32 %v1351_v5, %v97_v52  ;;  %v226_v61 = vmul.f32 0.5, %v162_v30 }
  0x10   :  { %1199 = verf.f32 %v291_v44  ;;  %v294_v62 = vmul.f32 0.70710677, %v166_v56  ;;  %v99_v63 = vmul.f32 %v1344_v2, %v28_v53  ;;  %v227_v1 = vmul.f32 0.5, %v163_v31  ;;  %v32_v44 = vld [vmem:[%s1809_s0 + $0x90] sm:$0xff] }
  0x11   :  { %1201 = verf.f32 %v292_v51  ;;  %v228_v3 = vmul.f32 0.5, %v164_v45  ;;  %v295_v4 = vmul.f32 0.70710677, %v167_v57  ;;  %v1426_v6 = vadd.f32 %v1351_v5, %v98_v58  ;;  %v33_v45 = vld [vmem:[%s1809_s0 + $0x98] sm:$0xff] }
  0x12   :  { %1203 = verf.f32 %v293_v55  ;;  %v296_v9 = vmul.f32 0.70710677, %v1419_v59  ;;  %v100_v10 = vmul.f32 %v1344_v2, %v29_v60  ;;  %v229_v13 = vmul.f32 0.5, %v165_v46 }
  0x13   :  { %v1186_v0 = vpop.eup %1185  ;;  %1205 = verf.f32 %v294_v62  ;;  %v297_v14 = vmul.f32 0.70710677, %v1426_v6  ;;  %v1432_v18 = vadd.f32 %v1351_v5, %v99_v63  ;;  %v230_v26 = vmul.f32 0.5, %v166_v56 }
  0x14   :  { %v1188_v7 = vpop.eup %1187  ;;  %v412_v8 = vadd.f32 1.0, %v1186_v0  ;;  %1207 = verf.f32 %v295_v4  ;;  %v1435_v22 = vadd.f32 %v1351_v5, %v100_v10  ;;  %v231_v33 = vmul.f32 0.5, %v167_v57 }
  0x15   :  { %v1190_v11 = vpop.eup %1189  ;;  %v413_v12 = vadd.f32 1.0, %v1188_v7  ;;  %1209 = verf.f32 %v296_v9  ;;  %v298_v27 = vmul.f32 0.70710677, %v1432_v18  ;;  %v101_v43 = vmul.f32 %v1344_v2, %v30_v28 }
  0x16   :  { %v1192_v15 = vpop.eup %1191  ;;  %v476_v16 = vmul.f32 %v412_v8, %v220_v34  ;;  %v414_v17 = vadd.f32 1.0, %v1190_v11  ;;  %1211 = verf.f32 %v297_v14  ;;  %v31_v34 = vld [vmem:[%s1809_s0 + $0x88] sm:$0xff]  ;;  %v299_v38 = vmul.f32 0.70710677, %v1435_v22 }
  0x17   :  { %v1194_v19 = vpop.eup %1193  ;;  %v477_v20 = vmul.f32 %v413_v12, %v221_v35  ;;  %v415_v21 = vadd.f32 1.0, %v1192_v15  ;;  %1213 = verf.f32 %v298_v27  ;;  %v102_v49 = vmul.f32 %v1344_v2, %v31_v34 }
  0x18   :  { %v1196_v23 = vpop.eup %1195  ;;  %v478_v24 = vmul.f32 %v414_v17, %v222_v39  ;;  %v416_v25 = vadd.f32 1.0, %v1194_v19  ;;  %1215 = verf.f32 %v299_v38  ;;  %v1461_v53 = vadd.f32 %v1351_v5, %v101_v43 }
  0x19   :  { %v1198_v29 = vpop.eup %1197  ;;  %v997_v30 = vpack.c.bf16 %v477_v20, %v476_v16  ;;  %v479_v31 = vmul.f32 %v415_v21, %v1399_v40  ;;  %v417_v32 = vadd.f32 1.0, %v1196_v23  ;;  %v173_v56 = vadd.f32 %v1351_v5, %v102_v49  ;;  %v35_v16 = vld [vmem:[%s1809_s0 + $0xa8] sm:$0xff]  ;;  %v36_v21 = vld [vmem:[%s1809_s0 + $0xb0] sm:$0xff]  ;;  %v37_v23 = vld [vmem:[%s1809_s0 + $0xb8] sm:$0xff] }
  0x1a   :  { %v1200_v35 = vpop.eup %1199  ;;  %v480_v36 = vmul.f32 %v416_v25, %v224_v50  ;;  %v418_v37 = vadd.f32 1.0, %v1198_v29  ;;  %v103_v57 = vmul.f32 %v1344_v2, %v32_v44  ;;  %v104_v58 = vmul.f32 %v1344_v2, %v33_v45  ;;  %v41_v49 = vld [vmem:[%s1809_s0 + $0xd8] sm:$0xff] }
  0x1b   :  { %v1202_v39 = vpop.eup %1201  ;;  %998 = vst [vmem:[%s1812_s3] sm:$0xff] %v997_v30   ;;  %v1002_v41 = vpack.c.bf16 %v479_v31, %v478_v24  ;;  %v481_v42 = vmul.f32 %v417_v32, %v225_v54  ;;  %v419_v40 = vadd.f32 1.0, %v1200_v35  ;;  %v232_v0 = vmul.f32 0.5, %v1419_v59  ;;  %v38_v31 = vld [vmem:[%s1809_s0 + $0xc0] sm:$0xff]  ;;  %v39_v32 = vld [vmem:[%s1809_s0 + $0xc8] sm:$0xff] }
  0x1c   :  { %v1204_v46 = vpop.eup %1203  ;;  %v482_v47 = vmul.f32 %v418_v37, %v226_v61  ;;  %v420_v48 = vadd.f32 1.0, %v1202_v39  ;;  %v300_v7 = vmul.f32 0.70710677, %v1461_v53  ;;  %v301_v8 = vmul.f32 0.70710677, %v173_v56 }
  0x1d   :  { %1154 = vst [vmem:[%s1812_s3 + $0x8] sm:$0xff] %v1002_v41   ;;  %v1007_v50 = vpack.c.bf16 %v481_v42, %v480_v36  ;;  %v483_v51 = vmul.f32 %v419_v40, %v227_v1  ;;  %v421_v52 = vadd.f32 1.0, %v1204_v46  ;;  %v1206_v54 = vpop.eup %1205  ;;  %v175_v59 = vadd.f32 %v1351_v5, %v104_v58 }
  0x1e   :  { %v484_v55 = vmul.f32 %v420_v48, %v228_v3  ;;  %v1208_v60 = vpop.eup %1207  ;;  %v422_v63 = vadd.f32 1.0, %v1206_v54  ;;  %v233_v3 = vmul.f32 0.5, %v1426_v6  ;;  %1217 = verf.f32 %v300_v7  ;;  %v34_v6 = vld [vmem:[%s1809_s0 + $0xa0] sm:$0xff]  ;;  %v40_v48 = vld [vmem:[%s1809_s0 + $0xd0] sm:$0xff] }
  0x1f   :  { %1155 = vst [vmem:[%s1812_s3 + $0x10] sm:$0xff] %v1007_v50   ;;  %v1012_v61 = vpack.c.bf16 %v483_v51, %v482_v47  ;;  %v485_v62 = vmul.f32 %v421_v52, %v229_v13  ;;  %v1210_v1 = vpop.eup %1209  ;;  %v423_v4 = vadd.f32 1.0, %v1208_v60  ;;  %v174_v13 = vadd.f32 %v1351_v5, %v103_v57 }
  0x20   :  { %v1212_v9 = vpop.eup %1211  ;;  %v486_v11 = vmul.f32 %v422_v63, %v230_v26  ;;  %v424_v12 = vadd.f32 1.0, %v1210_v1  ;;  %v234_v19 = vmul.f32 0.5, %v1432_v18  ;;  %1219 = verf.f32 %v301_v8 }
  0x21   :  { %1156 = vst [vmem:[%s1812_s3 + $0x18] sm:$0xff] %v1012_v61   ;;  %v1017_v10 = vpack.c.bf16 %v485_v62, %v484_v55  ;;  %v487_v14 = vmul.f32 %v423_v4, %v231_v33  ;;  %v425_v15 = vadd.f32 1.0, %v1212_v9  ;;  %v302_v20 = vmul.f32 0.70710677, %v174_v13  ;;  %v1214_v24 = vpop.eup %1213  ;;  %v42_v4 = vld [vmem:[%s1809_s0 + $0xe0] sm:$0xff] }
  0x22   :  { %v488_v17 = vmul.f32 %v424_v12, %v232_v0  ;;  %v235_v27 = vmul.f32 0.5, %v1435_v22  ;;  %v303_v28 = vmul.f32 0.70710677, %v175_v59  ;;  %v426_v29 = vadd.f32 1.0, %v1214_v24  ;;  %v1216_v33 = vpop.eup %1215 }
  0x23   :  { %1157 = vst [vmem:[%s1812_s3 + $0x20] sm:$0xff] %v1017_v10   ;;  %v1022_v25 = vpack.c.bf16 %v487_v14, %v486_v11  ;;  %v489_v26 = vmul.f32 %v425_v15, %v233_v3  ;;  %1221 = verf.f32 %v302_v20  ;;  %v105_v18 = vmul.f32 %v1344_v2, %v34_v6 }
  0x24   :  { %v106_v30 = vmul.f32 %v1344_v2, %v35_v16  ;;  %1223 = verf.f32 %v303_v28  ;;  %v107_v34 = vmul.f32 %v1344_v2, %v36_v21  ;;  %v108_v35 = vmul.f32 %v1344_v2, %v37_v23  ;;  %v44_v16 = vld [vmem:[%s1809_s0 + $0xf0] sm:$0xff]  ;;  %v45_v23 = vld [vmem:[%s1809_s0 + $0xf8] sm:$0xff] }
  0x25   :  { %1158 = vst [vmem:[%s1812_s3 + $0x28] sm:$0xff] %v1022_v25   ;;  %v1027_v22 = vpack.c.bf16 %v489_v26, %v488_v17  ;;  %v427_v36 = vadd.f32 1.0, %v1216_v33  ;;  %v490_v37 = vmul.f32 %v426_v29, %v234_v19  ;;  %v176_v38 = vadd.f32 %v1351_v5, %v105_v18 }
  0x26   :  { %v177_v39 = vadd.f32 %v1351_v5, %v106_v30  ;;  %v178_v41 = vadd.f32 %v1351_v5, %v107_v34  ;;  %v179_v42 = vadd.f32 %v1351_v5, %v108_v35  ;;  %v109_v40 = vmul.f32 %v1344_v2, %v38_v31  ;;  %v46_v30 = vld [vmem:[%s1809_s0 + $0x100] sm:$0xff] }
  0x27   :  { %1159 = vst [vmem:[%s1812_s3 + $0x30] sm:$0xff] %v1027_v22   ;;  %v110_v43 = vmul.f32 %v1344_v2, %v39_v32  ;;  %v491_v44 = vmul.f32 %v427_v36, %v235_v27  ;;  %v236_v45 = vmul.f32 0.5, %v1461_v53  ;;  %v237_v46 = vmul.f32 0.5, %v173_v56 }
  0x28   :  { %v304_v47 = vmul.f32 0.70710677, %v176_v38  ;;  %v238_v50 = vmul.f32 0.5, %v174_v13  ;;  %v239_v51 = vmul.f32 0.5, %v175_v59  ;;  %v305_v52 = vmul.f32 0.70710677, %v177_v39  ;;  %v1218_v53 = vpop.eup %1217 }
  0x29   :  { %v306_v54 = vmul.f32 0.70710677, %v178_v41  ;;  %v1032_v55 = vpack.c.bf16 %v491_v44, %v490_v37  ;;  %v307_v57 = vmul.f32 0.70710677, %v179_v42  ;;  %v180_v58 = vadd.f32 %v1351_v5, %v109_v40  ;;  %v43_v13 = vld [vmem:[%s1809_s0 + $0xe8] sm:$0xff] }
  0x2a   :  { %1225 = verf.f32 %v304_v47  ;;  %v181_v56 = vadd.f32 %v1351_v5, %v110_v43  ;;  %v111_v60 = vmul.f32 %v1344_v2, %v40_v48  ;;  %v112_v61 = vmul.f32 %v1344_v2, %v41_v49  ;;  %v1220_v62 = vpop.eup %1219  ;;  %v47_v47 = vld [vmem:[%s1809_s0 + $0x108] sm:$0xff] }
  0x2b   :  { %1227 = verf.f32 %v305_v52  ;;  %1160 = vst [vmem:[%s1812_s3 + $0x38] sm:$0xff] %v1032_v55   ;;  %v428_v63 = vadd.f32 1.0, %v1218_v53  ;;  %v240_v0 = vmul.f32 0.5, %v176_v38  ;;  %v308_v1 = vmul.f32 0.70710677, %v180_v58 }
  0x2c   :  { %1229 = verf.f32 %v306_v54  ;;  %v429_v3 = vadd.f32 1.0, %v1220_v62  ;;  %v241_v7 = vmul.f32 0.5, %v177_v39  ;;  %v309_v8 = vmul.f32 0.70710677, %v181_v56  ;;  %v48_v62 = vld [vmem:[%s1809_s0 + $0x110] sm:$0xff] }
  0x2d   :  { %1231 = verf.f32 %v307_v57  ;;  %v1222_v9 = vpop.eup %1221  ;;  %v492_v10 = vmul.f32 %v428_v63, %v236_v45  ;;  %v182_v11 = vadd.f32 %v1351_v5, %v111_v60  ;;  %v183_v12 = vadd.f32 %v1351_v5, %v112_v61  ;;  %v49_v63 = vld [vmem:[%s1809_s0 + $0x118] sm:$0xff] }
  0x2e   :  { %1233 = verf.f32 %v308_v1  ;;  %v1224_v14 = vpop.eup %1223  ;;  %v493_v15 = vmul.f32 %v429_v3, %v237_v46  ;;  %v430_v59 = vadd.f32 1.0, %v1222_v9  ;;  %v113_v6 = vmul.f32 %v1344_v2, %v42_v4 }
  0x2f   :  { %1235 = verf.f32 %v309_v8  ;;  %v431_v17 = vadd.f32 1.0, %v1224_v14  ;;  %v242_v19 = vmul.f32 0.5, %v178_v41  ;;  %v243_v20 = vmul.f32 0.5, %v179_v42 }
  0x30   :  { %v310_v21 = vmul.f32 0.70710677, %v182_v11  ;;  %v1037_v24 = vpack.c.bf16 %v493_v15, %v492_v10  ;;  %v494_v25 = vmul.f32 %v430_v59, %v238_v50  ;;  %v311_v26 = vmul.f32 0.70710677, %v183_v12  ;;  %v50_v15 = vld [vmem:[%s1809_s0 + $0x120] sm:$0xff]  ;;  %v51_v59 = vld [vmem:[%s1809_s0 + $0x128] sm:$0xff] }
  0x31   :  { %v114_v27 = vmul.f32 %v1344_v2, %v43_v13  ;;  %v495_v28 = vmul.f32 %v431_v17, %v239_v51  ;;  %v184_v29 = vadd.f32 %v1351_v5, %v113_v6  ;;  %v115_v18 = vmul.f32 %v1344_v2, %v44_v16 }
  0x32   :  { %1237 = verf.f32 %v310_v21  ;;  %1161 = vst [vmem:[%s1812_s3 + $0x40] sm:$0xff] %v1037_v24   ;;  %v244_v31 = vmul.f32 0.5, %v180_v58  ;;  %v116_v33 = vmul.f32 %v1344_v2, %v45_v23  ;;  %v245_v35 = vmul.f32 0.5, %v181_v56 }
  0x33   :  { %1239 = verf.f32 %v311_v26  ;;  %v185_v32 = vadd.f32 %v1351_v5, %v114_v27  ;;  %v1042_v34 = vpack.c.bf16 %v495_v28, %v494_v25  ;;  %v312_v36 = vmul.f32 0.70710677, %v184_v29  ;;  %v52_v28 = vld [vmem:[%s1809_s0 + $0x130] sm:$0xff] }
  0x34   :  { %v1226_v22 = vpop.eup %1225  ;;  %v1557_v37 = vadd.f32 %v1351_v5, %v115_v18  ;;  %v187_v42 = vadd.f32 %v1351_v5, %v116_v33  ;;  %v117_v40 = vmul.f32 %v1344_v2, %v46_v30  ;;  %v246_v45 = vmul.f32 0.5, %v182_v11 }
  0x35   :  { %v1228_v38 = vpop.eup %1227  ;;  %v432_v39 = vadd.f32 1.0, %v1226_v22  ;;  %v313_v41 = vmul.f32 0.70710677, %v185_v32  ;;  %1162 = vst [vmem:[%s1812_s3 + $0x48] sm:$0xff] %v1042_v34   ;;  %1241 = verf.f32 %v312_v36  ;;  %v247_v51 = vmul.f32 0.5, %v183_v12 }
  0x36   :  { %v1230_v43 = vpop.eup %1229  ;;  %v433_v44 = vadd.f32 1.0, %v1228_v38  ;;  %v314_v46 = vmul.f32 0.70710677, %v1557_v37  ;;  %v315_v57 = vmul.f32 0.70710677, %v187_v42  ;;  %v118_v60 = vmul.f32 %v1344_v2, %v47_v47 }
  0x37   :  { %v1232_v48 = vpop.eup %1231  ;;  %v496_v49 = vmul.f32 %v432_v39, %v240_v0  ;;  %v434_v50 = vadd.f32 1.0, %v1230_v43  ;;  %1243 = verf.f32 %v313_v41  ;;  %v188_v61 = vadd.f32 %v1351_v5, %v117_v40  ;;  %v53_v40 = vld [vmem:[%s1809_s0 + $0x138] sm:$0xff] }
  0x38   :  { %v1234_v52 = vpop.eup %1233  ;;  %v497_v54 = vmul.f32 %v433_v44, %v241_v7  ;;  %v435_v55 = vadd.f32 1.0, %v1232_v48  ;;  %1245 = verf.f32 %v314_v46  ;;  %v248_v7 = vmul.f32 0.5, %v184_v29  ;;  %v55_v46 = vld [vmem:[%s1809_s0 + $0x148] sm:$0xff] }
  0x39   :  { %v1236_v58 = vpop.eup %1235  ;;  %v498_v53 = vmul.f32 %v434_v50, %v242_v19  ;;  %v436_v56 = vadd.f32 1.0, %v1234_v52  ;;  %1247 = verf.f32 %v315_v57  ;;  %v189_v8 = vadd.f32 %v1351_v5, %v118_v60  ;;  %v56_v60 = vld [vmem:[%s1809_s0 + $0x150] sm:$0xff] }
  0x3a   :  { %v1047_v0 = vpack.c.bf16 %v497_v54, %v496_v49  ;;  %v499_v1 = vmul.f32 %v435_v55, %v243_v20  ;;  %v437_v4 = vadd.f32 1.0, %v1236_v58  ;;  %v316_v9 = vmul.f32 0.70710677, %v188_v61 }
  0x3b   :  { %v500_v3 = vmul.f32 %v436_v56, %v244_v31  ;;  %v119_v13 = vmul.f32 %v1344_v2, %v48_v62  ;;  %v120_v14 = vmul.f32 %v1344_v2, %v49_v63  ;;  %v249_v17 = vmul.f32 0.5, %v185_v32 }
  0x3c   :  { %v1238_v10 = vpop.eup %1237  ;;  %1163 = vst [vmem:[%s1812_s3 + $0x50] sm:$0xff] %v1047_v0   ;;  %v1052_v11 = vpack.c.bf16 %v499_v1, %v498_v53  ;;  %v501_v12 = vmul.f32 %v437_v4, %v245_v35  ;;  %v317_v19 = vmul.f32 0.70710677, %v189_v8  ;;  %1249 = verf.f32 %v316_v9 }
  0x3d   :  { %v1240_v6 = vpop.eup %1239  ;;  %v438_v16 = vadd.f32 1.0, %v1238_v10  ;;  %v190_v23 = vadd.f32 %v1351_v5, %v119_v13  ;;  %v191_v24 = vadd.f32 %v1351_v5, %v120_v14  ;;  %v121_v26 = vmul.f32 %v1344_v2, %v50_v15  ;;  %v58_v14 = vld [vmem:[%s1809_s0 + $0x160] sm:$0xff] }
  0x3e   :  { %1164 = vst [vmem:[%s1812_s3 + $0x58] sm:$0xff] %v1052_v11   ;;  %v1057_v20 = vpack.c.bf16 %v501_v12, %v500_v3  ;;  %v439_v21 = vadd.f32 1.0, %v1240_v6  ;;  %1251 = verf.f32 %v317_v19  ;;  %v122_v27 = vmul.f32 %v1344_v2, %v51_v59  ;;  %v57_v12 = vld [vmem:[%s1809_s0 + $0x158] sm:$0xff] }
  0x3f   :  { %v502_v25 = vmul.f32 %v438_v16, %v246_v45  ;;  %v1242_v29 = vpop.eup %1241  ;;  %v250_v30 = vmul.f32 0.5, %v1557_v37  ;;  %v251_v31 = vmul.f32 0.5, %v187_v42  ;;  %v318_v32 = vmul.f32 0.70710677, %v190_v23  ;;  %v54_v45 = vld [vmem:[%s1809_s0 + $0x140] sm:$0xff]  ;;  %v59_v16 = vld [vmem:[%s1809_s0 + $0x168] sm:$0xff] }
  0x40   :  { %1165 = vst [vmem:[%s1812_s3 + $0x60] sm:$0xff] %v1057_v20   ;;  %v503_v18 = vmul.f32 %v439_v21, %v247_v51  ;;  %v440_v22 = vadd.f32 1.0, %v1242_v29  ;;  %v319_v34 = vmul.f32 0.70710677, %v191_v24  ;;  %v192_v35 = vadd.f32 %v1351_v5, %v121_v26 }
  0x41   :  { %v1244_v33 = vpop.eup %1243  ;;  %v193_v36 = vadd.f32 %v1351_v5, %v122_v27  ;;  %1253 = verf.f32 %v318_v32  ;;  %v123_v43 = vmul.f32 %v1344_v2, %v52_v28  ;;  %v252_v44 = vmul.f32 0.5, %v188_v61 }
  0x42   :  { %v1246_v38 = vpop.eup %1245  ;;  %v1062_v39 = vpack.c.bf16 %v503_v18, %v502_v25  ;;  %v441_v41 = vadd.f32 1.0, %v1244_v33  ;;  %v504_v37 = vmul.f32 %v440_v22, %v248_v7  ;;  %1255 = verf.f32 %v319_v34 }
  0x43   :  { %v442_v42 = vadd.f32 1.0, %v1246_v38  ;;  %v1248_v47 = vpop.eup %1247  ;;  %v253_v49 = vmul.f32 0.5, %v189_v8  ;;  %v320_v50 = vmul.f32 0.70710677, %v192_v35  ;;  %v321_v51 = vmul.f32 0.70710677, %v193_v36 }
  0x44   :  { %1166 = vst [vmem:[%s1812_s3 + $0x68] sm:$0xff] %v1062_v39   ;;  %v505_v48 = vmul.f32 %v441_v41, %v249_v17  ;;  %v443_v52 = vadd.f32 1.0, %v1248_v47  ;;  %v124_v55 = vmul.f32 %v1344_v2, %v53_v40  ;;  %v194_v57 = vadd.f32 %v1351_v5, %v123_v43  ;;  %v61_v43 = vld [vmem:[%s1809_s0 + $0x178] sm:$0xff]  ;;  %v62_v47 = vld [vmem:[%s1809_s0 + $0x180] sm:$0xff] }
  0x45   :  { %v506_v54 = vmul.f32 %v442_v42, %v250_v30  ;;  %1257 = verf.f32 %v320_v50  ;;  %v125_v53 = vmul.f32 %v1344_v2, %v54_v45  ;;  %v126_v56 = vmul.f32 %v1344_v2, %v55_v46  ;;  %v60_v30 = vld [vmem:[%s1809_s0 + $0x170] sm:$0xff] }
  0x46   :  { %v1067_v58 = vpack.c.bf16 %v505_v48, %v504_v37  ;;  %v1250_v61 = vpop.eup %1249  ;;  %v507_v62 = vmul.f32 %v443_v52, %v251_v31  ;;  %v254_v63 = vmul.f32 0.5, %v190_v23  ;;  %1259 = verf.f32 %v321_v51  ;;  %v63_v48 = vld [vmem:[%s1809_s0 + $0x188] sm:$0xff] }
  0x47   :  { %v195_v0 = vadd.f32 %v1351_v5, %v124_v55  ;;  %v444_v1 = vadd.f32 1.0, %v1250_v61  ;;  %v322_v4 = vmul.f32 0.70710677, %v194_v57  ;;  %v196_v3 = vadd.f32 %v1351_v5, %v125_v53  ;;  %v64_v61 = vld [vmem:[%s1809_s0 + $0x190] sm:$0xff] }
  0x48   :  { %1167 = vst [vmem:[%s1812_s3 + $0x70] sm:$0xff] %v1067_v58   ;;  %v197_v7 = vadd.f32 %v1351_v5, %v126_v56  ;;  %v1252_v8 = vpop.eup %1251  ;;  %v1072_v9 = vpack.c.bf16 %v507_v62, %v506_v54  ;;  %v255_v10 = vmul.f32 0.5, %v191_v24  ;;  %v127_v13 = vmul.f32 %v1344_v2, %v56_v60 }
  0x49   :  { %v323_v11 = vmul.f32 0.70710677, %v195_v0  ;;  %v445_v15 = vadd.f32 1.0, %v1252_v8  ;;  %v508_v59 = vmul.f32 %v444_v1, %v252_v44  ;;  %v256_v6 = vmul.f32 0.5, %v192_v35 }
  0x4a   :  { %1261 = verf.f32 %v322_v4  ;;  %1168 = vst [vmem:[%s1812_s3 + $0x78] sm:$0xff] %v1072_v9   ;;  %v257_v17 = vmul.f32 0.5, %v193_v36  ;;  %v324_v19 = vmul.f32 0.70710677, %v196_v3  ;;  %v325_v20 = vmul.f32 0.70710677, %v197_v7 }
  0x4b   :  { %1263 = verf.f32 %v323_v11  ;;  %v1254_v21 = vpop.eup %1253  ;;  %v509_v23 = vmul.f32 %v445_v15, %v253_v49  ;;  %v128_v24 = vmul.f32 %v1344_v2, %v57_v12  ;;  %v198_v25 = vadd.f32 %v1351_v5, %v127_v13 }
  0x4c   :  { %v129_v26 = vmul.f32 %v1344_v2, %v58_v14  ;;  %v1256_v27 = vpop.eup %1255  ;;  %v446_v28 = vadd.f32 1.0, %v1254_v21  ;;  %v258_v29 = vmul.f32 0.5, %v194_v57  ;;  %1265 = verf.f32 %v324_v19  ;;  %v66_v21 = vld [vmem:[%s1809_s0 + $0x1a0] sm:$0xff] }
  0x4d   :  { %v130_v18 = vmul.f32 %v1344_v2, %v59_v16  ;;  %v1077_v31 = vpack.c.bf16 %v509_v23, %v508_v59  ;;  %v447_v32 = vadd.f32 1.0, %v1256_v27  ;;  %1267 = verf.f32 %v325_v20  ;;  %v65_v16 = vld [vmem:[%s1809_s0 + $0x198] sm:$0xff]  ;;  %v67_v23 = vld [vmem:[%s1809_s0 + $0x1a8] sm:$0xff] }
  0x4e   :  { %v199_v33 = vadd.f32 %v1351_v5, %v128_v24  ;;  %v510_v22 = vmul.f32 %v446_v28, %v254_v63  ;;  %v259_v34 = vmul.f32 0.5, %v195_v0  ;;  %v326_v35 = vmul.f32 0.70710677, %v198_v25 }
  0x4f   :  { %v200_v36 = vadd.f32 %v1351_v5, %v129_v26  ;;  %v1258_v38 = vpop.eup %1257  ;;  %1169 = vst [vmem:[%s1812_s3 + $0x80] sm:$0xff] %v1077_v31   ;;  %v511_v39 = vmul.f32 %v447_v32, %v255_v10  ;;  %v201_v40 = vadd.f32 %v1351_v5, %v130_v18  ;;  %v131_v37 = vmul.f32 %v1344_v2, %v60_v30 }
  0x50   :  { %v327_v41 = vmul.f32 0.70710677, %v199_v33  ;;  %v1260_v42 = vpop.eup %1259  ;;  %v448_v44 = vadd.f32 1.0, %v1258_v38  ;;  %v260_v45 = vmul.f32 0.5, %v196_v3  ;;  %1269 = verf.f32 %v326_v35 }
  0x51   :  { %v328_v46 = vmul.f32 0.70710677, %v200_v36  ;;  %v1082_v49 = vpack.c.bf16 %v511_v39, %v510_v22  ;;  %v449_v50 = vadd.f32 1.0, %v1260_v42  ;;  %v261_v51 = vmul.f32 0.5, %v197_v7 }
  0x52   :  { %1271 = verf.f32 %v327_v41  ;;  %v512_v52 = vmul.f32 %v448_v44, %v256_v6  ;;  %v329_v54 = vmul.f32 0.70710677, %v201_v40  ;;  %v132_v55 = vmul.f32 %v1344_v2, %v61_v43 }
  0x53   :  { %1273 = verf.f32 %v328_v46  ;;  %1170 = vst [vmem:[%s1812_s3 + $0x88] sm:$0xff] %v1082_v49   ;;  %v513_v58 = vmul.f32 %v449_v50, %v257_v17  ;;  %v202_v53 = vadd.f32 %v1351_v5, %v131_v37  ;;  %v133_v56 = vmul.f32 %v1344_v2, %v62_v47  ;;  %v69_v49 = vld [vmem:[%s1809_s0 + $0x1b8] sm:$0xff] }
  0x54   :  { %v1262_v57 = vpop.eup %1261  ;;  %v134_v60 = vmul.f32 %v1344_v2, %v63_v48  ;;  %v262_v0 = vmul.f32 0.5, %v198_v25  ;;  %1275 = verf.f32 %v329_v54  ;;  %v203_v1 = vadd.f32 %v1351_v5, %v132_v55  ;;  %v68_v48 = vld [vmem:[%s1809_s0 + $0x1b0] sm:$0xff]  ;;  %v70_v54 = vld [vmem:[%s1809_s0 + $0x1c0] sm:$0xff] }
  0x55   :  { %v1264_v62 = vpop.eup %1263  ;;  %v450_v63 = vadd.f32 1.0, %v1262_v57  ;;  %v1087_v4 = vpack.c.bf16 %v513_v58, %v512_v52  ;;  %v263_v7 = vmul.f32 0.5, %v199_v33  ;;  %v330_v8 = vmul.f32 0.70710677, %v202_v53 }
  0x56   :  { %v451_v3 = vadd.f32 1.0, %v1264_v62  ;;  %v1266_v9 = vpop.eup %1265  ;;  %v331_v11 = vmul.f32 0.70710677, %v203_v1  ;;  %v204_v12 = vadd.f32 %v1351_v5, %v133_v56  ;;  %v135_v13 = vmul.f32 %v1344_v2, %v64_v61 }
  0x57   :  { %v514_v10 = vmul.f32 %v450_v63, %v258_v29  ;;  %v1268_v14 = vpop.eup %1267  ;;  %1171 = vst [vmem:[%s1812_s3 + $0x90] sm:$0xff] %v1087_v4   ;;  %v452_v59 = vadd.f32 1.0, %v1266_v9  ;;  %1277 = verf.f32 %v330_v8  ;;  %v205_v6 = vadd.f32 %v1351_v5, %v134_v60  ;;  %v1313_v4 = vld [vmem:[%s1810_s1] ss:$0 sm:$0xff] }
  0x58   :  { %v515_v15 = vmul.f32 %v451_v3, %v259_v34  ;;  %v453_v17 = vadd.f32 1.0, %v1268_v14  ;;  %v264_v19 = vmul.f32 0.5, %v200_v36  ;;  %1279 = verf.f32 %v331_v11  ;;  %v1735_v9 = vld [vmem:[%s1811_s2] ss:$0 sm:$0xff] }
  0x59   :  { %v332_v20 = vmul.f32 0.70710677, %v204_v12  ;;  %v516_v25 = vmul.f32 %v452_v59, %v260_v45  ;;  %v265_v26 = vmul.f32 0.5, %v201_v40  ;;  %v333_v27 = vmul.f32 0.70710677, %v205_v6 }
  0x5a   :  { %v1092_v24 = vpack.c.bf16 %v515_v15, %v514_v10  ;;  %v1270_v28 = vpop.eup %1269  ;;  %v517_v29 = vmul.f32 %v453_v17, %v261_v51  ;;  %v136_v18 = vmul.f32 %v1344_v2, %v65_v16  ;;  %v1694_v30 = vadd.f32 %v1351_v5, %v135_v13  ;;  %v72_v17 = vld [vmem:[%s1809_s0 + $0x1d0] sm:$0xff] }
  0x5b   :  { %1281 = verf.f32 %v332_v20  ;;  %v454_v32 = vadd.f32 1.0, %v1270_v28  ;;  %v137_v33 = vmul.f32 %v1344_v2, %v66_v21  ;;  %v138_v22 = vmul.f32 %v1344_v2, %v67_v23  ;;  %v74_v20 = vld [vmem:[%s1809_s0 + $0x1e0] sm:$0xff] }
  0x5c   :  { %v1272_v31 = vpop.eup %1271  ;;  %1172 = vst [vmem:[%s1812_s3 + $0x98] sm:$0xff] %v1092_v24   ;;  %1283 = verf.f32 %v333_v27  ;;  %v1097_v35 = vpack.c.bf16 %v517_v29, %v516_v25  ;;  %v266_v38 = vmul.f32 0.5, %v202_v53  ;;  %v207_v39 = vadd.f32 %v1351_v5, %v136_v18 }
  0x5d   :  { %v1274_v34 = vpop.eup %1273  ;;  %v455_v36 = vadd.f32 1.0, %v1272_v31  ;;  %v518_v41 = vmul.f32 %v454_v32, %v262_v0  ;;  %v334_v43 = vmul.f32 0.70710677, %v1694_v30  ;;  %v208_v37 = vadd.f32 %v1351_v5, %v137_v33 }
  0x5e   :  { %v456_v40 = vadd.f32 1.0, %v1274_v34  ;;  %v1276_v42 = vpop.eup %1275  ;;  %1173 = vst [vmem:[%s1812_s3 + $0xa0] sm:$0xff] %v1097_v35   ;;  %v267_v45 = vmul.f32 0.5, %v203_v1  ;;  %v335_v46 = vmul.f32 0.70710677, %v207_v39  ;;  %v1708_v47 = vadd.f32 %v1351_v5, %v138_v22  ;;  %v71_v5 = vld [vmem:[%s1809_s0 + $0x1c8] sm:$0xff] }
  0x5f   :  { %v519_v44 = vmul.f32 %v455_v36, %v263_v7  ;;  %v457_v50 = vadd.f32 1.0, %v1276_v42  ;;  %v268_v52 = vmul.f32 0.5, %v204_v12  ;;  %1285 = verf.f32 %v334_v43  ;;  %v76_v36 = vld [vmem:[%s1809_s0 + $0x1f0] sm:$0xff]  ;;  %v77_v43 = vld [vmem:[%s1809_s0 + $0x1f8] sm:$0xff] }
  0x60   :  { %v520_v51 = vmul.f32 %v456_v40, %v264_v19  ;;  %v269_v57 = vmul.f32 0.5, %v205_v6  ;;  %1287 = verf.f32 %v335_v46  ;;  %v336_v58 = vmul.f32 0.70710677, %v208_v37  ;;  %v73_v19 = vld [vmem:[%s1809_s0 + $0x1d8] sm:$0xff] }
  0x61   :  { %v1102_v55 = vpack.c.bf16 %v519_v44, %v518_v41  ;;  %v1278_v53 = vpop.eup %1277  ;;  %v521_v56 = vmul.f32 %v457_v50, %v265_v26  ;;  %v337_v60 = vmul.f32 0.70710677, %v1708_v47  ;;  %v139_v61 = vmul.f32 %v1344_v2, %v68_v48  ;;  %v75_v26 = vld [vmem:[%s1809_s0 + $0x1e8] sm:$0xff] }
  0x62   :  { %v140_v62 = vmul.f32 %v1344_v2, %v69_v49  ;;  %v1280_v63 = vpop.eup %1279  ;;  %v458_v0 = vadd.f32 1.0, %v1278_v53  ;;  %1289 = verf.f32 %v336_v58  ;;  %v141_v1 = vmul.f32 %v1344_v2, %v70_v54 }
  0x63   :  { %1174 = vst [vmem:[%s1812_s3 + $0xa8] sm:$0xff] %v1102_v55   ;;  %v142_v3 = vmul.f32 %v1313_v4, %v71_v5  ;;  %v1107_v7 = vpack.c.bf16 %v521_v56, %v520_v51  ;;  %v459_v8 = vadd.f32 1.0, %v1280_v63  ;;  %1291 = verf.f32 %v337_v60 }
  0x64   :  { %v210_v10 = vadd.f32 %v1735_v9, %v139_v61  ;;  %v522_v12 = vmul.f32 %v458_v0, %v266_v38  ;;  %v1739_v13 = vadd.f32 %v1735_v9, %v140_v62  ;;  %v1742_v2 = vadd.f32 %v1735_v9, %v141_v1 }
  0x65   :  { %v1282_v11 = vpop.eup %1281  ;;  %v1745_v14 = vadd.f32 %v1735_v9, %v142_v3  ;;  %1175 = vst [vmem:[%s1812_s3 + $0xb0] sm:$0xff] %v1107_v7   ;;  %v523_v59 = vmul.f32 %v459_v8, %v267_v45  ;;  %v270_v23 = vmul.f32 0.5, %v1694_v30  ;;  %v271_v24 = vmul.f32 0.5, %v207_v39 }
  0x66   :  { %v1284_v15 = vpop.eup %1283  ;;  %v460_v6 = vadd.f32 1.0, %v1282_v11  ;;  %v338_v16 = vmul.f32 0.70710677, %v210_v10  ;;  %v339_v25 = vmul.f32 0.70710677, %v1739_v13  ;;  %v272_v29 = vmul.f32 0.5, %v208_v37 }
  0x67   :  { %v461_v21 = vadd.f32 1.0, %v1284_v15  ;;  %v1112_v27 = vpack.c.bf16 %v523_v59, %v522_v12  ;;  %v340_v31 = vmul.f32 0.70710677, %v1742_v2  ;;  %v341_v32 = vmul.f32 0.70710677, %v1745_v14 }
  0x68   :  { %v524_v28 = vmul.f32 %v460_v6, %v268_v52  ;;  %1293 = verf.f32 %v338_v16  ;;  %v143_v30 = vmul.f32 %v1313_v4, %v72_v17  ;;  %v144_v22 = vmul.f32 %v1313_v4, %v73_v19 }
  0x69   :  { %v525_v18 = vmul.f32 %v461_v21, %v269_v57  ;;  %1295 = verf.f32 %v339_v25  ;;  %v1286_v33 = vpop.eup %1285  ;;  %1176 = vst [vmem:[%s1812_s3 + $0xb8] sm:$0xff] %v1112_v27   ;;  %v145_v34 = vmul.f32 %v1313_v4, %v74_v20  ;;  %v146_v35 = vmul.f32 %v1313_v4, %v75_v26 }
  0x6a   :  { %v1288_v38 = vpop.eup %1287  ;;  %v462_v41 = vadd.f32 1.0, %v1286_v33  ;;  %v273_v40 = vmul.f32 0.5, %v1708_v47  ;;  %1297 = verf.f32 %v340_v31  ;;  %v214_v42 = vadd.f32 %v1735_v9, %v143_v30 }
  0x6b   :  { %v1117_v39 = vpack.c.bf16 %v525_v18, %v524_v28  ;;  %v463_v37 = vadd.f32 1.0, %v1288_v38  ;;  %1299 = verf.f32 %v341_v32  ;;  %v215_v44 = vadd.f32 %v1735_v9, %v144_v22 }
  0x6c   :  { %v1290_v45 = vpop.eup %1289  ;;  %v526_v46 = vmul.f32 %v462_v41, %v270_v23  ;;  %v216_v48 = vadd.f32 %v1735_v9, %v145_v34  ;;  %v217_v47 = vadd.f32 %v1735_v9, %v146_v35  ;;  %v147_v49 = vmul.f32 %v1313_v4, %v76_v36 }
  0x6d   :  { %1177 = vst [vmem:[%s1812_s3 + $0xc0] sm:$0xff] %v1117_v39   ;;  %v1292_v50 = vpop.eup %1291  ;;  %v527_v51 = vmul.f32 %v463_v37, %v271_v24  ;;  %v464_v52 = vadd.f32 1.0, %v1290_v45  ;;  %v148_v54 = vmul.f32 %v1313_v4, %v77_v43  ;;  %v342_v55 = vmul.f32 0.70710677, %v214_v42 }
  0x6e   :  { %v465_v5 = vadd.f32 1.0, %v1292_v50  ;;  %v343_v57 = vmul.f32 0.70710677, %v215_v44  ;;  %v274_v56 = vmul.f32 0.5, %v210_v10  ;;  %v344_v60 = vmul.f32 0.70710677, %v216_v48 }
  0x6f   :  { %v1122_v58 = vpack.c.bf16 %v527_v51, %v526_v46  ;;  %v528_v53 = vmul.f32 %v464_v52, %v272_v29  ;;  %1301 = verf.f32 %v342_v55  ;;  %v345_v62 = vmul.f32 0.70710677, %v217_v47 }
  0x70   :  { %v529_v61 = vmul.f32 %v465_v5, %v273_v40  ;;  %v218_v63 = vadd.f32 %v1735_v9, %v147_v49  ;;  %v275_v1 = vmul.f32 0.5, %v1739_v13  ;;  %1303 = verf.f32 %v343_v57 }
  0x71   :  { %1178 = vst [vmem:[%s1812_s3 + $0xc8] sm:$0xff] %v1122_v58   ;;  %v219_v4 = vadd.f32 %v1735_v9, %v148_v54  ;;  %1305 = verf.f32 %v344_v60  ;;  %v276_v11 = vmul.f32 0.5, %v1742_v2  ;;  %v277_v13 = vmul.f32 0.5, %v1745_v14 }
  0x72   :  { %v1294_v0 = vpop.eup %1293  ;;  %v1127_v7 = vpack.c.bf16 %v529_v61, %v528_v53  ;;  %1307 = verf.f32 %v345_v62  ;;  %v346_v12 = vmul.f32 0.70710677, %v218_v63  ;;  %v278_v23 = vmul.f32 0.5, %v214_v42 }
  0x73   :  { %v1296_v3 = vpop.eup %1295  ;;  %v466_v8 = vadd.f32 1.0, %v1294_v0  ;;  %v347_v6 = vmul.f32 0.70710677, %v219_v4  ;;  %v279_v26 = vmul.f32 0.5, %v215_v44  ;;  %v280_v28 = vmul.f32 0.5, %v216_v48 }
  0x74   :  { %v467_v10 = vadd.f32 1.0, %v1296_v3  ;;  %v1298_v15 = vpop.eup %1297  ;;  %1179 = vst [vmem:[%s1812_s3 + $0xd0] sm:$0xff] %v1127_v7   ;;  %1309 = verf.f32 %v346_v12  ;;  %v281_v31 = vmul.f32 0.5, %v217_v47  ;;  %v282_v35 = vmul.f32 0.5, %v218_v63 }
  0x75   :  { %v530_v59 = vmul.f32 %v466_v8, %v274_v56  ;;  %v1300_v16 = vpop.eup %1299  ;;  %v468_v17 = vadd.f32 1.0, %v1298_v15  ;;  %1311 = verf.f32 %v347_v6  ;;  %v283_v39 = vmul.f32 0.5, %v219_v4 }
  0x76   :  { %v531_v9 = vmul.f32 %v467_v10, %v275_v1  ;;  %v469_v19 = vadd.f32 1.0, %v1300_v16 }
  0x77   :  { %v532_v21 = vmul.f32 %v468_v17, %v276_v11 }
  0x78   :  { %v1132_v20 = vpack.c.bf16 %v531_v9, %v530_v59  ;;  %v533_v2 = vmul.f32 %v469_v19, %v277_v13 }
  0x79   :  { %v1302_v24 = vpop.eup %1301 }
  0x7a   :  { %1180 = vst [vmem:[%s1812_s3 + $0xd8] sm:$0xff] %v1132_v20   ;;  %v1137_v25 = vpack.c.bf16 %v533_v2, %v532_v21  ;;  %v1304_v27 = vpop.eup %1303  ;;  %v470_v14 = vadd.f32 1.0, %v1302_v24 }
  0x7b   :  { %v1306_v29 = vpop.eup %1305  ;;  %v471_v18 = vadd.f32 1.0, %v1304_v27 }
  0x7c   :  { %1181 = vst [vmem:[%s1812_s3 + $0xe0] sm:$0xff] %v1137_v25   ;;  %v1308_v32 = vpop.eup %1307  ;;  %v534_v33 = vmul.f32 %v470_v14, %v278_v23  ;;  %v472_v30 = vadd.f32 1.0, %v1306_v29 }
  0x7d   :  { %v535_v22 = vmul.f32 %v471_v18, %v279_v26  ;;  %v473_v34 = vadd.f32 1.0, %v1308_v32 }
  0x7e   :  { %v1310_v36 = vpop.eup %1309  ;;  %v536_v38 = vmul.f32 %v472_v30, %v280_v28 }
  0x7f   :  { %v1312_v41 = vpop.eup %1311  ;;  %v1142_v40 = vpack.c.bf16 %v535_v22, %v534_v33  ;;  %v537_v43 = vmul.f32 %v473_v34, %v281_v31  ;;  %v474_v37 = vadd.f32 1.0, %v1310_v36 }
  0x80   :  { %v475_v42 = vadd.f32 1.0, %v1312_v41 }
  0x81   :  { %1182 = vst [vmem:[%s1812_s3 + $0xe8] sm:$0xff] %v1142_v40   ;;  %v1147_v44 = vpack.c.bf16 %v537_v43, %v536_v38  ;;  %v538_v45 = vmul.f32 %v474_v37, %v282_v35 }
  0x82   :  { %v539_v46 = vmul.f32 %v475_v42, %v283_v39 }
  0x83   :  { %1183 = vst [vmem:[%s1812_s3 + $0xf0] sm:$0xff] %v1147_v44  }
  0x84   :  { %v1152_v48 = vpack.c.bf16 %v539_v46, %v538_v45 }
  0x86   :  { %1184 = vst [vmem:[%s1812_s3 + $0xf8] sm:$0xff] %v1152_v48  }

// kernel: mymodel_forward.9
= control target key start
LH: loop header
LB: loop body
LE: loop exit
PB: predicated region body
PF: predicated region fallthrough
CT: control target
= control target key end

     0   :  { %s1259_s15 = smov 0   ;;  %s1261_s16 = smov 0   ;;  %s1465_s0 = inlined_call_operand.vmem [shape: bf16[512,56], index: 0, kind: input, shape index: {}]   ;;  %s1466_s1 = inlined_call_operand.vmem [shape: bf16[56,128], index: 1, kind: input, shape index: {}]   ;;  %s1467_s2 = inlined_call_operand.vmem [shape: f32[512,128], index: 2, kind: output, shape index: {0}]   ;;  %s1468_s3 = inlined_call_operand.vmem [shape: f32[16,128], index: 3, kind: output, shape index: {1}]   ;;  %s1469_s4 = inlined_call_operand.vmem [shape: f32[16,128], index: 4, kind: output, shape index: {2}]  }
   0x1   :  { %s1263_s17 = smov 0  }
   0x2 LB: > { %s27_s18 = sadd.s32 1, %s1228_s16  ;;  %p1051_p0 = scmp.ge.s32.totalorder %s1232_s17, 1  ;;  %s1232_s17 = sphi %s1263_s17, %s15_s17   ;;  %s1228_s16 = sphi %s1261_s16, %s1471_s16   ;;  %s1224_s15 = sphi %s1259_s15, %s1470_s15  }
   0x3   : > { %p29_p1 = scmp.ge.s32.totalorder %s27_s18, 2  ;;  %p196_p2 = scmp.lt.s32.totalorder %s1232_s17, 3 }
   0x5   : > { %s1473_s18 = smov (%p29_p1, %s27_s18), 0  ;;  %p197_p3 = pnand %p1051_p0, %p196_p2 }
   0x6   : > { %v1190_v0 = vld [vmem:[%s1466_s1] sm:$0xff] (!%p197_p3)   ;;  %v1191_v1 = vld [vmem:[%s1466_s1 + $0x8] sm:$0xff] (!%p197_p3)   ;;  %s1052_s23 = sshll.u32 (!%p197_p3), %s1224_s15, 5  ;;  %v1192_v2 = vld [vmem:[%s1466_s1 + $0x10] sm:$0xff] (!%p197_p3)   ;;  %vm408_vm0 = vcmask (!%p197_p3), 457728   ;;  %vm457_vm1 = vcmask (!%p197_p3), 1043456  }
   0x7   : > { %200 = sbr.rel (%p197_p3) target bundleno = 315 (0x13b), region = 28  ;;  %1116 = vmatprep.subr.bf16.mxu0 (!%p197_p3), %v1190_v0  ;;  %p239_p4 = scmp.lt.s32.totalorder (!%p197_p3), %s1052_s23, 63  ;;  %1156 = vmatprep.subr.bf16.mxu1 (!%p197_p3), %v1190_v0  ;;  %v1193_v3 = vld [vmem:[%s1466_s1 + $0x18] ss:$0 sps:$4 sm:$0xff] (!%p197_p3)  }
   0x8   : > { %1117 = vmatpush3.bf16.msra.mxu0 (!%p197_p3), %v1190_v0  ;;  %1160 = vmatpush3.bf16.msra.mxu1 (!%p197_p3), %v1190_v0  ;;  %v459_v5 = vsel (!%p197_p3), %vm457_vm1, %v1193_v3, 0  ;;  %p259_p5 = scmp.lt.s32.totalorder (!%p197_p3), %s1224_s15, 1 }
   0x9   : > { %1118 = vmatprep.subr.bf16.mxu0 (!%p197_p3), %v1191_v1  ;;  %1157 = vmatprep.subr.bf16.mxu1 (!%p197_p3), %v1191_v1 }
   0xc   : > { %1119 = vmatpush3.bf16.msra.mxu0 (!%p197_p3), %v1191_v1  ;;  %1161 = vmatpush3.bf16.msra.mxu1 (!%p197_p3), %v1191_v1 }
   0xd   : > { %1120 = vmatprep.subr.bf16.mxu0 (!%p197_p3), %v1192_v2  ;;  %1158 = vmatprep.subr.bf16.mxu1 (!%p197_p3), %v1192_v2 }
   0xe   : > { %s1475_s23 = smov (!%p239_p4, %s1052_s23), 63  ;;  %s1477_s15 = smov (!%p259_p5, %s1224_s15), 1 }
   0xf   : > { %s1053_s26 = sshll.u32 %s1475_s23, 2  ;;  %s1055_s6 = sshll.u32 %s1475_s23, 3 }
  0x10   : > { %s1298_s5 = scalar_lea.vmem %s1465_s0, %s1053_s26  ;;  %1121 = vmatpush3.bf16.msra.mxu0 %v1192_v2  ;;  %1162 = vmatpush3.bf16.msra.mxu1 %v1192_v2  ;;  %s1336_s9 = scalar_lea.vmem %s1467_s2, %s1055_s6 }
  0x11   : > { %v1194_v4 = vld [vmem:[%s1298_s5] sm:$0xff]   ;;  %1164 = vmatprep.subr.msk.bf16.mxu0 %vm457_vm1, %v1193_v3  ;;  %1165 = vmatprep.subr.msk.bf16.mxu1 %vm457_vm1, %v1193_v3  ;;  %v1195_v6 = vld [vmem:[%s1298_s5 + $0x8] sm:$0xff]   ;;  %v1196_v7 = vld [vmem:[%s1298_s5 + $0x10] sm:$0xff]   ;;  %s1056_s10 = sshll.u32 %s1477_s15, 3 }
  0x12   : > { %1124 = vmatprep.mubr.msk.bf16.mxu0 %vm408_vm0, %v1194_v4  ;;  %v1202_v8 = vld [vmem:[%s1298_s5 + $0x40] sm:$0xff]   ;;  %v1203_v9 = vld [vmem:[%s1298_s5 + $0x48] sm:$0xff]   ;;  %v1204_v10 = vld [vmem:[%s1298_s5 + $0x50] sm:$0xff]   ;;  %s262_s13 = scalar_lea.vmem %s1468_s3, %s1056_s10  ;;  %s266_s20 = scalar_lea.vmem %s1469_s4, %s1056_s10 }
  0x13   : > { %1140 = vmatprep.mubr.msk.bf16.mxu1 %vm408_vm0, %v1202_v8  ;;  %v1197_v11 = vld [vmem:[%s1298_s5 + $0x18] sm:$0xff]   ;;  %v1198_v12 = vld [vmem:[%s1298_s5 + $0x20] sm:$0xff]   ;;  %v1199_v15 = vld [vmem:[%s1298_s5 + $0x28] sm:$0xff]  }
  0x14   : > { %1123 = vmatpush3.bf16.msra.mxu0 %v459_v5  ;;  %1163 = vmatpush3.bf16.msra.mxu1 %v459_v5  ;;  %v1205_v13 = vld [vmem:[%s1298_s5 + $0x58] sm:$0xff]   ;;  %v1206_v14 = vld [vmem:[%s1298_s5 + $0x60] sm:$0xff]   ;;  %v1200_v16 = vld [vmem:[%s1298_s5 + $0x30] sm:$0xff]  }
  0x15   : > { %v1207_v17 = vld [vmem:[%s1298_s5 + $0x68] sm:$0xff]   ;;  %v1208_v18 = vld [vmem:[%s1298_s5 + $0x70] sm:$0xff]   ;;  %v1201_v19 = vld [vmem:[%s1298_s5 + $0x38] sm:$0xff]  }
  0x16   : > { %v1209_v20 = vld [vmem:[%s1298_s5 + $0x78] sm:$0xff]  }
  0x17   : > { %1125 = vmatmul.mubr.msk.bf16.vlgmr.msra.gmra.mrb[0].mxu0 %vm408_vm0, %v1195_v6  ;;  %1141 = vmatmul.mubr.msk.bf16.vlgmr.msra.gmra.mrb[0].mxu1 %vm408_vm0, %v1203_v9 }
  0x18   : > { %1128 = vmatprep.mubr.msk.bf16.mxu0 %vm408_vm0, %v1196_v7  ;;  %1144 = vmatprep.mubr.msk.bf16.mxu1 %vm408_vm0, %v1204_v10 }
  0x1f   : > { %1129 = vmatmul.mubr.msk.bf16.gmra.mrb[4].mxu0 %vm408_vm0, %v1197_v11  ;;  %1145 = vmatmul.mubr.msk.bf16.gmra.mrb[4].mxu1 %vm408_vm0, %v1205_v13 }
  0x20   : > { %1132 = vmatprep.mubr.msk.bf16.mxu0 %vm408_vm0, %v1198_v12  ;;  %1148 = vmatprep.mubr.msk.bf16.mxu1 %vm408_vm0, %v1206_v14 }
  0x27   : > { %1133 = vmatmul.mubr.msk.bf16.gmra.mrb[8].mxu0 %vm408_vm0, %v1199_v15  ;;  %1149 = vmatmul.mubr.msk.bf16.gmra.mrb[8].mxu1 %vm408_vm0, %v1207_v17 }
  0x28   : > { %1136 = vmatprep.mubr.msk.bf16.mxu0 %vm408_vm0, %v1200_v16  ;;  %1152 = vmatprep.mubr.msk.bf16.mxu1 %vm408_vm0, %v1208_v18 }
  0x2f   : > { %1137 = vmatmul.mubr.msk.bf16.gmra.mrb[12].mxu0 %vm408_vm0, %v1201_v19  ;;  %1153 = vmatmul.mubr.msk.bf16.gmra.mrb[12].mxu1 %vm408_vm0, %v1209_v20 }
  0xea   : > { %v1126_v21 = vpop.f32.mrb[0].mxu0  ;;  %v1339_v23 = vpop.f32.mrb[0].mxu1 }
  0xeb   : > { %628 = vst [vmem:[%s1336_s9 + $0x10] sm:$0xff] %v1126_v21  ;;  %v495_v22 = vpop.f32.mrb[1].mxu0  ;;  %644 = vst [vmem:[%s1336_s9 + $0x90] sm:$0xff] %v1339_v23  ;;  %v1344_v25 = vpop.f32.mrb[1].mxu1  ;;  %v833_v32 = vmul.f32 %v1126_v21, %v1126_v21 }
  0xec   : > { %626 = vst [vmem:[%s1336_s9] sm:$0xff] %v495_v22  ;;  %v1127_v24 = vpop.f32.mrb[2].mxu0  ;;  %642 = vst [vmem:[%s1336_s9 + $0x80] sm:$0xff] %v1344_v25  ;;  %v1349_v27 = vpop.f32.mrb[2].mxu1  ;;  %v831_v28 = vmul.f32 %v495_v22, %v495_v22 }
  0xed   : > { %629 = vst [vmem:[%s1336_s9 + $0x18] sm:$0xff] %v1127_v24  ;;  %v498_v26 = vpop.f32.mrb[3].mxu0  ;;  %645 = vst [vmem:[%s1336_s9 + $0x98] sm:$0xff] %v1349_v27  ;;  %v1354_v31 = vpop.f32.mrb[3].mxu1  ;;  %v834_v35 = vmul.f32 %v1127_v24, %v1127_v24 }
  0xee   : > { %627 = vst [vmem:[%s1336_s9 + $0x8] sm:$0xff] %v498_v26  ;;  %v793_v29 = vadd.f32 %v498_v26, %v495_v22  ;;  %v832_v30 = vmul.f32 %v498_v26, %v498_v26  ;;  %643 = vst [vmem:[%s1336_s9 + $0x88] sm:$0xff] %v1354_v31 }
  0xf0   : > { %v794_v33 = vadd.f32 %v1126_v21, %v793_v29  ;;  %v863_v34 = vadd.f32 %v832_v30, %v831_v28 }
  0xf2   : > { %v864_v36 = vadd.f32 %v863_v34, %v833_v32  ;;  %v1130_v37 = vpop.f32.mrb[4].mxu0  ;;  %v795_v38 = vadd.f32 %v1127_v24, %v794_v33  ;;  %v1359_v40 = vpop.f32.mrb[4].mxu1 }
  0xf3   : > { %632 = vst [vmem:[%s1336_s9 + $0x30] sm:$0xff] %v1130_v37  ;;  %v511_v39 = vpop.f32.mrb[5].mxu0  ;;  %648 = vst [vmem:[%s1336_s9 + $0xb0] sm:$0xff] %v1359_v40  ;;  %v1364_v45 = vpop.f32.mrb[5].mxu1  ;;  %v837_v52 = vmul.f32 %v1130_v37, %v1130_v37 }
  0xf4   : > { %630 = vst [vmem:[%s1336_s9 + $0x20] sm:$0xff] %v511_v39  ;;  %v796_v41 = vadd.f32 %v795_v38, %v511_v39  ;;  %v835_v42 = vmul.f32 %v511_v39, %v511_v39  ;;  %v865_v43 = vadd.f32 %v864_v36, %v834_v35  ;;  %v1131_v44 = vpop.f32.mrb[6].mxu0  ;;  %646 = vst [vmem:[%s1336_s9 + $0xa0] sm:$0xff] %v1364_v45  ;;  %v1369_v47 = vpop.f32.mrb[6].mxu1 }
  0xf5   : > { %633 = vst [vmem:[%s1336_s9 + $0x38] sm:$0xff] %v1131_v44  ;;  %v514_v46 = vpop.f32.mrb[7].mxu0  ;;  %649 = vst [vmem:[%s1336_s9 + $0xb8] sm:$0xff] %v1369_v47  ;;  %v1374_v51 = vpop.f32.mrb[7].mxu1  ;;  %v838_v55 = vmul.f32 %v1131_v44, %v1131_v44  ;;  %v847_v38 = vmul.f32 %v1344_v25, %v1344_v25 }
  0xf6   : > { %v866_v48 = vadd.f32 %v865_v43, %v835_v42  ;;  %631 = vst [vmem:[%s1336_s9 + $0x28] sm:$0xff] %v514_v46  ;;  %v797_v49 = vadd.f32 %v796_v41, %v514_v46  ;;  %v836_v50 = vmul.f32 %v514_v46, %v514_v46  ;;  %647 = vst [vmem:[%s1336_s9 + $0xa8] sm:$0xff] %v1374_v51 }
  0xf7   : > { %v849_v46 = vmul.f32 %v1339_v23, %v1339_v23 }
  0xf8   : > { %v798_v53 = vadd.f32 %v1130_v37, %v797_v49  ;;  %v867_v54 = vadd.f32 %v866_v48, %v836_v50  ;;  %v850_v50 = vmul.f32 %v1349_v27, %v1349_v27 }
  0xfa   : > { %v868_v56 = vadd.f32 %v867_v54, %v837_v52  ;;  %v1134_v57 = vpop.f32.mrb[8].mxu0  ;;  %v799_v58 = vadd.f32 %v1131_v44, %v798_v53  ;;  %v1379_v60 = vpop.f32.mrb[8].mxu1  ;;  %v848_v44 = vmul.f32 %v1354_v31, %v1354_v31 }
  0xfb   : > { %636 = vst [vmem:[%s1336_s9 + $0x50] sm:$0xff] %v1134_v57  ;;  %v527_v59 = vpop.f32.mrb[9].mxu0  ;;  %652 = vst [vmem:[%s1336_s9 + $0xd0] sm:$0xff] %v1379_v60  ;;  %v1384_v1 = vpop.f32.mrb[9].mxu1  ;;  %v841_v8 = vmul.f32 %v1134_v57, %v1134_v57 }
  0xfc   : > { %634 = vst [vmem:[%s1336_s9 + $0x40] sm:$0xff] %v527_v59  ;;  %v800_v61 = vadd.f32 %v799_v58, %v527_v59  ;;  %v839_v62 = vmul.f32 %v527_v59, %v527_v59  ;;  %v869_v63 = vadd.f32 %v868_v56, %v838_v55  ;;  %v1135_v0 = vpop.f32.mrb[10].mxu0  ;;  %650 = vst [vmem:[%s1336_s9 + $0xc0] sm:$0xff] %v1384_v1  ;;  %v1389_v3 = vpop.f32.mrb[10].mxu1 }
  0xfd   : > { %637 = vst [vmem:[%s1336_s9 + $0x58] sm:$0xff] %v1135_v0  ;;  %v530_v2 = vpop.f32.mrb[11].mxu0  ;;  %653 = vst [vmem:[%s1336_s9 + $0xd8] sm:$0xff] %v1389_v3  ;;  %v1394_v7 = vpop.f32.mrb[11].mxu1  ;;  %v842_v11 = vmul.f32 %v1135_v0, %v1135_v0 }
  0xfe   : > { %v870_v4 = vadd.f32 %v869_v63, %v839_v62  ;;  %635 = vst [vmem:[%s1336_s9 + $0x48] sm:$0xff] %v530_v2  ;;  %v801_v5 = vadd.f32 %v800_v61, %v530_v2  ;;  %v840_v6 = vmul.f32 %v530_v2, %v530_v2  ;;  %651 = vst [vmem:[%s1336_s9 + $0xc8] sm:$0xff] %v1394_v7 }
 0x100   : > { %v802_v9 = vadd.f32 %v1134_v57, %v801_v5  ;;  %v871_v10 = vadd.f32 %v870_v4, %v840_v6  ;;  %v852_v57 = vmul.f32 %v1374_v51, %v1374_v51  ;;  %v856_v4 = vmul.f32 %v1394_v7, %v1394_v7 }
 0x102   : > { %v872_v12 = vadd.f32 %v871_v10, %v841_v8  ;;  %v1138_v13 = vpop.f32.mrb[12].mxu0  ;;  %v803_v14 = vadd.f32 %v1135_v0, %v802_v9  ;;  %v1399_v16 = vpop.f32.mrb[12].mxu1 }
 0x103   : > { %640 = vst [vmem:[%s1336_s9 + $0x70] sm:$0xff] %v1138_v13  ;;  %v543_v15 = vpop.f32.mrb[13].mxu0  ;;  %656 = vst [vmem:[%s1336_s9 + $0xf0] sm:$0xff] %v1399_v16  ;;  %v607_v21 = vpop.f32.mrb[13].mxu1  ;;  %v845_v32 = vmul.f32 %v1138_v13, %v1138_v13 }
 0x104   : > { %638 = vst [vmem:[%s1336_s9 + $0x60] sm:$0xff] %v543_v15  ;;  %v804_v17 = vadd.f32 %v803_v14, %v543_v15  ;;  %v843_v18 = vmul.f32 %v543_v15, %v543_v15  ;;  %v873_v19 = vadd.f32 %v872_v12, %v842_v11  ;;  %v1139_v20 = vpop.f32.mrb[14].mxu0  ;;  %654 = vst [vmem:[%s1336_s9 + $0xe0] sm:$0xff] %v607_v21  ;;  %v1155_v24 = vpop.f32.mrb[14].mxu1 }
 0x105   : > { %641 = vst [vmem:[%s1336_s9 + $0x78] sm:$0xff] %v1139_v20  ;;  %v546_v22 = vpop.f32.mrb[15].mxu0  ;;  %657 = vst [vmem:[%s1336_s9 + $0xf8] sm:$0xff] %v1155_v24  ;;  %v610_v30 = vpop.f32.mrb[15].mxu1  ;;  %v846_v35 = vmul.f32 %v1139_v20, %v1139_v20  ;;  %v859_v9 = vmul.f32 %v607_v21, %v607_v21  ;;  %v861_v14 = vmul.f32 %v1399_v16, %v1399_v16 }
 0x106   : > { %v874_v26 = vadd.f32 %v873_v19, %v843_v18  ;;  %639 = vst [vmem:[%s1336_s9 + $0x68] sm:$0xff] %v546_v22  ;;  %v805_v28 = vadd.f32 %v804_v17, %v546_v22  ;;  %v844_v29 = vmul.f32 %v546_v22, %v546_v22  ;;  %655 = vst [vmem:[%s1336_s9 + $0xe8] sm:$0xff] %v610_v30 }
 0x107   : > { %v862_v17 = vmul.f32 %v1155_v24, %v1155_v24 }
 0x108   : > { %v806_v33 = vadd.f32 %v1138_v13, %v805_v28  ;;  %v875_v34 = vadd.f32 %v874_v26, %v844_v29 }
 0x10a   : > { %v876_v36 = vadd.f32 %v875_v34, %v845_v32  ;;  %v807_v37 = vadd.f32 %v1139_v20, %v806_v33 }
 0x10c   : > { %v808_v39 = vadd.f32 %v807_v37, %v1344_v25  ;;  %v877_v41 = vadd.f32 %v876_v36, %v846_v35  ;;  %v851_v25 = vmul.f32 %v1364_v45, %v1364_v45 }
 0x10e   : > { %v878_v42 = vadd.f32 %v877_v41, %v847_v38  ;;  %v809_v43 = vadd.f32 %v808_v39, %v1354_v31 }
 0x110   : > { %v810_v48 = vadd.f32 %v1339_v23, %v809_v43  ;;  %v879_v49 = vadd.f32 %v878_v42, %v848_v44  ;;  %v853_v23 = vmul.f32 %v1359_v40, %v1359_v40 }
 0x112   : > { %v880_v52 = vadd.f32 %v879_v49, %v849_v46  ;;  %v811_v53 = vadd.f32 %v1349_v27, %v810_v48  ;;  %v854_v27 = vmul.f32 %v1369_v47, %v1369_v47 }
 0x114   : > { %v812_v54 = vadd.f32 %v811_v53, %v1364_v45  ;;  %v881_v55 = vadd.f32 %v880_v52, %v850_v50  ;;  %v855_v45 = vmul.f32 %v1384_v1, %v1384_v1 }
 0x116   : > { %v882_v56 = vadd.f32 %v881_v55, %v851_v25  ;;  %v813_v31 = vadd.f32 %v812_v54, %v1374_v51 }
 0x118   : > { %v814_v58 = vadd.f32 %v1359_v40, %v813_v31  ;;  %v883_v59 = vadd.f32 %v882_v56, %v852_v57  ;;  %v857_v40 = vmul.f32 %v1379_v60, %v1379_v60 }
 0x11a   : > { %v884_v61 = vadd.f32 %v883_v59, %v853_v23  ;;  %v815_v62 = vadd.f32 %v1369_v47, %v814_v58  ;;  %v858_v47 = vmul.f32 %v1389_v3, %v1389_v3 }
 0x11c   : > { %v816_v63 = vadd.f32 %v815_v62, %v1384_v1  ;;  %v885_v0 = vadd.f32 %v884_v61, %v854_v27 }
 0x11e   : > { %v886_v2 = vadd.f32 %v885_v0, %v855_v45  ;;  %v817_v51 = vadd.f32 %v816_v63, %v1394_v7  ;;  %v860_v7 = vmul.f32 %v610_v30, %v610_v30 }
 0x120   : > { %v818_v5 = vadd.f32 %v1379_v60, %v817_v51  ;;  %v887_v6 = vadd.f32 %v886_v2, %v856_v4 }
 0x122   : > { %v888_v8 = vadd.f32 %v887_v6, %v857_v40  ;;  %v819_v1 = vadd.f32 %v1389_v3, %v818_v5 }
 0x124   : > { %v820_v10 = vadd.f32 %v819_v1, %v607_v21  ;;  %v889_v11 = vadd.f32 %v888_v8, %v858_v47 }
 0x126   : > { %v890_v12 = vadd.f32 %v889_v11, %v859_v9  ;;  %v821_v13 = vadd.f32 %v820_v10, %v610_v30 }
 0x128   : > { %v822_v15 = vadd.f32 %v1399_v16, %v821_v13  ;;  %v891_v60 = vadd.f32 %v890_v12, %v860_v7 }
 0x12a   : > { %v823_v18 = vadd.f32 %v1155_v24, %v822_v15  ;;  %v892_v19 = vadd.f32 %v891_v60, %v861_v14 }
 0x12c   : > { %v824_v20 = vrot.slane %v823_v18, 4  ;;  %v893_v22 = vadd.f32 %v892_v19, %v862_v17 }
 0x12e   : > { %v825_v3 = vadd.f32 %v824_v20, %v823_v18  ;;  %v894_v26 = vrot.slane %v893_v22, 4 }
 0x130   : > { %v826_v21 = vrot.slane %v825_v3, 2  ;;  %v895_v28 = vadd.f32 %v894_v26, %v893_v22 }
 0x132   : > { %v827_v29 = vadd.f32 %v826_v21, %v825_v3  ;;  %v896_v30 = vrot.slane %v895_v28, 2 }
 0x134   : > { %v828_v32 = vrot.slane %v827_v29, 1  ;;  %v897_v33 = vadd.f32 %v896_v30, %v895_v28 }
 0x136   : > { %v829_v16 = vadd.f32 %v828_v32, %v827_v29  ;;  %v898_v34 = vrot.slane %v897_v33, 1 }
 0x138   : > { %830 = vst [vmem:[%s262_s13] sm:$0xff] %v829_v16  ;;  %v899_v24 = vadd.f32 %v898_v34, %v897_v33 }
 0x13a   : > { %900 = vst [vmem:[%s266_s20] sm:$0xff] %v899_v24 }
 0x13b PF: > { %s15_s17 = sadd.s32 1, %s1232_s17   ;;  %s1470_s15 = smov %s1228_s16 }
 0x13c   : > { %p12_p6 = scmp.ge.s32.totalorder %s15_s17, 4   ;;  %s1471_s16 = smov %s1473_s18 }
 0x13e   :  { %14 = sbr.rel (!%p12_p6) target bundleno = 2 (0x2), region = 97 }

// kernel: mymodel_forward.12
= control target key start
LH: loop header
LB: loop body
LE: loop exit
PB: predicated region body
PF: predicated region fallthrough
CT: control target
= control target key end

     0   :  { %s507_s0 = inlined_call_operand.vmem [shape: f32[128,128], index: 0, kind: input, shape index: {}]   ;;  %s508_s1 = inlined_call_operand.vmem [shape: f32[1,128], index: 1, kind: input, shape index: {}]   ;;  %s509_s2 = inlined_call_operand.vmem [shape: f32[1,128], index: 2, kind: input, shape index: {}]   ;;  %s510_s3 = inlined_call_operand.vmem [shape: bf16[128,128], index: 3, kind: output, shape index: {}]  }
   0x1   :  { %v14_v0 = vld [vmem:[%s507_s0] sm:$0xff]  ;;  %v15_v1 = vld [vmem:[%s507_s0 + $0x8] sm:$0xff]  ;;  %v16_v6 = vld [vmem:[%s507_s0 + $0x10] sm:$0xff] }
   0x2   :  { %v382_v2 = vld [vmem:[%s508_s1] ss:$0 sm:$0xff]  ;;  %v17_v7 = vld [vmem:[%s507_s0 + $0x18] sm:$0xff]  ;;  %v19_v11 = vld [vmem:[%s507_s0 + $0x28] sm:$0xff] }
   0x3   :  { %v37_v3 = vmul.f32 %v382_v2, %v14_v0  ;;  %v38_v4 = vmul.f32 %v382_v2, %v15_v1  ;;  %v389_v5 = vld [vmem:[%s509_s2] ss:$0 sm:$0xff]  ;;  %v39_v8 = vmul.f32 %v382_v2, %v16_v6  ;;  %v40_v9 = vmul.f32 %v382_v2, %v17_v7  ;;  %v20_v12 = vld [vmem:[%s507_s0 + $0x30] sm:$0xff]  ;;  %v21_v17 = vld [vmem:[%s507_s0 + $0x38] sm:$0xff] }
   0x4   :  { %v18_v10 = vld [vmem:[%s507_s0 + $0x20] sm:$0xff]  ;;  %v42_v16 = vmul.f32 %v382_v2, %v19_v11  ;;  %v43_v20 = vmul.f32 %v382_v2, %v20_v12  ;;  %v44_v21 = vmul.f32 %v382_v2, %v21_v17  ;;  %v23_v25 = vld [vmem:[%s507_s0 + $0x48] sm:$0xff]  ;;  %v24_v35 = vld [vmem:[%s507_s0 + $0x50] sm:$0xff] }
   0x5   :  { %v60_v13 = vadd.f32 %v389_v5, %v37_v3  ;;  %v61_v14 = vadd.f32 %v389_v5, %v38_v4  ;;  %v41_v15 = vmul.f32 %v382_v2, %v18_v10  ;;  %v62_v18 = vadd.f32 %v389_v5, %v39_v8  ;;  %v22_v24 = vld [vmem:[%s507_s0 + $0x40] sm:$0xff]  ;;  %v25_v36 = vld [vmem:[%s507_s0 + $0x58] sm:$0xff]  ;;  %v27_v46 = vld [vmem:[%s507_s0 + $0x68] sm:$0xff] }
   0x6   :  { %v63_v19 = vadd.f32 %v389_v5, %v40_v9  ;;  %v65_v29 = vadd.f32 %v389_v5, %v42_v16  ;;  %v66_v30 = vadd.f32 %v389_v5, %v43_v20  ;;  %v429_v31 = vadd.f32 %v389_v5, %v44_v21  ;;  %v26_v39 = vld [vmem:[%s507_s0 + $0x60] sm:$0xff]  ;;  %v28_v50 = vld [vmem:[%s507_s0 + $0x70] sm:$0xff]  ;;  %v29_v57 = vld [vmem:[%s507_s0 + $0x78] sm:$0xff] }
   0x7   :  { %v92_v22 = vmul.f32 0.70710677, %v60_v13  ;;  %v93_v23 = vmul.f32 0.70710677, %v61_v14  ;;  %v94_v26 = vmul.f32 0.70710677, %v62_v18  ;;  %v64_v28 = vadd.f32 %v389_v5, %v41_v15 }
   0x8   :  { %v95_v27 = vmul.f32 0.70710677, %v63_v19  ;;  %v45_v32 = vmul.f32 %v382_v2, %v22_v24  ;;  %v46_v33 = vmul.f32 %v382_v2, %v23_v25  ;;  %v76_v37 = vmul.f32 0.5, %v60_v13 }
   0x9   :  { %321 = verf.f32 %v92_v22  ;;  %v96_v34 = vmul.f32 0.70710677, %v64_v28  ;;  %v97_v38 = vmul.f32 0.70710677, %v65_v29  ;;  %v98_v40 = vmul.f32 0.70710677, %v66_v30 }
   0xa   :  { %323 = verf.f32 %v93_v23  ;;  %v99_v41 = vmul.f32 0.70710677, %v429_v31  ;;  %v68_v42 = vadd.f32 %v389_v5, %v45_v32  ;;  %v445_v43 = vadd.f32 %v389_v5, %v46_v33 }
   0xb   :  { %325 = verf.f32 %v94_v26  ;;  %v47_v44 = vmul.f32 %v382_v2, %v24_v35  ;;  %v48_v45 = vmul.f32 %v382_v2, %v25_v36  ;;  %v77_v47 = vmul.f32 0.5, %v61_v14 }
   0xc   :  { %327 = verf.f32 %v95_v27  ;;  %v100_v48 = vmul.f32 0.70710677, %v68_v42  ;;  %v49_v49 = vmul.f32 %v382_v2, %v26_v39  ;;  %v78_v51 = vmul.f32 0.5, %v62_v18 }
   0xd   :  { %329 = verf.f32 %v96_v34  ;;  %v101_v52 = vmul.f32 0.70710677, %v445_v43  ;;  %v458_v53 = vadd.f32 %v389_v5, %v47_v44  ;;  %v461_v54 = vadd.f32 %v389_v5, %v48_v45 }
   0xe   :  { %331 = verf.f32 %v97_v38  ;;  %v50_v55 = vmul.f32 %v382_v2, %v27_v46  ;;  %v465_v56 = vadd.f32 %v389_v5, %v49_v49  ;;  %v79_v58 = vmul.f32 0.5, %v63_v19 }
   0xf   :  { %333 = verf.f32 %v98_v40  ;;  %v102_v59 = vmul.f32 0.70710677, %v458_v53  ;;  %v51_v60 = vmul.f32 %v382_v2, %v28_v50  ;;  %v80_v62 = vmul.f32 0.5, %v64_v28 }
  0x10   :  { %335 = verf.f32 %v99_v41  ;;  %v81_v63 = vmul.f32 0.5, %v65_v29  ;;  %v103_v0 = vmul.f32 0.70710677, %v461_v54  ;;  %v73_v1 = vadd.f32 %v389_v5, %v50_v55 }
  0x11   :  { %337 = verf.f32 %v100_v48  ;;  %v104_v6 = vmul.f32 0.70710677, %v465_v56  ;;  %v52_v7 = vmul.f32 %v382_v2, %v29_v57  ;;  %v82_v10 = vmul.f32 0.5, %v66_v30 }
  0x12   :  { %339 = verf.f32 %v101_v52  ;;  %v105_v11 = vmul.f32 0.70710677, %v73_v1  ;;  %v74_v15 = vadd.f32 %v389_v5, %v51_v60  ;;  %v83_v22 = vmul.f32 0.5, %v429_v31 }
  0x13   :  { %v322_v61 = vpop.eup %321  ;;  %341 = verf.f32 %v102_v59  ;;  %v75_v19 = vadd.f32 %v389_v5, %v52_v7  ;;  %v84_v28 = vmul.f32 0.5, %v68_v42  ;;  %v85_v31 = vmul.f32 0.5, %v445_v43 }
  0x14   :  { %v324_v3 = vpop.eup %323  ;;  %v124_v4 = vadd.f32 1.0, %v322_v61  ;;  %343 = verf.f32 %v103_v0  ;;  %v106_v23 = vmul.f32 0.70710677, %v74_v15  ;;  %v86_v44 = vmul.f32 0.5, %v458_v53 }
  0x15   :  { %v326_v8 = vpop.eup %325  ;;  %v125_v9 = vadd.f32 1.0, %v324_v3  ;;  %345 = verf.f32 %v104_v6  ;;  %v107_v33 = vmul.f32 0.70710677, %v75_v19  ;;  %v89_v57 = vmul.f32 0.5, %v73_v1 }
  0x16   :  { %v328_v12 = vpop.eup %327  ;;  %v140_v13 = vmul.f32 %v124_v4, %v76_v37  ;;  %v126_v14 = vadd.f32 1.0, %v326_v8  ;;  %347 = verf.f32 %v105_v11  ;;  %v91_v1 = vmul.f32 0.5, %v75_v19 }
  0x17   :  { %v330_v16 = vpop.eup %329  ;;  %v141_v17 = vmul.f32 %v125_v9, %v77_v47  ;;  %v127_v18 = vadd.f32 1.0, %v328_v12  ;;  %349 = verf.f32 %v106_v23  ;;  %v87_v47 = vmul.f32 0.5, %v461_v54 }
  0x18   :  { %v332_v20 = vpop.eup %331  ;;  %v142_v21 = vmul.f32 %v126_v14, %v78_v51  ;;  %v128_v2 = vadd.f32 1.0, %v330_v16  ;;  %351 = verf.f32 %v107_v33  ;;  %v88_v51 = vmul.f32 0.5, %v465_v56 }
  0x19   :  { %v334_v24 = vpop.eup %333  ;;  %v277_v25 = vpack.c.bf16 %v141_v17, %v140_v13  ;;  %v143_v26 = vmul.f32 %v127_v18, %v79_v58  ;;  %v129_v27 = vadd.f32 1.0, %v332_v20 }
  0x1a   :  { %v336_v29 = vpop.eup %335  ;;  %v144_v30 = vmul.f32 %v128_v2, %v80_v62  ;;  %v130_v32 = vadd.f32 1.0, %v334_v24 }
  0x1b   :  { %v338_v34 = vpop.eup %337  ;;  %278 = vst [vmem:[%s510_s3] sm:$0xff] %v277_v25   ;;  %v282_v5 = vpack.c.bf16 %v143_v26, %v142_v21  ;;  %v145_v35 = vmul.f32 %v129_v27, %v81_v63  ;;  %v131_v36 = vadd.f32 1.0, %v336_v29  ;;  %v90_v63 = vmul.f32 0.5, %v74_v15 }
  0x1c   :  { %v340_v37 = vpop.eup %339  ;;  %v146_v38 = vmul.f32 %v130_v32, %v82_v10  ;;  %v132_v39 = vadd.f32 1.0, %v338_v34 }
  0x1d   :  { %314 = vst [vmem:[%s510_s3 + $0x8] sm:$0xff] %v282_v5   ;;  %v287_v40 = vpack.c.bf16 %v145_v35, %v144_v30  ;;  %v147_v41 = vmul.f32 %v131_v36, %v83_v22  ;;  %v133_v42 = vadd.f32 1.0, %v340_v37  ;;  %v342_v45 = vpop.eup %341 }
  0x1e   :  { %v148_v46 = vmul.f32 %v132_v39, %v84_v28  ;;  %v344_v48 = vpop.eup %343  ;;  %v134_v50 = vadd.f32 1.0, %v342_v45 }
  0x1f   :  { %315 = vst [vmem:[%s510_s3 + $0x10] sm:$0xff] %v287_v40   ;;  %v292_v43 = vpack.c.bf16 %v147_v41, %v146_v38  ;;  %v149_v49 = vmul.f32 %v133_v42, %v85_v31  ;;  %v346_v52 = vpop.eup %345  ;;  %v135_v55 = vadd.f32 1.0, %v344_v48 }
  0x20   :  { %v348_v58 = vpop.eup %347  ;;  %v150_v54 = vmul.f32 %v134_v50, %v86_v44  ;;  %v136_v59 = vadd.f32 1.0, %v346_v52 }
  0x21   :  { %316 = vst [vmem:[%s510_s3 + $0x18] sm:$0xff] %v292_v43   ;;  %v297_v53 = vpack.c.bf16 %v149_v49, %v148_v46  ;;  %v151_v60 = vmul.f32 %v135_v55, %v87_v47  ;;  %v137_v61 = vadd.f32 1.0, %v348_v58  ;;  %v350_v56 = vpop.eup %349 }
  0x22   :  { %v152_v62 = vmul.f32 %v136_v59, %v88_v51  ;;  %v138_v4 = vadd.f32 1.0, %v350_v56  ;;  %v352_v6 = vpop.eup %351 }
  0x23   :  { %317 = vst [vmem:[%s510_s3 + $0x20] sm:$0xff] %v297_v53   ;;  %v302_v0 = vpack.c.bf16 %v151_v60, %v150_v54  ;;  %v153_v3 = vmul.f32 %v137_v61, %v89_v57  ;;  %v139_v8 = vadd.f32 1.0, %v352_v6 }
  0x24   :  { %v154_v9 = vmul.f32 %v138_v4, %v90_v63 }
  0x25   :  { %318 = vst [vmem:[%s510_s3 + $0x28] sm:$0xff] %v302_v0   ;;  %v307_v7 = vpack.c.bf16 %v153_v3, %v152_v62  ;;  %v155_v10 = vmul.f32 %v139_v8, %v91_v1 }
  0x27   :  { %319 = vst [vmem:[%s510_s3 + $0x30] sm:$0xff] %v307_v7   ;;  %v312_v11 = vpack.c.bf16 %v155_v10, %v154_v9 }
  0x29   :  { %320 = vst [vmem:[%s510_s3 + $0x38] sm:$0xff] %v312_v11  }

// kernel: mymodel_forward.11
= control target key start
LH: loop header
LB: loop body
LE: loop exit
PB: predicated region body
PF: predicated region fallthrough
CT: control target
= control target key end

     0   :  { %s2329_s1 = inlined_call_operand.vmem [shape: bf16[896,128], index: 1, kind: input, shape index: {}]   ;;  %s2330_s0 = inlined_call_operand.vmem [shape: bf16[128,896], index: 0, kind: input, shape index: {}]   ;;  %s2331_s2 = inlined_call_operand.vmem [shape: f32[128,128], index: 2, kind: output, shape index: {0}]   ;;  %s2332_s3 = inlined_call_operand.vmem [shape: f32[8,128], index: 3, kind: output, shape index: {1}]   ;;  %s2333_s4 = inlined_call_operand.vmem [shape: f32[8,128], index: 4, kind: output, shape index: {2}]  }
   0x1   :  { %v1718_v0 = vld [vmem:[%s2329_s1 + $0x40] sm:$0xff]   ;;  %v1722_v4 = vld [vmem:[%s2329_s1 + $0x48] sm:$0xff]   ;;  %v1726_v8 = vld [vmem:[%s2329_s1 + $0x50] sm:$0xff]  }
   0x2   :  { %v1719_v1 = vld [vmem:[%s2329_s1 + $0xc0] sm:$0xff]   ;;  %1478 = vmatprep.subr.bf16.mxu0 %v1718_v0  ;;  %v1723_v5 = vld [vmem:[%s2329_s1 + $0xc8] sm:$0xff]   ;;  %v1727_v9 = vld [vmem:[%s2329_s1 + $0xd0] sm:$0xff]  }
   0x3   :  { %v1720_v2 = vld [vmem:[%s2329_s1] sm:$0xff]   ;;  %1542 = vmatprep.subr.bf16.mxu1 %v1719_v1  ;;  %v1724_v6 = vld [vmem:[%s2329_s1 + $0x8] sm:$0xff]   ;;  %v1728_v10 = vld [vmem:[%s2329_s1 + $0x10] sm:$0xff]  }
   0x4   :  { %v1721_v3 = vld [vmem:[%s2329_s1 + $0x80] sm:$0xff]   ;;  %1479 = vmatpush3.bf16.msra.mxu0 %v1720_v2  ;;  %v1725_v7 = vld [vmem:[%s2329_s1 + $0x88] sm:$0xff]   ;;  %v1729_v11 = vld [vmem:[%s2329_s1 + $0x90] sm:$0xff]  }
   0x5   :  { %1543 = vmatpush3.bf16.msra.mxu1 %v1721_v3  ;;  %1480 = vmatprep.subr.bf16.mxu0 %v1722_v4  ;;  %v1730_v12 = vld [vmem:[%s2329_s1 + $0x58] sm:$0xff]   ;;  %v1734_v16 = vld [vmem:[%s2329_s1 + $0x60] sm:$0xff]   ;;  %v1738_v20 = vld [vmem:[%s2329_s1 + $0x68] sm:$0xff]  }
   0x6   :  { %1544 = vmatprep.subr.bf16.mxu1 %v1723_v5  ;;  %v1731_v13 = vld [vmem:[%s2329_s1 + $0xd8] sm:$0xff]   ;;  %v1735_v17 = vld [vmem:[%s2329_s1 + $0xe0] sm:$0xff]   ;;  %v1739_v21 = vld [vmem:[%s2329_s1 + $0xe8] sm:$0xff]  }
   0x7   :  { %v1732_v14 = vld [vmem:[%s2329_s1 + $0x18] sm:$0xff]   ;;  %v1736_v18 = vld [vmem:[%s2329_s1 + $0x20] sm:$0xff]   ;;  %v1740_v22 = vld [vmem:[%s2329_s1 + $0x28] sm:$0xff]  }
   0x8   :  { %1481 = vmatpush3.bf16.msra.mxu0 %v1724_v6  ;;  %v1733_v15 = vld [vmem:[%s2329_s1 + $0x98] sm:$0xff]   ;;  %v1737_v19 = vld [vmem:[%s2329_s1 + $0xa0] sm:$0xff]   ;;  %v1741_v23 = vld [vmem:[%s2329_s1 + $0xa8] sm:$0xff]  }
   0x9   :  { %1545 = vmatpush3.bf16.msra.mxu1 %v1725_v7  ;;  %1482 = vmatprep.subr.bf16.mxu0 %v1726_v8  ;;  %v1742_v24 = vld [vmem:[%s2329_s1 + $0x70] sm:$0xff]   ;;  %v1746_v28 = vld [vmem:[%s2329_s1 + $0x78] sm:$0xff]   ;;  %v1752_v33 = vld [vmem:[%s2330_s0 + $0x4] ss:$28 sps:$4 sm:$0xff]  }
   0xa   :  { %1546 = vmatprep.subr.bf16.mxu1 %v1727_v9  ;;  %v1743_v25 = vld [vmem:[%s2329_s1 + $0xf0] sm:$0xff]   ;;  %v1747_v29 = vld [vmem:[%s2329_s1 + $0xf8] sm:$0xff]   ;;  %v1753_v34 = vld [vmem:[%s2330_s0 + $0x8] ss:$28 sps:$4 sm:$0xff]   ;;  %847 = vmatprep.mubr.bf16.mxu0 %v1752_v33 }
   0xb   :  { %v1744_v26 = vld [vmem:[%s2329_s1 + $0x30] sm:$0xff]   ;;  %v1748_v30 = vld [vmem:[%s2329_s1 + $0x38] sm:$0xff]   ;;  %v1755_v35 = vld [vmem:[%s2330_s0 + $0xc] ss:$28 sps:$4 sm:$0xff]  }
   0xc   :  { %1483 = vmatpush3.bf16.msra.mxu0 %v1728_v10  ;;  %v1745_v27 = vld [vmem:[%s2329_s1 + $0xb0] sm:$0xff]   ;;  %v1749_v31 = vld [vmem:[%s2329_s1 + $0xb8] sm:$0xff]   ;;  %v1756_v36 = vld [vmem:[%s2329_s1 + $0x140] sm:$0xff]   ;;  %944 = vmatprep.mubr.bf16.mxu1 %v1755_v35 }
   0xd   :  { %1547 = vmatpush3.bf16.msra.mxu1 %v1729_v11  ;;  %1484 = vmatprep.subr.bf16.mxu0 %v1730_v12  ;;  %v1750_v32 = vld [vmem:[%s2330_s0] ss:$28 sps:$4 sm:$0xff]   ;;  %v1762_v40 = vld [vmem:[%s2330_s0 + $0x38] ss:$28 sps:$4 sm:$0xff]   ;;  %v1764_v42 = vld [vmem:[%s2329_s1 + $0x148] sm:$0xff]  }
   0xe   :  { %1548 = vmatprep.subr.bf16.mxu1 %v1731_v13  ;;  %v1757_v37 = vld [vmem:[%s2329_s1 + $0x100] sm:$0xff]   ;;  %v1758_v38 = vld [vmem:[%s2330_s0 + $0x3c] ss:$28 sps:$4 sm:$0xff]   ;;  %v1765_v43 = vld [vmem:[%s2329_s1 + $0x108] sm:$0xff]  }
   0xf   :  { %v1760_v39 = vld [vmem:[%s2330_s0 + $0x44] ss:$28 sps:$4 sm:$0xff]   ;;  %v1766_v44 = vld [vmem:[%s2330_s0 + $0x74] ss:$28 sps:$4 sm:$0xff]   ;;  %v1768_v45 = vld [vmem:[%s2330_s0 + $0x7c] ss:$28 sps:$4 sm:$0xff]  }
  0x10   :  { %1485 = vmatpush3.bf16.msra.mxu0 %v1732_v14  ;;  %v1763_v41 = vld [vmem:[%s2330_s0 + $0x40] ss:$28 sps:$4 sm:$0xff]   ;;  %v1772_v46 = vld [vmem:[%s2329_s1 + $0x150] sm:$0xff]   ;;  %v1774_v50 = vld [vmem:[%s2330_s0 + $0xac] ss:$28 sps:$4 sm:$0xff]  }
  0x11   :  { %1549 = vmatpush3.bf16.msra.mxu1 %v1733_v15  ;;  %1486 = vmatprep.subr.bf16.mxu0 %v1734_v16  ;;  %v1773_v47 = vld [vmem:[%s2329_s1 + $0x110] sm:$0xff]   ;;  %v1780_v52 = vld [vmem:[%s2329_s1 + $0x158] sm:$0xff]   ;;  %v1778_v54 = vld [vmem:[%s2330_s0 + $0xa8] ss:$28 sps:$4 sm:$0xff]  }
  0x12   :  { %1550 = vmatprep.subr.bf16.mxu1 %v1735_v17  ;;  %v1770_v48 = vld [vmem:[%s2330_s0 + $0x70] ss:$28 sps:$4 sm:$0xff]   ;;  %v1771_v49 = vld [vmem:[%s2330_s0 + $0x78] ss:$28 sps:$4 sm:$0xff]   ;;  %v1788_v55 = vld [vmem:[%s2329_s1 + $0x160] sm:$0xff]  }
  0x13   :  { %v1776_v51 = vld [vmem:[%s2330_s0 + $0xb4] ss:$28 sps:$4 sm:$0xff]   ;;  %v1781_v53 = vld [vmem:[%s2329_s1 + $0x118] sm:$0xff]   ;;  %v1789_v57 = vld [vmem:[%s2329_s1 + $0x180] sm:$0xff]  }
  0x14   :  { %1487 = vmatpush3.bf16.msra.mxu0 %v1736_v18  ;;  %v1779_v56 = vld [vmem:[%s2330_s0 + $0xb0] ss:$28 sps:$4 sm:$0xff]   ;;  %v1790_v58 = vld [vmem:[%s2329_s1 + $0x120] sm:$0xff]   ;;  %v1791_v3 = vld [vmem:[%s2330_s0 + $0x11c] ss:$28 sps:$4 sm:$0xff]  }
  0x15   :  { %1551 = vmatpush3.bf16.msra.mxu1 %v1737_v19  ;;  %1488 = vmatprep.subr.bf16.mxu0 %v1738_v20  ;;  %v1782_v59 = vld [vmem:[%s2330_s0 + $0xe4] ss:$28 sps:$4 sm:$0xff]   ;;  %v1784_v60 = vld [vmem:[%s2330_s0 + $0xec] ss:$28 sps:$4 sm:$0xff]   ;;  %v1800_v0 = vld [vmem:[%s2329_s1 + $0x190] sm:$0xff]  }
  0x16   :  { %1552 = vmatprep.subr.bf16.mxu1 %v1739_v21  ;;  %v1797_v61 = vld [vmem:[%s2329_s1 + $0x168] sm:$0xff]   ;;  %v1786_v1 = vld [vmem:[%s2330_s0 + $0xe0] ss:$28 sps:$4 sm:$0xff]   ;;  %v1807_v5 = vld [vmem:[%s2329_s1 + $0x170] sm:$0xff]  }
  0x17   :  { %v1798_v62 = vld [vmem:[%s2329_s1 + $0x188] sm:$0xff]   ;;  %v1793_v4 = vld [vmem:[%s2330_s0 + $0x124] ss:$28 sps:$4 sm:$0xff]   ;;  %v1808_v6 = vld [vmem:[%s2329_s1 + $0x198] sm:$0xff]  }
  0x18   :  { %1489 = vmatpush3.bf16.msra.mxu0 %v1740_v22  ;;  %v1799_v63 = vld [vmem:[%s2329_s1 + $0x128] sm:$0xff]   ;;  %v1809_v7 = vld [vmem:[%s2329_s1 + $0x130] sm:$0xff]   ;;  %v1810_v8 = vld [vmem:[%s2329_s1 + $0x1a0] sm:$0xff]  }
  0x19   :  { %1553 = vmatpush3.bf16.msra.mxu1 %v1741_v23  ;;  %1490 = vmatprep.subr.bf16.mxu0 %v1742_v24  ;;  %v1787_v2 = vld [vmem:[%s2330_s0 + $0xe8] ss:$28 sps:$4 sm:$0xff]   ;;  %v1795_v9 = vld [vmem:[%s2330_s0 + $0x118] ss:$28 sps:$4 sm:$0xff]   ;;  %v1796_v10 = vld [vmem:[%s2330_s0 + $0x120] ss:$28 sps:$4 sm:$0xff]  }
  0x1a   :  { %1554 = vmatprep.subr.bf16.mxu1 %v1743_v25  ;;  %v1801_v11 = vld [vmem:[%s2330_s0 + $0x154] ss:$28 sps:$4 sm:$0xff]   ;;  %v1803_v12 = vld [vmem:[%s2330_s0 + $0x15c] ss:$28 sps:$4 sm:$0xff]   ;;  %v1818_v14 = vld [vmem:[%s2329_s1 + $0x1a8] sm:$0xff]  }
  0x1b   :  { %v1817_v13 = vld [vmem:[%s2329_s1 + $0x178] sm:$0xff]   ;;  %v1820_v16 = vld [vmem:[%s2329_s1 + $0x1b0] sm:$0xff]   ;;  %v1811_v19 = vld [vmem:[%s2330_s0 + $0x18c] ss:$28 sps:$4 sm:$0xff]  }
  0x1c   :  { %1491 = vmatpush3.bf16.msra.mxu0 %v1744_v26  ;;  %v1819_v15 = vld [vmem:[%s2329_s1 + $0x138] sm:$0xff]   ;;  %v1805_v17 = vld [vmem:[%s2330_s0 + $0x150] ss:$28 sps:$4 sm:$0xff]   ;;  %v1815_v22 = vld [vmem:[%s2330_s0 + $0x188] ss:$28 sps:$4 sm:$0xff]  }
  0x1d   :  { %1555 = vmatpush3.bf16.msra.mxu1 %v1745_v27  ;;  %1492 = vmatprep.subr.bf16.mxu0 %v1746_v28  ;;  %v1806_v18 = vld [vmem:[%s2330_s0 + $0x158] ss:$28 sps:$4 sm:$0xff]   ;;  %v1816_v23 = vld [vmem:[%s2330_s0 + $0x190] ss:$28 sps:$4 sm:$0xff]  }
  0x1e   :  { %1556 = vmatprep.subr.bf16.mxu1 %v1747_v29  ;;  %v1813_v20 = vld [vmem:[%s2330_s0 + $0x194] ss:$28 sps:$4 sm:$0xff]   ;;  %v1824_v21 = vld [vmem:[%s2329_s1 + $0x1b8] sm:$0xff]   ;;  %v1827_v28 = vld [vmem:[%s2330_s0 + $0x4c] ss:$28 sps:$4 sm:$0xff]  }
  0x1f   :  { %v1823_v24 = vld [vmem:[%s2330_s0 + $0x14] ss:$28 sps:$4 sm:$0xff]   ;;  %v1833_v29 = vld [vmem:[%s2330_s0 + $0x88] ss:$28 sps:$4 sm:$0xff]   ;;  %v1835_v35 = vld [vmem:[%s2330_s0 + $0xbc] ss:$28 sps:$4 sm:$0xff]  }
  0x20   :  { %1493 = vmatpush3.bf16.msra.mxu0 %v1748_v30  ;;  %v1825_v25 = vld [vmem:[%s2330_s0 + $0x18] ss:$28 sps:$4 sm:$0xff]   ;;  %v1821_v26 = vld [vmem:[%s2330_s0 + $0x10] ss:$28 sps:$4 sm:$0xff]   ;;  %v1829_v30 = vld [vmem:[%s2330_s0 + $0x48] ss:$28 sps:$4 sm:$0xff]  }
  0x21   :  { %1557 = vmatpush3.bf16.msra.mxu1 %v1749_v31  ;;  %1606 = vmatprep.subr.bf16.mxu0 %v1756_v36  ;;  %v1826_v27 = vld [vmem:[%s2330_s0 + $0x50] ss:$28 sps:$4 sm:$0xff]   ;;  %v1830_v31 = vld [vmem:[%s2330_s0 + $0x84] ss:$28 sps:$4 sm:$0xff]   ;;  %v1841_v33 = vld [vmem:[%s2330_s0 + $0xf8] ss:$28 sps:$4 sm:$0xff]  }
  0x22   :  { %1686 = vmatprep.subr.bf16.mxu1 %v1789_v57  ;;  %v1842_v36 = vld [vmem:[%s2330_s0 + $0x130] ss:$28 sps:$4 sm:$0xff]  }
  0x23   :  { %848 = vmatmul.mubr.bf16.vlgmr.msra.gmra.mrb[0].mxu0 %v1750_v32  ;;  %v1834_v32 = vld [vmem:[%s2330_s0 + $0xc0] ss:$28 sps:$4 sm:$0xff]  }
  0x24   :  { %945 = vmatmul.mubr.bf16.vlgmr.msra.gmra.mrb[0].mxu1 %v1753_v34  ;;  %1607 = vmatpush3.bf16.msra.mxu0 %v1757_v37  ;;  %v1832_v34 = vld [vmem:[%s2330_s0 + $0x80] ss:$28 sps:$4 sm:$0xff]   ;;  %v1849_v37 = vld [vmem:[%s2330_s0 + $0x168] ss:$28 sps:$4 sm:$0xff]  }
  0x25   :  { %855 = vmatprep.mubr.bf16.mxu0 %v1758_v38  ;;  %952 = vmatprep.mubr.bf16.mxu1 %v1760_v39  ;;  %v1837_v38 = vld [vmem:[%s2330_s0 + $0xb8] ss:$28 sps:$4 sm:$0xff]  }
  0x26   :  { %1608 = vmatprep.subr.bf16.mxu0 %v1764_v42  ;;  %1687 = vmatpush3.bf16.msra.mxu1 %v1789_v57  ;;  %v1838_v39 = vld [vmem:[%s2330_s0 + $0xf4] ss:$28 sps:$4 sm:$0xff]   ;;  %v1843_v42 = vld [vmem:[%s2330_s0 + $0x12c] ss:$28 sps:$4 sm:$0xff]  }
  0x27   :  { %1688 = vmatprep.subr.bf16.mxu1 %v1798_v62 }
  0x28   :  { %1609 = vmatpush3.bf16.msra.mxu0 %v1765_v43  ;;  %v1845_v43 = vld [vmem:[%s2330_s0 + $0x128] ss:$28 sps:$4 sm:$0xff]  }
  0x29   :  { %1610 = vmatprep.subr.bf16.mxu0 %v1772_v46  ;;  %v1851_v46 = vld [vmem:[%s2330_s0 + $0x19c] ss:$28 sps:$4 sm:$0xff]  }
  0x2a   :  { %1689 = vmatpush3.bf16.msra.mxu1 %v1798_v62 }
  0x2b   :  { %856 = vmatmul.mubr.bf16.gmra.mrb[4].mxu0 %v1762_v40  ;;  %1690 = vmatprep.subr.bf16.mxu1 %v1800_v0  ;;  %v1850_v40 = vld [vmem:[%s2330_s0 + $0x1a0] ss:$28 sps:$4 sm:$0xff]  }
  0x2c   :  { %953 = vmatmul.mubr.bf16.gmra.mrb[4].mxu1 %v1763_v41  ;;  %863 = vmatprep.mubr.bf16.mxu0 %v1766_v44  ;;  %v1840_v41 = vld [vmem:[%s2330_s0 + $0xf0] ss:$28 sps:$4 sm:$0xff]   ;;  %v1846_v44 = vld [vmem:[%s2330_s0 + $0x164] ss:$28 sps:$4 sm:$0xff]  }
  0x2d   :  { %960 = vmatprep.mubr.bf16.mxu1 %v1768_v45  ;;  %1611 = vmatpush3.bf16.msra.mxu0 %v1773_v47  ;;  %v1848_v45 = vld [vmem:[%s2330_s0 + $0x160] ss:$28 sps:$4 sm:$0xff]   ;;  %v1853_v47 = vld [vmem:[%s2330_s0 + $0x198] ss:$28 sps:$4 sm:$0xff]  }
  0x2e   :  { %1612 = vmatprep.subr.bf16.mxu0 %v1780_v52  ;;  %1691 = vmatpush3.bf16.msra.mxu1 %v1800_v0 }
  0x2f   :  { %1692 = vmatprep.subr.bf16.mxu1 %v1808_v6 }
  0x31   :  { %1613 = vmatpush3.bf16.msra.mxu0 %v1781_v53 }
  0x32   :  { %1614 = vmatprep.subr.bf16.mxu0 %v1788_v55  ;;  %1693 = vmatpush3.bf16.msra.mxu1 %v1808_v6 }
  0x33   :  { %864 = vmatmul.mubr.bf16.gmra.mrb[8].mxu0 %v1770_v48  ;;  %1694 = vmatprep.subr.bf16.mxu1 %v1810_v8 }
  0x34   :  { %961 = vmatmul.mubr.bf16.gmra.mrb[8].mxu1 %v1771_v49  ;;  %871 = vmatprep.mubr.bf16.mxu0 %v1774_v50 }
  0x35   :  { %968 = vmatprep.mubr.bf16.mxu1 %v1776_v51  ;;  %1615 = vmatpush3.bf16.msra.mxu0 %v1790_v58 }
  0x36   :  { %1616 = vmatprep.subr.bf16.mxu0 %v1797_v61  ;;  %1695 = vmatpush3.bf16.msra.mxu1 %v1810_v8 }
  0x37   :  { %1696 = vmatprep.subr.bf16.mxu1 %v1818_v14 }
  0x39   :  { %1617 = vmatpush3.bf16.msra.mxu0 %v1799_v63 }
  0x3a   :  { %1618 = vmatprep.subr.bf16.mxu0 %v1807_v5  ;;  %1697 = vmatpush3.bf16.msra.mxu1 %v1818_v14 }
  0x3b   :  { %872 = vmatmul.mubr.bf16.gmra.mrb[12].mxu0 %v1778_v54  ;;  %1698 = vmatprep.subr.bf16.mxu1 %v1820_v16 }
  0x3c   :  { %969 = vmatmul.mubr.bf16.gmra.mrb[12].mxu1 %v1779_v56  ;;  %879 = vmatprep.mubr.bf16.mxu0 %v1782_v59 }
  0x3d   :  { %976 = vmatprep.mubr.bf16.mxu1 %v1784_v60  ;;  %1619 = vmatpush3.bf16.msra.mxu0 %v1809_v7 }
  0x3e   :  { %1620 = vmatprep.subr.bf16.mxu0 %v1817_v13  ;;  %1699 = vmatpush3.bf16.msra.mxu1 %v1820_v16 }
  0x3f   :  { %1700 = vmatprep.subr.bf16.mxu1 %v1824_v21 }
  0x41   :  { %1621 = vmatpush3.bf16.msra.mxu0 %v1819_v15 }
  0x42   :  { %1701 = vmatpush3.bf16.msra.mxu1 %v1824_v21 }
  0x43   :  { %880 = vmatmul.mubr.bf16.gmra.mrb[16].mxu0 %v1786_v1 }
  0x44   :  { %977 = vmatmul.mubr.bf16.gmra.mrb[16].mxu1 %v1787_v2  ;;  %887 = vmatprep.mubr.bf16.mxu0 %v1791_v3 }
  0x45   :  { %984 = vmatprep.mubr.bf16.mxu1 %v1793_v4 }
  0x4b   :  { %888 = vmatmul.mubr.bf16.gmra.mrb[20].mxu0 %v1795_v9 }
  0x4c   :  { %985 = vmatmul.mubr.bf16.gmra.mrb[20].mxu1 %v1796_v10  ;;  %895 = vmatprep.mubr.bf16.mxu0 %v1801_v11 }
  0x4d   :  { %992 = vmatprep.mubr.bf16.mxu1 %v1803_v12 }
  0x53   :  { %896 = vmatmul.mubr.bf16.gmra.mrb[24].mxu0 %v1805_v17 }
  0x54   :  { %993 = vmatmul.mubr.bf16.gmra.mrb[24].mxu1 %v1806_v18  ;;  %903 = vmatprep.mubr.bf16.mxu0 %v1811_v19 }
  0x55   :  { %1000 = vmatprep.mubr.bf16.mxu1 %v1813_v20 }
  0x5b   :  { %904 = vmatmul.mubr.bf16.gmra.mrb[28].mxu0 %v1815_v22 }
  0x5c   :  { %1001 = vmatmul.mubr.bf16.gmra.mrb[28].mxu1 %v1816_v23  ;;  %1041 = vmatprep.mubr.bf16.mxu0 %v1823_v24 }
  0x5d   :  { %1702 = vmatprep.mubr.bf16.mxu1 %v1825_v25 }
  0x63   :  { %1042 = vmatmul.mubr.bf16.vlgmr.msra.gmra.mrb[32].mxu0 %v1821_v26 }
  0x64   :  { %1703 = vmatmul.mubr.bf16.vlgmr.msra.gmra.mrb[32].mxu1 %v1826_v27  ;;  %1049 = vmatprep.mubr.bf16.mxu0 %v1827_v28 }
  0x65   :  { %1706 = vmatprep.mubr.bf16.mxu1 %v1833_v29 }
  0x6b   :  { %1050 = vmatmul.mubr.bf16.gmra.mrb[36].mxu0 %v1829_v30 }
  0x6c   :  { %1057 = vmatprep.mubr.bf16.mxu0 %v1830_v31  ;;  %1707 = vmatmul.mubr.bf16.gmra.mrb[36].mxu1 %v1834_v32 }
  0x6d   :  { %1710 = vmatprep.mubr.bf16.mxu1 %v1841_v33 }
  0x73   :  { %1058 = vmatmul.mubr.bf16.gmra.mrb[40].mxu0 %v1832_v34 }
  0x74   :  { %1065 = vmatprep.mubr.bf16.mxu0 %v1835_v35  ;;  %1711 = vmatmul.mubr.bf16.gmra.mrb[40].mxu1 %v1842_v36 }
  0x75   :  { %1714 = vmatprep.mubr.bf16.mxu1 %v1849_v37 }
  0x7b   :  { %1066 = vmatmul.mubr.bf16.gmra.mrb[44].mxu0 %v1837_v38 }
  0x7c   :  { %1073 = vmatprep.mubr.bf16.mxu0 %v1838_v39  ;;  %1715 = vmatmul.mubr.bf16.gmra.mrb[44].mxu1 %v1850_v40 }
  0x83   :  { %1074 = vmatmul.mubr.bf16.gmra.mrb[48].mxu0 %v1840_v41 }
  0x84   :  { %1081 = vmatprep.mubr.bf16.mxu0 %v1843_v42 }
  0x8b   :  { %1082 = vmatmul.mubr.bf16.gmra.mrb[52].mxu0 %v1845_v43 }
  0x8c   :  { %1089 = vmatprep.mubr.bf16.mxu0 %v1846_v44 }
  0x93   :  { %1090 = vmatmul.mubr.bf16.gmra.mrb[56].mxu0 %v1848_v45 }
  0x94   :  { %1097 = vmatprep.mubr.bf16.mxu0 %v1851_v46 }
  0x9b   :  { %1098 = vmatmul.mubr.bf16.gmra.mrb[60].mxu0 %v1853_v47 }
  0xf6   :  { %v1494_v48 = vpop.f32.mrb[0].mxu0 }
  0xf7   :  { %v1558_v49 = vpop.f32.mrb[0].mxu1  ;;  %v1495_v50 = vpop.f32.mrb[1].mxu0 }
  0xf8   :  { %v1496_v51 = vadd.f32 %v1495_v50, %v1494_v48  ;;  %v1559_v52 = vpop.f32.mrb[1].mxu1  ;;  %v1497_v53 = vpop.f32.mrb[2].mxu0 }
  0xf9   :  { %v1560_v54 = vadd.f32 %v1559_v52, %v1558_v49  ;;  %v1561_v55 = vpop.f32.mrb[2].mxu1  ;;  %v1498_v56 = vpop.f32.mrb[3].mxu0 }
  0xfa   :  { %v1499_v57 = vadd.f32 %v1498_v56, %v1497_v53  ;;  %v1562_v58 = vpop.f32.mrb[3].mxu1 }
  0xfb   :  { %v2215_v59 = vadd.f32 %v1560_v54, %v1496_v51  ;;  %v1563_v60 = vadd.f32 %v1562_v58, %v1561_v55 }
  0xfd   :  { %v2217_v61 = vadd.f32 %v1563_v60, %v1499_v57 }
  0xfe   :  { %v1500_v62 = vpop.f32.mrb[4].mxu0 }
  0xff   :  { %v1564_v63 = vpop.f32.mrb[4].mxu1  ;;  %v1501_v0 = vpop.f32.mrb[5].mxu0 }
 0x100   :  { %v1502_v1 = vadd.f32 %v1501_v0, %v1500_v62  ;;  %v1565_v2 = vpop.f32.mrb[5].mxu1  ;;  %v1503_v3 = vpop.f32.mrb[6].mxu0 }
 0x101   :  { %v1566_v4 = vadd.f32 %v1565_v2, %v1564_v63  ;;  %v1567_v5 = vpop.f32.mrb[6].mxu1  ;;  %v1504_v6 = vpop.f32.mrb[7].mxu0 }
 0x102   :  { %v1505_v7 = vadd.f32 %v1504_v6, %v1503_v3  ;;  %v1568_v8 = vpop.f32.mrb[7].mxu1 }
 0x103   :  { %v2219_v9 = vadd.f32 %v1566_v4, %v1502_v1  ;;  %v1569_v10 = vadd.f32 %v1568_v8, %v1567_v5 }
 0x105   :  { %v2221_v11 = vadd.f32 %v1569_v10, %v1505_v7 }
 0x106   :  { %v1506_v12 = vpop.f32.mrb[8].mxu0 }
 0x107   :  { %v1570_v13 = vpop.f32.mrb[8].mxu1  ;;  %v1507_v14 = vpop.f32.mrb[9].mxu0 }
 0x108   :  { %v1508_v15 = vadd.f32 %v1507_v14, %v1506_v12  ;;  %v1571_v16 = vpop.f32.mrb[9].mxu1  ;;  %v1509_v17 = vpop.f32.mrb[10].mxu0 }
 0x109   :  { %v1572_v18 = vadd.f32 %v1571_v16, %v1570_v13  ;;  %v1573_v19 = vpop.f32.mrb[10].mxu1  ;;  %v1510_v20 = vpop.f32.mrb[11].mxu0 }
 0x10a   :  { %v1511_v21 = vadd.f32 %v1510_v20, %v1509_v17  ;;  %v1574_v22 = vpop.f32.mrb[11].mxu1 }
 0x10b   :  { %v2223_v23 = vadd.f32 %v1572_v18, %v1508_v15  ;;  %v1575_v24 = vadd.f32 %v1574_v22, %v1573_v19 }
 0x10d   :  { %v2225_v25 = vadd.f32 %v1575_v24, %v1511_v21 }
 0x10e   :  { %v1512_v26 = vpop.f32.mrb[12].mxu0 }
 0x10f   :  { %v1576_v27 = vpop.f32.mrb[12].mxu1  ;;  %v1513_v28 = vpop.f32.mrb[13].mxu0 }
 0x110   :  { %v1514_v29 = vadd.f32 %v1513_v28, %v1512_v26  ;;  %v1577_v30 = vpop.f32.mrb[13].mxu1  ;;  %v1515_v31 = vpop.f32.mrb[14].mxu0 }
 0x111   :  { %v1578_v32 = vadd.f32 %v1577_v30, %v1576_v27  ;;  %v1579_v33 = vpop.f32.mrb[14].mxu1  ;;  %v1516_v34 = vpop.f32.mrb[15].mxu0 }
 0x112   :  { %v1517_v35 = vadd.f32 %v1516_v34, %v1515_v31  ;;  %v1580_v36 = vpop.f32.mrb[15].mxu1 }
 0x113   :  { %v2227_v37 = vadd.f32 %v1578_v32, %v1514_v29  ;;  %v1581_v38 = vadd.f32 %v1580_v36, %v1579_v33 }
 0x115   :  { %v2229_v39 = vadd.f32 %v1581_v38, %v1517_v35 }
 0x116   :  { %v1518_v40 = vpop.f32.mrb[16].mxu0 }
 0x117   :  { %v1582_v41 = vpop.f32.mrb[16].mxu1  ;;  %v1519_v42 = vpop.f32.mrb[17].mxu0 }
 0x118   :  { %v1520_v43 = vadd.f32 %v1519_v42, %v1518_v40  ;;  %v1583_v44 = vpop.f32.mrb[17].mxu1  ;;  %v1521_v45 = vpop.f32.mrb[18].mxu0 }
 0x119   :  { %v1584_v46 = vadd.f32 %v1583_v44, %v1582_v41  ;;  %v1585_v47 = vpop.f32.mrb[18].mxu1  ;;  %v1522_v48 = vpop.f32.mrb[19].mxu0 }
 0x11a   :  { %v1523_v49 = vadd.f32 %v1522_v48, %v1521_v45  ;;  %v1586_v50 = vpop.f32.mrb[19].mxu1 }
 0x11b   :  { %v2231_v51 = vadd.f32 %v1584_v46, %v1520_v43  ;;  %v1587_v52 = vadd.f32 %v1586_v50, %v1585_v47 }
 0x11d   :  { %v2233_v53 = vadd.f32 %v1587_v52, %v1523_v49 }
 0x11e   :  { %v1524_v54 = vpop.f32.mrb[20].mxu0 }
 0x11f   :  { %v1588_v55 = vpop.f32.mrb[20].mxu1  ;;  %v1525_v56 = vpop.f32.mrb[21].mxu0 }
 0x120   :  { %v1526_v57 = vadd.f32 %v1525_v56, %v1524_v54  ;;  %v1589_v58 = vpop.f32.mrb[21].mxu1  ;;  %v1527_v60 = vpop.f32.mrb[22].mxu0 }
 0x121   :  { %v1590_v62 = vadd.f32 %v1589_v58, %v1588_v55  ;;  %v1591_v63 = vpop.f32.mrb[22].mxu1  ;;  %v1528_v0 = vpop.f32.mrb[23].mxu0 }
 0x122   :  { %v1529_v1 = vadd.f32 %v1528_v0, %v1527_v60  ;;  %v1592_v2 = vpop.f32.mrb[23].mxu1 }
 0x123   :  { %v2235_v3 = vadd.f32 %v1590_v62, %v1526_v57  ;;  %v1593_v4 = vadd.f32 %v1592_v2, %v1591_v63 }
 0x125   :  { %v2237_v5 = vadd.f32 %v1593_v4, %v1529_v1 }
 0x126   :  { %v1530_v6 = vpop.f32.mrb[24].mxu0 }
 0x127   :  { %v1594_v7 = vpop.f32.mrb[24].mxu1  ;;  %v1531_v8 = vpop.f32.mrb[25].mxu0 }
 0x128   :  { %v1532_v10 = vadd.f32 %v1531_v8, %v1530_v6  ;;  %v1595_v12 = vpop.f32.mrb[25].mxu1  ;;  %v1533_v13 = vpop.f32.mrb[26].mxu0 }
 0x129   :  { %v1596_v14 = vadd.f32 %v1595_v12, %v1594_v7  ;;  %v1597_v15 = vpop.f32.mrb[26].mxu1  ;;  %v1534_v16 = vpop.f32.mrb[27].mxu0 }
 0x12a   :  { %v1535_v17 = vadd.f32 %v1534_v16, %v1533_v13  ;;  %v1598_v18 = vpop.f32.mrb[27].mxu1 }
 0x12b   :  { %v2239_v19 = vadd.f32 %v1596_v14, %v1532_v10  ;;  %v1599_v20 = vadd.f32 %v1598_v18, %v1597_v15 }
 0x12d   :  { %v2241_v21 = vadd.f32 %v1599_v20, %v1535_v17 }
 0x12e   :  { %v1536_v22 = vpop.f32.mrb[28].mxu0 }
 0x12f   :  { %v1600_v24 = vpop.f32.mrb[28].mxu1  ;;  %v1537_v26 = vpop.f32.mrb[29].mxu0 }
 0x130   :  { %v1538_v27 = vadd.f32 %v1537_v26, %v1536_v22  ;;  %v1601_v28 = vpop.f32.mrb[29].mxu1  ;;  %v1539_v29 = vpop.f32.mrb[30].mxu0 }
 0x131   :  { %v1602_v30 = vadd.f32 %v1601_v28, %v1600_v24  ;;  %v1603_v31 = vpop.f32.mrb[30].mxu1  ;;  %v1540_v32 = vpop.f32.mrb[31].mxu0 }
 0x132   :  { %v1541_v33 = vadd.f32 %v1540_v32, %v1539_v29  ;;  %v1604_v34 = vpop.f32.mrb[31].mxu1 }
 0x133   :  { %v2243_v35 = vadd.f32 %v1602_v30, %v1538_v27  ;;  %v1605_v36 = vadd.f32 %v1604_v34, %v1603_v31 }
 0x135   :  { %v2245_v38 = vadd.f32 %v1605_v36, %v1541_v33 }
 0x136   :  { %v1622_v40 = vpop.f32.mrb[32].mxu0 }
 0x137   :  { %v1623_v41 = vpop.f32.mrb[33].mxu0  ;;  %v1704_v42 = vpop.f32.mrb[32].mxu1 }
 0x138   :  { %v1624_v43 = vadd.f32 %v1623_v41, %v1622_v40  ;;  %v1625_v44 = vpop.f32.mrb[34].mxu0  ;;  %v1140_v45 = vpop.f32.mrb[33].mxu1 }
 0x139   :  { %v1626_v46 = vpop.f32.mrb[35].mxu0  ;;  %v1705_v47 = vpop.f32.mrb[34].mxu1 }
 0x13a   :  { %v1627_v48 = vadd.f32 %v1626_v46, %v1625_v44  ;;  %v1044_v49 = vadd.f32 %v1624_v43, %v2215_v59  ;;  %v1143_v50 = vpop.f32.mrb[35].mxu1 }
 0x13c   :  { %v1141_v52 = vadd.f32 %v1140_v45, %v1044_v49  ;;  %v1047_v54 = vadd.f32 %v1627_v48, %v2217_v61 }
 0x13e   :  { %1207 = vst [vmem:[%s2331_s2] sm:$0xff] %v1141_v52  ;;  %v1144_v55 = vadd.f32 %v1143_v50, %v1047_v54  ;;  %v1628_v56 = vpop.f32.mrb[36].mxu0  ;;  %v1316_v60 = vmul.f32 %v1141_v52, %v1141_v52 }
 0x13f   :  { %v1629_v57 = vpop.f32.mrb[37].mxu0  ;;  %v1708_v58 = vpop.f32.mrb[36].mxu1 }
 0x140   :  { %1208 = vst [vmem:[%s2331_s2 + $0x8] sm:$0xff] %v1144_v55  ;;  %v1294_v62 = vadd.f32 %v1144_v55, %v1141_v52  ;;  %v1317_v63 = vmul.f32 %v1144_v55, %v1144_v55  ;;  %v1630_v59 = vadd.f32 %v1629_v57, %v1628_v56  ;;  %v1631_v0 = vpop.f32.mrb[38].mxu0  ;;  %v1156_v1 = vpop.f32.mrb[37].mxu1 }
 0x141   :  { %v1632_v2 = vpop.f32.mrb[39].mxu0  ;;  %v1709_v61 = vpop.f32.mrb[38].mxu1 }
 0x142   :  { %v1332_v4 = vadd.f32 %v1317_v63, %v1316_v60  ;;  %v1052_v6 = vadd.f32 %v1630_v59, %v2219_v9  ;;  %v1633_v7 = vadd.f32 %v1632_v2, %v1631_v0  ;;  %v1159_v8 = vpop.f32.mrb[39].mxu1 }
 0x144   :  { %v1149_v10 = vadd.f32 %v1704_v42, %v1052_v6  ;;  %v1055_v12 = vadd.f32 %v1633_v7, %v2221_v11 }
 0x146   :  { %1209 = vst [vmem:[%s2331_s2 + $0x10] sm:$0xff] %v1149_v10  ;;  %v1318_v13 = vmul.f32 %v1149_v10, %v1149_v10  ;;  %v1152_v14 = vadd.f32 %v1705_v47, %v1055_v12  ;;  %v1634_v15 = vpop.f32.mrb[40].mxu0  ;;  %v1295_v16 = vadd.f32 %v1294_v62, %v1149_v10 }
 0x147   :  { %v1635_v17 = vpop.f32.mrb[41].mxu0  ;;  %v2260_v18 = vpop.f32.mrb[40].mxu1 }
 0x148   :  { %1210 = vst [vmem:[%s2331_s2 + $0x18] sm:$0xff] %v1152_v14  ;;  %v1636_v9 = vadd.f32 %v1635_v17, %v1634_v15  ;;  %v1637_v20 = vpop.f32.mrb[42].mxu0  ;;  %v1296_v22 = vadd.f32 %v1295_v16, %v1152_v14  ;;  %v1319_v24 = vmul.f32 %v1152_v14, %v1152_v14  ;;  %v1333_v11 = vadd.f32 %v1332_v4, %v1318_v13  ;;  %v1172_v26 = vpop.f32.mrb[41].mxu1 }
 0x149   :  { %v1638_v27 = vpop.f32.mrb[43].mxu0  ;;  %v2265_v28 = vpop.f32.mrb[42].mxu1 }
 0x14a   :  { %v1639_v29 = vadd.f32 %v1638_v27, %v1637_v20  ;;  %v1060_v30 = vadd.f32 %v1636_v9, %v2223_v23  ;;  %v1334_v31 = vadd.f32 %v1333_v11, %v1319_v24  ;;  %v1175_v32 = vpop.f32.mrb[43].mxu1 }
 0x14c   :  { %v1157_v33 = vadd.f32 %v1156_v1, %v1060_v30  ;;  %v1063_v34 = vadd.f32 %v1639_v29, %v2225_v25 }
 0x14e   :  { %1211 = vst [vmem:[%s2331_s2 + $0x20] sm:$0xff] %v1157_v33  ;;  %v1297_v36 = vadd.f32 %v1296_v22, %v1157_v33  ;;  %v1320_v40 = vmul.f32 %v1157_v33, %v1157_v33  ;;  %v1160_v41 = vadd.f32 %v1159_v8, %v1063_v34  ;;  %v1640_v42 = vpop.f32.mrb[44].mxu0 }
 0x14f   :  { %v1641_v43 = vpop.f32.mrb[45].mxu0  ;;  %v2272_v44 = vpop.f32.mrb[44].mxu1 }
 0x150   :  { %v1335_v45 = vadd.f32 %v1334_v31, %v1320_v40  ;;  %1212 = vst [vmem:[%s2331_s2 + $0x28] sm:$0xff] %v1160_v41  ;;  %v1298_v23 = vadd.f32 %v1297_v36, %v1160_v41  ;;  %v1321_v46 = vmul.f32 %v1160_v41, %v1160_v41  ;;  %v1642_v47 = vadd.f32 %v1641_v43, %v1640_v42  ;;  %v1643_v25 = vpop.f32.mrb[46].mxu0  ;;  %v1188_v48 = vpop.f32.mrb[45].mxu1 }
 0x151   :  { %v1644_v49 = vpop.f32.mrb[47].mxu0  ;;  %v2277_v50 = vpop.f32.mrb[46].mxu1 }
 0x152   :  { %v1336_v52 = vadd.f32 %v1335_v45, %v1321_v46  ;;  %v1068_v54 = vadd.f32 %v1642_v47, %v2227_v37  ;;  %v1645_v55 = vadd.f32 %v1644_v49, %v1643_v25  ;;  %v1191_v56 = vpop.f32.mrb[47].mxu1 }
 0x154   :  { %v1165_v57 = vadd.f32 %v1708_v58, %v1068_v54  ;;  %v1071_v60 = vadd.f32 %v1645_v55, %v2229_v39 }
 0x156   :  { %1213 = vst [vmem:[%s2331_s2 + $0x30] sm:$0xff] %v1165_v57  ;;  %v1322_v62 = vmul.f32 %v1165_v57, %v1165_v57  ;;  %v1168_v63 = vadd.f32 %v1709_v61, %v1071_v60  ;;  %v1646_v59 = vpop.f32.mrb[48].mxu0  ;;  %v1299_v0 = vadd.f32 %v1298_v23, %v1165_v57 }
 0x157   :  { %v1647_v1 = vpop.f32.mrb[49].mxu0 }
 0x158   :  { %1214 = vst [vmem:[%s2331_s2 + $0x38] sm:$0xff] %v1168_v63  ;;  %v1648_v2 = vadd.f32 %v1647_v1, %v1646_v59  ;;  %v1649_v37 = vpop.f32.mrb[50].mxu0  ;;  %v1300_v4 = vadd.f32 %v1299_v0, %v1168_v63  ;;  %v1323_v6 = vmul.f32 %v1168_v63, %v1168_v63  ;;  %v1337_v58 = vadd.f32 %v1336_v52, %v1322_v62 }
 0x159   :  { %v1650_v7 = vpop.f32.mrb[51].mxu0 }
 0x15a   :  { %v1651_v39 = vadd.f32 %v1650_v7, %v1649_v37  ;;  %v1076_v8 = vadd.f32 %v1648_v2, %v2231_v51  ;;  %v1338_v10 = vadd.f32 %v1337_v58, %v1323_v6 }
 0x15c   :  { %v1173_v12 = vadd.f32 %v1172_v26, %v1076_v8  ;;  %v1079_v61 = vadd.f32 %v1651_v39, %v2233_v53 }
 0x15e   :  { %1215 = vst [vmem:[%s2331_s2 + $0x40] sm:$0xff] %v1173_v12  ;;  %v1301_v13 = vadd.f32 %v1300_v4, %v1173_v12  ;;  %v1324_v14 = vmul.f32 %v1173_v12, %v1173_v12  ;;  %v1176_v15 = vadd.f32 %v1175_v32, %v1079_v61  ;;  %v1652_v16 = vpop.f32.mrb[52].mxu0 }
 0x15f   :  { %v1653_v17 = vpop.f32.mrb[53].mxu0 }
 0x160   :  { %v1339_v9 = vadd.f32 %v1338_v10, %v1324_v14  ;;  %1216 = vst [vmem:[%s2331_s2 + $0x48] sm:$0xff] %v1176_v15  ;;  %v1302_v20 = vadd.f32 %v1301_v13, %v1176_v15  ;;  %v1325_v51 = vmul.f32 %v1176_v15, %v1176_v15  ;;  %v1654_v22 = vadd.f32 %v1653_v17, %v1652_v16  ;;  %v1655_v24 = vpop.f32.mrb[54].mxu0 }
 0x161   :  { %v1656_v11 = vpop.f32.mrb[55].mxu0 }
 0x162   :  { %v1340_v53 = vadd.f32 %v1339_v9, %v1325_v51  ;;  %v1084_v26 = vadd.f32 %v1654_v22, %v2235_v3  ;;  %v1657_v27 = vadd.f32 %v1656_v11, %v1655_v24 }
 0x164   :  { %v1181_v29 = vadd.f32 %v2260_v18, %v1084_v26  ;;  %v1087_v30 = vadd.f32 %v1657_v27, %v2237_v5 }
 0x166   :  { %1217 = vst [vmem:[%s2331_s2 + $0x50] sm:$0xff] %v1181_v29  ;;  %v1326_v31 = vmul.f32 %v1181_v29, %v1181_v29  ;;  %v1184_v32 = vadd.f32 %v2265_v28, %v1087_v30  ;;  %v1658_v33 = vpop.f32.mrb[56].mxu0  ;;  %v1303_v34 = vadd.f32 %v1302_v20, %v1181_v29 }
 0x167   :  { %v1659_v36 = vpop.f32.mrb[57].mxu0 }
 0x168   :  { %1218 = vst [vmem:[%s2331_s2 + $0x58] sm:$0xff] %v1184_v32  ;;  %v1660_v3 = vadd.f32 %v1659_v36, %v1658_v33  ;;  %v1661_v40 = vpop.f32.mrb[58].mxu0  ;;  %v1304_v41 = vadd.f32 %v1303_v34, %v1184_v32  ;;  %v1327_v18 = vmul.f32 %v1184_v32, %v1184_v32  ;;  %v1341_v42 = vadd.f32 %v1340_v53, %v1326_v31 }
 0x169   :  { %v1662_v5 = vpop.f32.mrb[59].mxu0 }
 0x16a   :  { %v1663_v43 = vadd.f32 %v1662_v5, %v1661_v40  ;;  %v1092_v45 = vadd.f32 %v1660_v3, %v2239_v19  ;;  %v1342_v23 = vadd.f32 %v1341_v42, %v1327_v18 }
 0x16c   :  { %v1189_v46 = vadd.f32 %v1188_v48, %v1092_v45  ;;  %v1095_v28 = vadd.f32 %v1663_v43, %v2241_v21 }
 0x16e   :  { %1219 = vst [vmem:[%s2331_s2 + $0x60] sm:$0xff] %v1189_v46  ;;  %v1305_v47 = vadd.f32 %v1304_v41, %v1189_v46  ;;  %v1328_v25 = vmul.f32 %v1189_v46, %v1189_v46  ;;  %v1192_v49 = vadd.f32 %v1191_v56, %v1095_v28  ;;  %v1664_v52 = vpop.f32.mrb[60].mxu0 }
 0x16f   :  { %v1665_v54 = vpop.f32.mrb[61].mxu0 }
 0x170   :  { %v1343_v55 = vadd.f32 %v1342_v23, %v1328_v25  ;;  %1220 = vst [vmem:[%s2331_s2 + $0x68] sm:$0xff] %v1192_v49  ;;  %v1306_v57 = vadd.f32 %v1305_v47, %v1192_v49  ;;  %v1329_v19 = vmul.f32 %v1192_v49, %v1192_v49  ;;  %v1666_v60 = vadd.f32 %v1665_v54, %v1664_v52  ;;  %v1667_v48 = vpop.f32.mrb[62].mxu0 }
 0x171   :  { %v1668_v62 = vpop.f32.mrb[63].mxu0 }
 0x172   :  { %v1344_v21 = vadd.f32 %v1343_v55, %v1329_v19  ;;  %v1100_v63 = vadd.f32 %v1666_v60, %v2243_v35  ;;  %v1669_v59 = vadd.f32 %v1668_v62, %v1667_v48 }
 0x174   :  { %v1197_v0 = vadd.f32 %v2272_v44, %v1100_v63  ;;  %v1103_v56 = vadd.f32 %v1669_v59, %v2245_v38 }
 0x176   :  { %1221 = vst [vmem:[%s2331_s2 + $0x70] sm:$0xff] %v1197_v0  ;;  %v1307_v1 = vadd.f32 %v1306_v57, %v1197_v0  ;;  %v1330_v2 = vmul.f32 %v1197_v0, %v1197_v0  ;;  %v1200_v37 = vadd.f32 %v2277_v50, %v1103_v56 }
 0x178   :  { %v1345_v4 = vadd.f32 %v1344_v21, %v1330_v2  ;;  %1222 = vst [vmem:[%s2331_s2 + $0x78] sm:$0xff] %v1200_v37  ;;  %v1308_v6 = vadd.f32 %v1307_v1, %v1200_v37  ;;  %v1331_v35 = vmul.f32 %v1200_v37, %v1200_v37 }
 0x17a   :  { %v1309_v58 = vrot.slane %v1308_v6, 4  ;;  %v1346_v7 = vadd.f32 %v1345_v4, %v1331_v35 }
 0x17c   :  { %v1310_v44 = vadd.f32 %v1309_v58, %v1308_v6  ;;  %v1347_v39 = vrot.slane %v1346_v7, 4 }
 0x17e   :  { %v1311_v38 = vrot.slane %v1310_v44, 2  ;;  %v1348_v8 = vadd.f32 %v1347_v39, %v1346_v7 }
 0x180   :  { %v1312_v10 = vadd.f32 %v1311_v38, %v1310_v44  ;;  %v1349_v12 = vrot.slane %v1348_v8, 2 }
 0x182   :  { %v1313_v61 = vrot.slane %v1312_v10, 1  ;;  %v1350_v13 = vadd.f32 %v1349_v12, %v1348_v8 }
 0x184   :  { %v1314_v14 = vadd.f32 %v1313_v61, %v1312_v10  ;;  %v1351_v15 = vrot.slane %v1350_v13, 1 }
 0x186   :  { %1315 = vst [vmem:[%s2332_s3] sm:$0xff] %v1314_v14  ;;  %v1352_v50 = vadd.f32 %v1351_v15, %v1350_v13 }
 0x188   :  { %1353 = vst [vmem:[%s2333_s4] sm:$0xff] %v1352_v50 }

// kernel: mymodel_forward.14
= control target key start
LH: loop header
LB: loop body
LE: loop exit
PB: predicated region body
PF: predicated region fallthrough
CT: control target
= control target key end

     0   :  { %s157_s0 = inlined_call_operand.vmem [shape: f32[32,128], index: 0, kind: input, shape index: {}]   ;;  %s158_s1 = inlined_call_operand.vmem [shape: f32[1,128], index: 1, kind: input, shape index: {}]   ;;  %s159_s2 = inlined_call_operand.vmem [shape: f32[1,128], index: 2, kind: input, shape index: {}]   ;;  %s160_s3 = inlined_call_operand.vmem [shape: bf16[32,128], index: 3, kind: output, shape index: {}]  }
   0x1   :  { %v14_v0 = vld [vmem:[%s157_s0] sm:$0xff]  ;;  %v15_v1 = vld [vmem:[%s157_s0 + $0x8] sm:$0xff]  ;;  %v16_v6 = vld [vmem:[%s157_s0 + $0x10] sm:$0xff] }
   0x2   :  { %v84_v2 = vld [vmem:[%s158_s1] ss:$0 sm:$0xff]  ;;  %v17_v7 = vld [vmem:[%s157_s0 + $0x18] sm:$0xff] }
   0x3   :  { %v25_v3 = vmul.f32 %v84_v2, %v14_v0  ;;  %v26_v4 = vmul.f32 %v84_v2, %v15_v1  ;;  %v85_v5 = vld [vmem:[%s159_s2] ss:$0 sm:$0xff]  ;;  %v27_v8 = vmul.f32 %v84_v2, %v16_v6  ;;  %v28_v9 = vmul.f32 %v84_v2, %v17_v7 }
   0x5   :  { %v36_v10 = vadd.f32 %v85_v5, %v25_v3  ;;  %v37_v11 = vadd.f32 %v85_v5, %v26_v4  ;;  %v38_v12 = vadd.f32 %v85_v5, %v27_v8  ;;  %v39_v13 = vadd.f32 %v85_v5, %v28_v9 }
   0x7   :  { %v44_v14 = vmul.f32 0.70710677, %v36_v10  ;;  %v45_v15 = vmul.f32 0.70710677, %v37_v11  ;;  %v46_v16 = vmul.f32 0.70710677, %v38_v12 }
   0x8   :  { %v47_v17 = vmul.f32 0.70710677, %v39_v13  ;;  %v40_v18 = vmul.f32 0.5, %v36_v10  ;;  %v41_v20 = vmul.f32 0.5, %v37_v11  ;;  %v42_v23 = vmul.f32 0.5, %v38_v12 }
   0x9   :  { %105 = verf.f32 %v44_v14  ;;  %v43_v26 = vmul.f32 0.5, %v39_v13 }
   0xa   :  { %107 = verf.f32 %v45_v15 }
   0xb   :  { %109 = verf.f32 %v46_v16 }
   0xc   :  { %111 = verf.f32 %v47_v17 }
  0x13   :  { %v106_v19 = vpop.eup %105 }
  0x14   :  { %v108_v21 = vpop.eup %107  ;;  %v52_v22 = vadd.f32 1.0, %v106_v19 }
  0x15   :  { %v110_v24 = vpop.eup %109  ;;  %v53_v25 = vadd.f32 1.0, %v108_v21 }
  0x16   :  { %v112_v27 = vpop.eup %111  ;;  %v56_v28 = vmul.f32 %v52_v22, %v40_v18  ;;  %v54_v29 = vadd.f32 1.0, %v110_v24 }
  0x17   :  { %v57_v30 = vmul.f32 %v53_v25, %v41_v20  ;;  %v55_v31 = vadd.f32 1.0, %v112_v27 }
  0x18   :  { %v58_v32 = vmul.f32 %v54_v29, %v42_v23 }
  0x19   :  { %v97_v33 = vpack.c.bf16 %v57_v30, %v56_v28  ;;  %v59_v34 = vmul.f32 %v55_v31, %v43_v26 }
  0x1b   :  { %98 = vst [vmem:[%s160_s3] sm:$0xff] %v97_v33   ;;  %v102_v35 = vpack.c.bf16 %v59_v34, %v58_v32 }
  0x1d   :  { %104 = vst [vmem:[%s160_s3 + $0x8] sm:$0xff] %v102_v35  }

// kernel: mymodel_forward.13
= control target key start
LH: loop header
LB: loop body
LE: loop exit
PB: predicated region body
PF: predicated region fallthrough
CT: control target
= control target key end

     0   :  { %s2320_s1 = inlined_call_operand.vmem [shape: bf16[1664,128], index: 1, kind: input, shape index: {}]   ;;  %s2321_s0 = inlined_call_operand.vmem [shape: bf16[32,1664], index: 0, kind: input, shape index: {}]   ;;  %s2322_s2 = inlined_call_operand.vmem [shape: f32[32,128], index: 2, kind: output, shape index: {0}]   ;;  %s2323_s3 = inlined_call_operand.vmem [shape: f32[8,128], index: 3, kind: output, shape index: {1}]   ;;  %s2324_s4 = inlined_call_operand.vmem [shape: f32[8,128], index: 4, kind: output, shape index: {2}]  }
   0x1   :  { %v1745_v0 = vld [vmem:[%s2320_s1 + $0x40] sm:$0xff]   ;;  %v1749_v4 = vld [vmem:[%s2320_s1 + $0x48] sm:$0xff]   ;;  %v1753_v8 = vld [vmem:[%s2320_s1 + $0x50] sm:$0xff]  }
   0x2   :  { %v1746_v1 = vld [vmem:[%s2320_s1 + $0xc0] sm:$0xff]   ;;  %1547 = vmatprep.subr.bf16.mxu0 %v1745_v0  ;;  %v1750_v5 = vld [vmem:[%s2320_s1 + $0xc8] sm:$0xff]   ;;  %v1754_v9 = vld [vmem:[%s2320_s1 + $0xd0] sm:$0xff]  }
   0x3   :  { %v1747_v2 = vld [vmem:[%s2320_s1] sm:$0xff]   ;;  %1575 = vmatprep.subr.bf16.mxu1 %v1746_v1  ;;  %v1751_v6 = vld [vmem:[%s2320_s1 + $0x8] sm:$0xff]   ;;  %v1755_v10 = vld [vmem:[%s2320_s1 + $0x10] sm:$0xff]  }
   0x4   :  { %v1748_v3 = vld [vmem:[%s2320_s1 + $0x80] sm:$0xff]   ;;  %1548 = vmatpush3.bf16.msra.mxu0 %v1747_v2  ;;  %v1752_v7 = vld [vmem:[%s2320_s1 + $0x88] sm:$0xff]   ;;  %v1756_v11 = vld [vmem:[%s2320_s1 + $0x90] sm:$0xff]  }
   0x5   :  { %1576 = vmatpush3.bf16.msra.mxu1 %v1748_v3  ;;  %1549 = vmatprep.subr.bf16.mxu0 %v1749_v4  ;;  %v1757_v12 = vld [vmem:[%s2320_s1 + $0x58] sm:$0xff]   ;;  %v1761_v16 = vld [vmem:[%s2320_s1 + $0x60] sm:$0xff]   ;;  %v1765_v20 = vld [vmem:[%s2320_s1 + $0x68] sm:$0xff]  }
   0x6   :  { %1577 = vmatprep.subr.bf16.mxu1 %v1750_v5  ;;  %v1758_v13 = vld [vmem:[%s2320_s1 + $0xd8] sm:$0xff]   ;;  %v1762_v17 = vld [vmem:[%s2320_s1 + $0xe0] sm:$0xff]   ;;  %v1766_v21 = vld [vmem:[%s2320_s1 + $0xe8] sm:$0xff]  }
   0x7   :  { %v1759_v14 = vld [vmem:[%s2320_s1 + $0x18] sm:$0xff]   ;;  %v1763_v18 = vld [vmem:[%s2320_s1 + $0x20] sm:$0xff]   ;;  %v1767_v22 = vld [vmem:[%s2320_s1 + $0x28] sm:$0xff]  }
   0x8   :  { %1550 = vmatpush3.bf16.msra.mxu0 %v1751_v6  ;;  %v1760_v15 = vld [vmem:[%s2320_s1 + $0x98] sm:$0xff]   ;;  %v1764_v19 = vld [vmem:[%s2320_s1 + $0xa0] sm:$0xff]   ;;  %v1768_v23 = vld [vmem:[%s2320_s1 + $0xa8] sm:$0xff]  }
   0x9   :  { %1578 = vmatpush3.bf16.msra.mxu1 %v1752_v7  ;;  %1551 = vmatprep.subr.bf16.mxu0 %v1753_v8  ;;  %v1769_v24 = vld [vmem:[%s2320_s1 + $0x70] sm:$0xff]   ;;  %v1773_v28 = vld [vmem:[%s2320_s1 + $0x78] sm:$0xff]   ;;  %v1782_v35 = vld [vmem:[%s2321_s0 + $0xc] ss:$52 sps:$4 sm:$0xff]  }
   0xa   :  { %1579 = vmatprep.subr.bf16.mxu1 %v1754_v9  ;;  %v1770_v25 = vld [vmem:[%s2320_s1 + $0xf0] sm:$0xff]   ;;  %v1774_v29 = vld [vmem:[%s2320_s1 + $0xf8] sm:$0xff]   ;;  %v1783_v36 = vld [vmem:[%s2320_s1 + $0x140] sm:$0xff]   ;;  %1088 = vmatprep.mubr.bf16.mxu1 %v1782_v35 }
   0xb   :  { %v1771_v26 = vld [vmem:[%s2320_s1 + $0x30] sm:$0xff]   ;;  %v1775_v30 = vld [vmem:[%s2320_s1 + $0x38] sm:$0xff]   ;;  %v1784_v37 = vld [vmem:[%s2320_s1 + $0x100] sm:$0xff]  }
   0xc   :  { %1552 = vmatpush3.bf16.msra.mxu0 %v1755_v10  ;;  %v1772_v27 = vld [vmem:[%s2320_s1 + $0xb0] sm:$0xff]   ;;  %v1776_v31 = vld [vmem:[%s2320_s1 + $0xb8] sm:$0xff]   ;;  %v1785_v38 = vld [vmem:[%s2320_s1 + $0x1c0] sm:$0xff]  }
   0xd   :  { %1580 = vmatpush3.bf16.msra.mxu1 %v1756_v11  ;;  %1553 = vmatprep.subr.bf16.mxu0 %v1757_v12  ;;  %v1777_v32 = vld [vmem:[%s2321_s0] ss:$52 sps:$4 sm:$0xff]   ;;  %v1779_v33 = vld [vmem:[%s2321_s0 + $0x4] ss:$52 sps:$4 sm:$0xff]   ;;  %v1780_v34 = vld [vmem:[%s2321_s0 + $0x8] ss:$52 sps:$4 sm:$0xff]  }
   0xe   :  { %1581 = vmatprep.subr.bf16.mxu1 %v1758_v13  ;;  %1039 = vmatprep.mubr.bf16.mxu0 %v1779_v33  ;;  %v1786_v39 = vld [vmem:[%s2320_s1 + $0x180] sm:$0xff]   ;;  %v1787_v40 = vld [vmem:[%s2320_s1 + $0x148] sm:$0xff]   ;;  %v1791_v44 = vld [vmem:[%s2320_s1 + $0x150] sm:$0xff]  }
   0xf   :  { %v1788_v41 = vld [vmem:[%s2320_s1 + $0x108] sm:$0xff]   ;;  %v1792_v45 = vld [vmem:[%s2320_s1 + $0x110] sm:$0xff]   ;;  %v1795_v48 = vld [vmem:[%s2320_s1 + $0x158] sm:$0xff]  }
  0x10   :  { %1554 = vmatpush3.bf16.msra.mxu0 %v1759_v14  ;;  %v1789_v42 = vld [vmem:[%s2320_s1 + $0x1c8] sm:$0xff]   ;;  %v1793_v46 = vld [vmem:[%s2320_s1 + $0x1d0] sm:$0xff]   ;;  %v1796_v49 = vld [vmem:[%s2320_s1 + $0x118] sm:$0xff]  }
  0x11   :  { %1582 = vmatpush3.bf16.msra.mxu1 %v1760_v15  ;;  %1555 = vmatprep.subr.bf16.mxu0 %v1761_v16  ;;  %v1790_v43 = vld [vmem:[%s2320_s1 + $0x188] sm:$0xff]   ;;  %v1794_v47 = vld [vmem:[%s2320_s1 + $0x190] sm:$0xff]   ;;  %v1797_v50 = vld [vmem:[%s2320_s1 + $0x1d8] sm:$0xff]  }
  0x12   :  { %1583 = vmatprep.subr.bf16.mxu1 %v1762_v17  ;;  %v1798_v51 = vld [vmem:[%s2320_s1 + $0x198] sm:$0xff]   ;;  %v1799_v52 = vld [vmem:[%s2320_s1 + $0x160] sm:$0xff]   ;;  %v1803_v56 = vld [vmem:[%s2320_s1 + $0x168] sm:$0xff]  }
  0x13   :  { %v1800_v53 = vld [vmem:[%s2320_s1 + $0x120] sm:$0xff]   ;;  %v1806_v58 = vld [vmem:[%s2321_s0 + $0x74] ss:$52 sps:$4 sm:$0xff]   ;;  %v1817_v4 = vld [vmem:[%s2320_s1 + $0x178] sm:$0xff]  }
  0x14   :  { %1556 = vmatpush3.bf16.msra.mxu0 %v1763_v18  ;;  %v1801_v54 = vld [vmem:[%s2320_s1 + $0x1e0] sm:$0xff]   ;;  %v1808_v59 = vld [vmem:[%s2320_s1 + $0x128] sm:$0xff]   ;;  %v1813_v0 = vld [vmem:[%s2320_s1 + $0x170] sm:$0xff]  }
  0x15   :  { %1584 = vmatpush3.bf16.msra.mxu1 %v1764_v19  ;;  %1557 = vmatprep.subr.bf16.mxu0 %v1765_v20  ;;  %v1802_v55 = vld [vmem:[%s2320_s1 + $0x1a0] sm:$0xff]   ;;  %v1809_v60 = vld [vmem:[%s2321_s0 + $0x68] ss:$52 sps:$4 sm:$0xff]   ;;  %v1814_v1 = vld [vmem:[%s2320_s1 + $0x130] sm:$0xff]  }
  0x16   :  { %1585 = vmatprep.subr.bf16.mxu1 %v1766_v21  ;;  %v1804_v57 = vld [vmem:[%s2321_s0 + $0x6c] ss:$52 sps:$4 sm:$0xff]   ;;  %v1810_v61 = vld [vmem:[%s2321_s0 + $0x70] ss:$52 sps:$4 sm:$0xff]   ;;  %v1818_v5 = vld [vmem:[%s2320_s1 + $0x138] sm:$0xff]  }
  0x17   :  { %v1811_v62 = vld [vmem:[%s2320_s1 + $0x1e8] sm:$0xff]   ;;  %v1815_v2 = vld [vmem:[%s2320_s1 + $0x1f0] sm:$0xff]   ;;  %v1819_v6 = vld [vmem:[%s2320_s1 + $0x1f8] sm:$0xff]  }
  0x18   :  { %1558 = vmatpush3.bf16.msra.mxu0 %v1767_v22  ;;  %v1812_v63 = vld [vmem:[%s2320_s1 + $0x1a8] sm:$0xff]   ;;  %v1816_v3 = vld [vmem:[%s2320_s1 + $0x1b0] sm:$0xff]   ;;  %v1823_v9 = vld [vmem:[%s2320_s1 + $0x1b8] sm:$0xff]  }
  0x19   :  { %1586 = vmatpush3.bf16.msra.mxu1 %v1768_v23  ;;  %1559 = vmatprep.subr.bf16.mxu0 %v1769_v24  ;;  %v1820_v7 = vld [vmem:[%s2321_s0 + $0x10] ss:$52 sps:$4 sm:$0xff]   ;;  %v1822_v8 = vld [vmem:[%s2321_s0 + $0x14] ss:$52 sps:$4 sm:$0xff]   ;;  %v1825_v11 = vld [vmem:[%s2321_s0 + $0x18] ss:$52 sps:$4 sm:$0xff]  }
  0x1a   :  { %1587 = vmatprep.subr.bf16.mxu1 %v1770_v25  ;;  %v1824_v10 = vld [vmem:[%s2320_s1 + $0x240] sm:$0xff]   ;;  %v1827_v12 = vld [vmem:[%s2321_s0 + $0x1c] ss:$52 sps:$4 sm:$0xff]   ;;  %v1831_v16 = vld [vmem:[%s2320_s1 + $0x248] sm:$0xff]  }
  0x1b   :  { %v1828_v13 = vld [vmem:[%s2320_s1 + $0x200] sm:$0xff]   ;;  %v1832_v17 = vld [vmem:[%s2320_s1 + $0x208] sm:$0xff]   ;;  %v1834_v19 = vld [vmem:[%s2321_s0 + $0x7c] ss:$52 sps:$4 sm:$0xff]  }
  0x1c   :  { %1560 = vmatpush3.bf16.msra.mxu0 %v1771_v26  ;;  %v1829_v14 = vld [vmem:[%s2320_s1 + $0x2c0] sm:$0xff]   ;;  %v1833_v18 = vld [vmem:[%s2320_s1 + $0x2c8] sm:$0xff]   ;;  %v1838_v22 = vld [vmem:[%s2320_s1 + $0x250] sm:$0xff]  }
  0x1d   :  { %1588 = vmatpush3.bf16.msra.mxu1 %v1772_v27  ;;  %1561 = vmatprep.subr.bf16.mxu0 %v1773_v28  ;;  %v1830_v15 = vld [vmem:[%s2320_s1 + $0x280] sm:$0xff]   ;;  %v1836_v20 = vld [vmem:[%s2320_s1 + $0x288] sm:$0xff]   ;;  %v1841_v24 = vld [vmem:[%s2320_s1 + $0x210] sm:$0xff]  }
  0x1e   :  { %1589 = vmatprep.subr.bf16.mxu1 %v1774_v29  ;;  %v1837_v21 = vld [vmem:[%s2321_s0 + $0x78] ss:$52 sps:$4 sm:$0xff]   ;;  %v1842_v25 = vld [vmem:[%s2321_s0 + $0x80] ss:$52 sps:$4 sm:$0xff]  }
  0x1f   :  { %v1839_v23 = vld [vmem:[%s2321_s0 + $0x84] ss:$52 sps:$4 sm:$0xff]   ;;  %v1843_v26 = vld [vmem:[%s2320_s1 + $0x2d0] sm:$0xff]  }
  0x20   :  { %1562 = vmatpush3.bf16.msra.mxu0 %v1775_v30  ;;  %v1844_v27 = vld [vmem:[%s2320_s1 + $0x290] sm:$0xff]   ;;  %v1845_v28 = vld [vmem:[%s2320_s1 + $0x258] sm:$0xff]   ;;  %v1850_v33 = vld [vmem:[%s2320_s1 + $0x220] sm:$0xff]  }
  0x21   :  { %1590 = vmatpush3.bf16.msra.mxu1 %v1776_v31  ;;  %1603 = vmatprep.subr.bf16.mxu0 %v1783_v36  ;;  %v1846_v29 = vld [vmem:[%s2320_s1 + $0x218] sm:$0xff]   ;;  %v1852_v35 = vld [vmem:[%s2320_s1 + $0x2a0] sm:$0xff]   ;;  %v1853_v36 = vld [vmem:[%s2320_s1 + $0x268] sm:$0xff]  }
  0x22   :  { %1631 = vmatprep.subr.bf16.mxu1 %v1785_v38  ;;  %v1847_v30 = vld [vmem:[%s2320_s1 + $0x2d8] sm:$0xff]   ;;  %v1855_v38 = vld [vmem:[%s2320_s1 + $0x2e8] sm:$0xff]  }
  0x23   :  { %1040 = vmatmul.mubr.bf16.vlgmr.msra.gmra.mrb[0].mxu0 %v1777_v32  ;;  %v1848_v31 = vld [vmem:[%s2320_s1 + $0x298] sm:$0xff]   ;;  %v1849_v32 = vld [vmem:[%s2320_s1 + $0x260] sm:$0xff]  }
  0x24   :  { %1089 = vmatmul.mubr.bf16.vlgmr.msra.gmra.mrb[0].mxu1 %v1780_v34  ;;  %1604 = vmatpush3.bf16.msra.mxu0 %v1784_v37  ;;  %v1851_v34 = vld [vmem:[%s2320_s1 + $0x2e0] sm:$0xff]   ;;  %v1854_v37 = vld [vmem:[%s2320_s1 + $0x228] sm:$0xff]  }
  0x25   :  { %1632 = vmatpush3.bf16.msra.mxu1 %v1786_v39  ;;  %1605 = vmatprep.subr.bf16.mxu0 %v1787_v40  ;;  %v1856_v39 = vld [vmem:[%s2320_s1 + $0x2a8] sm:$0xff]   ;;  %v1857_v40 = vld [vmem:[%s2320_s1 + $0x270] sm:$0xff]  }
  0x26   :  { %1633 = vmatprep.subr.bf16.mxu1 %v1789_v42  ;;  %1047 = vmatprep.mubr.bf16.mxu0 %v1804_v57  ;;  %v1859_v42 = vld [vmem:[%s2320_s1 + $0x2f0] sm:$0xff]  }
  0x27   :  { %1096 = vmatprep.mubr.bf16.mxu1 %v1806_v58  ;;  %v1877_v57 = vld [vmem:[%s2321_s0 + $0x94] ss:$52 sps:$4 sm:$0xff]   ;;  %v1880_v58 = vld [vmem:[%s2320_s1 + $0x318] sm:$0xff]  }
  0x28   :  { %1606 = vmatpush3.bf16.msra.mxu0 %v1788_v41  ;;  %v1858_v41 = vld [vmem:[%s2320_s1 + $0x230] sm:$0xff]  }
  0x29   :  { %1634 = vmatpush3.bf16.msra.mxu1 %v1790_v43  ;;  %1607 = vmatprep.subr.bf16.mxu0 %v1791_v44  ;;  %v1860_v43 = vld [vmem:[%s2320_s1 + $0x2b0] sm:$0xff]   ;;  %v1861_v44 = vld [vmem:[%s2320_s1 + $0x278] sm:$0xff]  }
  0x2a   :  { %1635 = vmatprep.subr.bf16.mxu1 %v1793_v46  ;;  %v1863_v46 = vld [vmem:[%s2320_s1 + $0x2f8] sm:$0xff]  }
  0x2b   :  { %1048 = vmatmul.mubr.bf16.gmra.mrb[4].mxu0 %v1809_v60  ;;  %v1881_v60 = vld [vmem:[%s2320_s1 + $0x320] sm:$0xff]  }
  0x2c   :  { %1608 = vmatpush3.bf16.msra.mxu0 %v1792_v45  ;;  %1097 = vmatmul.mubr.bf16.gmra.mrb[4].mxu1 %v1810_v61  ;;  %v1862_v45 = vld [vmem:[%s2320_s1 + $0x238] sm:$0xff]   ;;  %v1885_v61 = vld [vmem:[%s2321_s0 + $0x30] ss:$52 sps:$4 sm:$0xff]  }
  0x2d   :  { %1636 = vmatpush3.bf16.msra.mxu1 %v1794_v47  ;;  %1609 = vmatprep.subr.bf16.mxu0 %v1795_v48  ;;  %v1864_v47 = vld [vmem:[%s2321_s0 + $0x20] ss:$52 sps:$4 sm:$0xff]   ;;  %v1866_v48 = vld [vmem:[%s2321_s0 + $0x24] ss:$52 sps:$4 sm:$0xff]  }
  0x2e   :  { %1637 = vmatprep.subr.bf16.mxu1 %v1797_v50  ;;  %1137 = vmatprep.mubr.bf16.mxu0 %v1822_v8  ;;  %v1868_v50 = vld [vmem:[%s2320_s1 + $0x300] sm:$0xff]  }
  0x2f   :  { %1186 = vmatprep.mubr.bf16.mxu1 %v1827_v12 }
  0x30   :  { %1610 = vmatpush3.bf16.msra.mxu0 %v1796_v49  ;;  %v1867_v49 = vld [vmem:[%s2320_s1 + $0x2b8] sm:$0xff]  }
  0x31   :  { %1638 = vmatpush3.bf16.msra.mxu1 %v1798_v51  ;;  %1611 = vmatprep.subr.bf16.mxu0 %v1799_v52  ;;  %v1869_v51 = vld [vmem:[%s2321_s0 + $0x28] ss:$52 sps:$4 sm:$0xff]   ;;  %v1871_v52 = vld [vmem:[%s2321_s0 + $0x2c] ss:$52 sps:$4 sm:$0xff]  }
  0x32   :  { %1639 = vmatprep.subr.bf16.mxu1 %v1801_v54  ;;  %v1873_v54 = vld [vmem:[%s2321_s0 + $0x8c] ss:$52 sps:$4 sm:$0xff]  }
  0x34   :  { %1612 = vmatpush3.bf16.msra.mxu0 %v1800_v53  ;;  %v1872_v53 = vld [vmem:[%s2320_s1 + $0x308] sm:$0xff]  }
  0x35   :  { %1640 = vmatpush3.bf16.msra.mxu1 %v1802_v55  ;;  %1613 = vmatprep.subr.bf16.mxu0 %v1803_v56  ;;  %v1875_v55 = vld [vmem:[%s2321_s0 + $0x88] ss:$52 sps:$4 sm:$0xff]   ;;  %v1876_v56 = vld [vmem:[%s2320_s1 + $0x310] sm:$0xff]  }
  0x36   :  { %1641 = vmatprep.subr.bf16.mxu1 %v1811_v62  ;;  %v1882_v62 = vld [vmem:[%s2320_s1 + $0x328] sm:$0xff]  }
  0x38   :  { %1614 = vmatpush3.bf16.msra.mxu0 %v1808_v59  ;;  %v1879_v59 = vld [vmem:[%s2321_s0 + $0x90] ss:$52 sps:$4 sm:$0xff]  }
  0x39   :  { %1642 = vmatpush3.bf16.msra.mxu1 %v1812_v63  ;;  %1615 = vmatprep.subr.bf16.mxu0 %v1813_v0  ;;  %v1883_v63 = vld [vmem:[%s2320_s1 + $0x330] sm:$0xff]   ;;  %v1884_v0 = vld [vmem:[%s2320_s1 + $0x338] sm:$0xff]  }
  0x3a   :  { %1643 = vmatprep.subr.bf16.mxu1 %v1815_v2 }
  0x3c   :  { %1616 = vmatpush3.bf16.msra.mxu0 %v1814_v1  ;;  %v1886_v1 = vld [vmem:[%s2321_s0 + $0x98] ss:$52 sps:$4 sm:$0xff]  }
  0x3d   :  { %1644 = vmatpush3.bf16.msra.mxu1 %v1816_v3  ;;  %1617 = vmatprep.subr.bf16.mxu0 %v1817_v4 }
  0x3e   :  { %1645 = vmatprep.subr.bf16.mxu1 %v1819_v6 }
  0x40   :  { %1618 = vmatpush3.bf16.msra.mxu0 %v1818_v5 }
  0x41   :  { %1646 = vmatpush3.bf16.msra.mxu1 %v1823_v9  ;;  %1659 = vmatprep.subr.bf16.mxu0 %v1824_v10 }
  0x42   :  { %1687 = vmatprep.subr.bf16.mxu1 %v1829_v14 }
  0x43   :  { %1138 = vmatmul.mubr.bf16.vlgmr.msra.gmra.mrb[8].mxu0 %v1820_v7 }
  0x44   :  { %1660 = vmatpush3.bf16.msra.mxu0 %v1828_v13  ;;  %1187 = vmatmul.mubr.bf16.vlgmr.msra.gmra.mrb[8].mxu1 %v1825_v11 }
  0x45   :  { %1688 = vmatpush3.bf16.msra.mxu1 %v1830_v15  ;;  %1661 = vmatprep.subr.bf16.mxu0 %v1831_v16 }
  0x46   :  { %1689 = vmatprep.subr.bf16.mxu1 %v1833_v18  ;;  %1145 = vmatprep.mubr.bf16.mxu0 %v1834_v19 }
  0x47   :  { %1194 = vmatprep.mubr.bf16.mxu1 %v1839_v23 }
  0x48   :  { %1662 = vmatpush3.bf16.msra.mxu0 %v1832_v17 }
  0x49   :  { %1690 = vmatpush3.bf16.msra.mxu1 %v1836_v20  ;;  %1663 = vmatprep.subr.bf16.mxu0 %v1838_v22 }
  0x4a   :  { %1691 = vmatprep.subr.bf16.mxu1 %v1843_v26 }
  0x4b   :  { %1146 = vmatmul.mubr.bf16.gmra.mrb[12].mxu0 %v1837_v21 }
  0x4c   :  { %1664 = vmatpush3.bf16.msra.mxu0 %v1841_v24  ;;  %1195 = vmatmul.mubr.bf16.gmra.mrb[12].mxu1 %v1842_v25 }
  0x4d   :  { %1692 = vmatpush3.bf16.msra.mxu1 %v1844_v27  ;;  %1665 = vmatprep.subr.bf16.mxu0 %v1845_v28 }
  0x4e   :  { %1693 = vmatprep.subr.bf16.mxu1 %v1847_v30  ;;  %1235 = vmatprep.mubr.bf16.mxu0 %v1866_v48 }
  0x4f   :  { %1284 = vmatprep.mubr.bf16.mxu1 %v1871_v52 }
  0x50   :  { %1666 = vmatpush3.bf16.msra.mxu0 %v1846_v29 }
  0x51   :  { %1694 = vmatpush3.bf16.msra.mxu1 %v1848_v31  ;;  %1667 = vmatprep.subr.bf16.mxu0 %v1849_v32 }
  0x52   :  { %1695 = vmatprep.subr.bf16.mxu1 %v1851_v34 }
  0x54   :  { %1668 = vmatpush3.bf16.msra.mxu0 %v1850_v33 }
  0x55   :  { %1696 = vmatpush3.bf16.msra.mxu1 %v1852_v35  ;;  %1669 = vmatprep.subr.bf16.mxu0 %v1853_v36 }
  0x56   :  { %1697 = vmatprep.subr.bf16.mxu1 %v1855_v38 }
  0x58   :  { %1670 = vmatpush3.bf16.msra.mxu0 %v1854_v37 }
  0x59   :  { %1698 = vmatpush3.bf16.msra.mxu1 %v1856_v39  ;;  %1671 = vmatprep.subr.bf16.mxu0 %v1857_v40 }
  0x5a   :  { %1699 = vmatprep.subr.bf16.mxu1 %v1859_v42 }
  0x5c   :  { %1672 = vmatpush3.bf16.msra.mxu0 %v1858_v41 }
  0x5d   :  { %1700 = vmatpush3.bf16.msra.mxu1 %v1860_v43  ;;  %1673 = vmatprep.subr.bf16.mxu0 %v1861_v44 }
  0x5e   :  { %1701 = vmatprep.subr.bf16.mxu1 %v1863_v46 }
  0x60   :  { %1674 = vmatpush3.bf16.msra.mxu0 %v1862_v45 }
  0x61   :  { %1702 = vmatpush3.bf16.msra.mxu1 %v1867_v49  ;;  %1725 = vmatprep.subr.bf16.mxu0 %v1868_v50 }
  0x63   :  { %1236 = vmatmul.mubr.bf16.vlgmr.msra.gmra.mrb[16].mxu0 %v1864_v47 }
  0x64   :  { %1726 = vmatpush3.bf16.msra.mxu0 %v1868_v50  ;;  %1285 = vmatmul.mubr.bf16.vlgmr.msra.gmra.mrb[16].mxu1 %v1869_v51 }
  0x65   :  { %1727 = vmatprep.subr.bf16.mxu0 %v1872_v53  ;;  %1243 = vmatprep.mubr.bf16.mxu0 %v1873_v54 }
  0x66   :  { %1292 = vmatprep.mubr.bf16.mxu1 %v1877_v57 }
  0x68   :  { %1728 = vmatpush3.bf16.msra.mxu0 %v1872_v53 }
  0x69   :  { %1729 = vmatprep.subr.bf16.mxu0 %v1876_v56 }
  0x6b   :  { %1244 = vmatmul.mubr.bf16.gmra.mrb[20].mxu0 %v1875_v55 }
  0x6c   :  { %1730 = vmatpush3.bf16.msra.mxu0 %v1876_v56  ;;  %1293 = vmatmul.mubr.bf16.gmra.mrb[20].mxu1 %v1879_v59 }
  0x6d   :  { %1731 = vmatprep.subr.bf16.mxu0 %v1880_v58  ;;  %1741 = vmatprep.mubr.bf16.mxu0 %v1885_v61 }
  0x70   :  { %1732 = vmatpush3.bf16.msra.mxu0 %v1880_v58 }
  0x71   :  { %1733 = vmatprep.subr.bf16.mxu0 %v1881_v60 }
  0x74   :  { %1734 = vmatpush3.bf16.msra.mxu0 %v1881_v60 }
  0x75   :  { %1735 = vmatprep.subr.bf16.mxu0 %v1882_v62 }
  0x78   :  { %1736 = vmatpush3.bf16.msra.mxu0 %v1882_v62 }
  0x79   :  { %1737 = vmatprep.subr.bf16.mxu0 %v1883_v63 }
  0x7c   :  { %1738 = vmatpush3.bf16.msra.mxu0 %v1883_v63 }
  0x7d   :  { %1739 = vmatprep.subr.bf16.mxu0 %v1884_v0 }
  0x80   :  { %1740 = vmatpush3.bf16.msra.mxu0 %v1884_v0 }
  0x83   :  { %1742 = vmatmul.mubr.bf16.vlgmr.msra.gmra.mrb[24].mxu0 %v1886_v1 }
  0xf6   :  { %v1563_v2 = vpop.f32.mrb[0].mxu0 }
  0xf7   :  { %v1591_v3 = vpop.f32.mrb[0].mxu1  ;;  %v1564_v4 = vpop.f32.mrb[1].mxu0 }
  0xf8   :  { %v1565_v5 = vadd.f32 %v1564_v4, %v1563_v2  ;;  %v1592_v6 = vpop.f32.mrb[1].mxu1  ;;  %v1566_v7 = vpop.f32.mrb[2].mxu0 }
  0xf9   :  { %v1593_v8 = vadd.f32 %v1592_v6, %v1591_v3  ;;  %v1594_v9 = vpop.f32.mrb[2].mxu1  ;;  %v1567_v10 = vpop.f32.mrb[3].mxu0 }
  0xfa   :  { %v1568_v11 = vadd.f32 %v1567_v10, %v1566_v7  ;;  %v1595_v12 = vpop.f32.mrb[3].mxu1 }
  0xfb   :  { %v1091_v13 = vadd.f32 %v1593_v8, %v1565_v5  ;;  %v1596_v14 = vadd.f32 %v1595_v12, %v1594_v9 }
  0xfd   :  { %v1094_v15 = vadd.f32 %v1596_v14, %v1568_v11 }
  0xfe   :  { %v1569_v16 = vpop.f32.mrb[4].mxu0 }
  0xff   :  { %v1597_v17 = vpop.f32.mrb[4].mxu1  ;;  %v1570_v18 = vpop.f32.mrb[5].mxu0 }
 0x100   :  { %v1598_v19 = vpop.f32.mrb[5].mxu1  ;;  %v1571_v20 = vadd.f32 %v1570_v18, %v1569_v16  ;;  %v1572_v22 = vpop.f32.mrb[6].mxu0 }
 0x101   :  { %v1599_v21 = vadd.f32 %v1598_v19, %v1597_v17  ;;  %v1600_v23 = vpop.f32.mrb[6].mxu1  ;;  %v1573_v24 = vpop.f32.mrb[7].mxu0 }
 0x102   :  { %v1601_v25 = vpop.f32.mrb[7].mxu1  ;;  %v1574_v27 = vadd.f32 %v1573_v24, %v1572_v22 }
 0x103   :  { %v1099_v26 = vadd.f32 %v1599_v21, %v1571_v20  ;;  %v1602_v28 = vadd.f32 %v1601_v25, %v1600_v23 }
 0x105   :  { %v1102_v29 = vadd.f32 %v1602_v28, %v1574_v27 }
 0x116   :  { %v1619_v30 = vpop.f32.mrb[8].mxu0 }
 0x117   :  { %v1620_v31 = vpop.f32.mrb[9].mxu0  ;;  %v1647_v34 = vpop.f32.mrb[8].mxu1 }
 0x118   :  { %v1621_v32 = vadd.f32 %v1620_v31, %v1619_v30  ;;  %v1622_v33 = vpop.f32.mrb[10].mxu0  ;;  %v1648_v38 = vpop.f32.mrb[9].mxu1 }
 0x119   :  { %v1623_v35 = vpop.f32.mrb[11].mxu0  ;;  %v1649_v39 = vadd.f32 %v1648_v38, %v1647_v34  ;;  %v1650_v40 = vpop.f32.mrb[10].mxu1 }
 0x11a   :  { %v1140_v36 = vadd.f32 %v1621_v32, %v1091_v13  ;;  %v1624_v37 = vadd.f32 %v1623_v35, %v1622_v33  ;;  %v1651_v42 = vpop.f32.mrb[11].mxu1 }
 0x11b   :  { %v1652_v44 = vadd.f32 %v1651_v42, %v1650_v40 }
 0x11c   :  { %v1143_v41 = vadd.f32 %v1624_v37, %v1094_v15  ;;  %v1189_v43 = vadd.f32 %v1649_v39, %v1140_v36 }
 0x11e   :  { %v1192_v45 = vadd.f32 %v1652_v44, %v1143_v41  ;;  %v1625_v46 = vpop.f32.mrb[12].mxu0 }
 0x11f   :  { %v1626_v47 = vpop.f32.mrb[13].mxu0  ;;  %v1653_v50 = vpop.f32.mrb[12].mxu1 }
 0x120   :  { %v1627_v48 = vadd.f32 %v1626_v47, %v1625_v46  ;;  %v1628_v49 = vpop.f32.mrb[14].mxu0  ;;  %v1654_v54 = vpop.f32.mrb[13].mxu1 }
 0x121   :  { %v1629_v51 = vpop.f32.mrb[15].mxu0  ;;  %v1655_v55 = vadd.f32 %v1654_v54, %v1653_v50  ;;  %v1656_v56 = vpop.f32.mrb[14].mxu1 }
 0x122   :  { %v1148_v52 = vadd.f32 %v1627_v48, %v1099_v26  ;;  %v1630_v53 = vadd.f32 %v1629_v51, %v1628_v49  ;;  %v1657_v58 = vpop.f32.mrb[15].mxu1 }
 0x123   :  { %v1658_v60 = vadd.f32 %v1657_v58, %v1656_v56 }
 0x124   :  { %v1151_v57 = vadd.f32 %v1630_v53, %v1102_v29  ;;  %v1197_v59 = vadd.f32 %v1655_v55, %v1148_v52 }
 0x126   :  { %v1200_v61 = vadd.f32 %v1658_v60, %v1151_v57 }
 0x136   :  { %v1675_v62 = vpop.f32.mrb[16].mxu0 }
 0x137   :  { %v1676_v63 = vpop.f32.mrb[17].mxu0  ;;  %v1703_v4 = vpop.f32.mrb[16].mxu1 }
 0x138   :  { %v1677_v0 = vadd.f32 %v1676_v63, %v1675_v62  ;;  %v1678_v1 = vpop.f32.mrb[18].mxu0  ;;  %v1704_v6 = vpop.f32.mrb[17].mxu1 }
 0x139   :  { %v1679_v2 = vpop.f32.mrb[19].mxu0  ;;  %v1705_v8 = vadd.f32 %v1704_v6, %v1703_v4  ;;  %v1706_v9 = vpop.f32.mrb[18].mxu1 }
 0x13a   :  { %v1238_v3 = vadd.f32 %v1677_v0, %v1189_v43  ;;  %v1680_v5 = vadd.f32 %v1679_v2, %v1678_v1  ;;  %v1707_v10 = vpop.f32.mrb[19].mxu1 }
 0x13b   :  { %v1708_v11 = vadd.f32 %v1707_v10, %v1706_v9 }
 0x13c   :  { %v1241_v7 = vadd.f32 %v1680_v5, %v1192_v45  ;;  %v1287_v13 = vadd.f32 %v1705_v8, %v1238_v3 }
 0x13e   :  { %v1681_v12 = vpop.f32.mrb[20].mxu0  ;;  %v1290_v17 = vadd.f32 %v1708_v11, %v1241_v7 }
 0x13f   :  { %v1682_v14 = vpop.f32.mrb[21].mxu0  ;;  %v1709_v20 = vpop.f32.mrb[20].mxu1 }
 0x140   :  { %v1683_v15 = vadd.f32 %v1682_v14, %v1681_v12  ;;  %v1684_v16 = vpop.f32.mrb[22].mxu0  ;;  %v1710_v22 = vpop.f32.mrb[21].mxu1 }
 0x141   :  { %v1685_v18 = vpop.f32.mrb[23].mxu0  ;;  %v1711_v24 = vadd.f32 %v1710_v22, %v1709_v20  ;;  %v1712_v25 = vpop.f32.mrb[22].mxu1 }
 0x142   :  { %v1246_v19 = vadd.f32 %v1683_v15, %v1197_v59  ;;  %v1686_v21 = vadd.f32 %v1685_v18, %v1684_v16  ;;  %v1713_v26 = vpop.f32.mrb[23].mxu1 }
 0x143   :  { %v1714_v27 = vadd.f32 %v1713_v26, %v1712_v25 }
 0x144   :  { %v1249_v23 = vadd.f32 %v1686_v21, %v1200_v61  ;;  %v1295_v28 = vadd.f32 %v1711_v24, %v1246_v19 }
 0x146   :  { %v1298_v29 = vadd.f32 %v1714_v27, %v1249_v23 }
 0x156   :  { %v1743_v30 = vpop.f32.mrb[24].mxu0 }
 0x157   :  { %v1344_v31 = vadd.f32 %v1743_v30, %v1295_v28  ;;  %v1335_v32 = vpop.f32.mrb[25].mxu0 }
 0x158   :  { %v1336_v33 = vadd.f32 %v1335_v32, %v1287_v13  ;;  %v1744_v34 = vpop.f32.mrb[26].mxu0 }
 0x159   :  { %1356 = vst [vmem:[%s2322_s2 + $0x10] sm:$0xff] %v1344_v31  ;;  %v1347_v35 = vadd.f32 %v1744_v34, %v1298_v29  ;;  %v1338_v36 = vpop.f32.mrb[27].mxu0  ;;  %v1393_v41 = vmul.f32 %v1344_v31, %v1344_v31 }
 0x15a   :  { %1354 = vst [vmem:[%s2322_s2] sm:$0xff] %v1336_v33  ;;  %v1339_v37 = vadd.f32 %v1338_v36, %v1290_v17  ;;  %v1391_v38 = vmul.f32 %v1336_v33, %v1336_v33 }
 0x15b   :  { %1357 = vst [vmem:[%s2322_s2 + $0x18] sm:$0xff] %v1347_v35  ;;  %v1394_v44 = vmul.f32 %v1347_v35, %v1347_v35 }
 0x15c   :  { %1355 = vst [vmem:[%s2322_s2 + $0x8] sm:$0xff] %v1339_v37  ;;  %v1381_v39 = vadd.f32 %v1339_v37, %v1336_v33  ;;  %v1392_v40 = vmul.f32 %v1339_v37, %v1339_v37 }
 0x15e   :  { %v1382_v42 = vadd.f32 %v1381_v39, %v1344_v31  ;;  %v1395_v43 = vadd.f32 %v1392_v40, %v1391_v38 }
 0x160   :  { %v1383_v45 = vadd.f32 %v1382_v42, %v1347_v35  ;;  %v1396_v46 = vadd.f32 %v1395_v43, %v1393_v41 }
 0x162   :  { %v1384_v47 = vrot.slane %v1383_v45, 4  ;;  %v1397_v48 = vadd.f32 %v1396_v46, %v1394_v44 }
 0x164   :  { %v1385_v49 = vadd.f32 %v1384_v47, %v1383_v45  ;;  %v1398_v50 = vrot.slane %v1397_v48, 4 }
 0x166   :  { %v1386_v51 = vrot.slane %v1385_v49, 2  ;;  %v1399_v52 = vadd.f32 %v1398_v50, %v1397_v48 }
 0x168   :  { %v1387_v53 = vadd.f32 %v1386_v51, %v1385_v49  ;;  %v1400_v54 = vrot.slane %v1399_v52, 2 }
 0x16a   :  { %v1388_v55 = vrot.slane %v1387_v53, 1  ;;  %v1401_v56 = vadd.f32 %v1400_v54, %v1399_v52 }
 0x16c   :  { %v1389_v57 = vadd.f32 %v1388_v55, %v1387_v53  ;;  %v1402_v58 = vrot.slane %v1401_v56, 1 }
 0x16e   :  { %1390 = vst [vmem:[%s2323_s3] sm:$0xff] %v1389_v57  ;;  %v1403_v59 = vadd.f32 %v1402_v58, %v1401_v56 }
 0x170   :  { %1404 = vst [vmem:[%s2324_s4] sm:$0xff] %v1403_v59 }

// kernel: mymodel_forward.15
= control target key start
LH: loop header
LB: loop body
LE: loop exit
PB: predicated region body
PF: predicated region fallthrough
CT: control target
= control target key end

     0   :  { %s1600_s1 = inlined_call_operand.vmem [shape: bf16[1152,128], index: 1, kind: input, shape index: {}]   ;;  %s1601_s0 = inlined_call_operand.vmem [shape: bf16[32,1152], index: 0, kind: input, shape index: {}]   ;;  %s1602_s2 = inlined_call_operand.vmem [shape: f32[32,128], index: 2, kind: output, shape index: {}]  }
   0x1   :  { %v1205_v0 = vld [vmem:[%s1600_s1 + $0x40] sm:$0xff]   ;;  %v1209_v4 = vld [vmem:[%s1600_s1 + $0x48] sm:$0xff]   ;;  %v1213_v8 = vld [vmem:[%s1600_s1 + $0x50] sm:$0xff]  }
   0x2   :  { %v1206_v1 = vld [vmem:[%s1600_s1 + $0xc0] sm:$0xff]   ;;  %1063 = vmatprep.subr.bf16.mxu0 %v1205_v0  ;;  %v1210_v5 = vld [vmem:[%s1600_s1 + $0xc8] sm:$0xff]   ;;  %v1214_v9 = vld [vmem:[%s1600_s1 + $0xd0] sm:$0xff]  }
   0x3   :  { %v1207_v2 = vld [vmem:[%s1600_s1] sm:$0xff]   ;;  %1091 = vmatprep.subr.bf16.mxu1 %v1206_v1  ;;  %v1211_v6 = vld [vmem:[%s1600_s1 + $0x8] sm:$0xff]   ;;  %v1215_v10 = vld [vmem:[%s1600_s1 + $0x10] sm:$0xff]  }
   0x4   :  { %v1208_v3 = vld [vmem:[%s1600_s1 + $0x80] sm:$0xff]   ;;  %1064 = vmatpush3.bf16.msra.mxu0 %v1207_v2  ;;  %v1212_v7 = vld [vmem:[%s1600_s1 + $0x88] sm:$0xff]   ;;  %v1216_v11 = vld [vmem:[%s1600_s1 + $0x90] sm:$0xff]  }
   0x5   :  { %1092 = vmatpush3.bf16.msra.mxu1 %v1208_v3  ;;  %1065 = vmatprep.subr.bf16.mxu0 %v1209_v4  ;;  %v1217_v12 = vld [vmem:[%s1600_s1 + $0x58] sm:$0xff]   ;;  %v1221_v16 = vld [vmem:[%s1600_s1 + $0x60] sm:$0xff]   ;;  %v1225_v20 = vld [vmem:[%s1600_s1 + $0x68] sm:$0xff]  }
   0x6   :  { %1093 = vmatprep.subr.bf16.mxu1 %v1210_v5  ;;  %v1218_v13 = vld [vmem:[%s1600_s1 + $0xd8] sm:$0xff]   ;;  %v1222_v17 = vld [vmem:[%s1600_s1 + $0xe0] sm:$0xff]   ;;  %v1226_v21 = vld [vmem:[%s1600_s1 + $0xe8] sm:$0xff]  }
   0x7   :  { %v1219_v14 = vld [vmem:[%s1600_s1 + $0x18] sm:$0xff]   ;;  %v1223_v18 = vld [vmem:[%s1600_s1 + $0x20] sm:$0xff]   ;;  %v1227_v22 = vld [vmem:[%s1600_s1 + $0x28] sm:$0xff]  }
   0x8   :  { %1066 = vmatpush3.bf16.msra.mxu0 %v1211_v6  ;;  %v1220_v15 = vld [vmem:[%s1600_s1 + $0x98] sm:$0xff]   ;;  %v1224_v19 = vld [vmem:[%s1600_s1 + $0xa0] sm:$0xff]   ;;  %v1228_v23 = vld [vmem:[%s1600_s1 + $0xa8] sm:$0xff]  }
   0x9   :  { %1094 = vmatpush3.bf16.msra.mxu1 %v1212_v7  ;;  %1067 = vmatprep.subr.bf16.mxu0 %v1213_v8  ;;  %v1229_v24 = vld [vmem:[%s1600_s1 + $0x70] sm:$0xff]   ;;  %v1233_v28 = vld [vmem:[%s1600_s1 + $0x78] sm:$0xff]   ;;  %v1237_v32 = vld [vmem:[%s1601_s0] ss:$36 sps:$4 sm:$0xff]  }
   0xa   :  { %1095 = vmatprep.subr.bf16.mxu1 %v1214_v9  ;;  %v1230_v25 = vld [vmem:[%s1600_s1 + $0xf0] sm:$0xff]   ;;  %v1234_v29 = vld [vmem:[%s1600_s1 + $0xf8] sm:$0xff]   ;;  %v1239_v33 = vld [vmem:[%s1601_s0 + $0x4] ss:$36 sps:$4 sm:$0xff]  }
   0xb   :  { %v1231_v26 = vld [vmem:[%s1600_s1 + $0x30] sm:$0xff]   ;;  %v1235_v30 = vld [vmem:[%s1600_s1 + $0x38] sm:$0xff]   ;;  %v1240_v34 = vld [vmem:[%s1601_s0 + $0x8] ss:$36 sps:$4 sm:$0xff]   ;;  %732 = vmatprep.mubr.bf16.mxu0 %v1239_v33 }
   0xc   :  { %1068 = vmatpush3.bf16.msra.mxu0 %v1215_v10  ;;  %v1232_v27 = vld [vmem:[%s1600_s1 + $0xb0] sm:$0xff]   ;;  %v1236_v31 = vld [vmem:[%s1600_s1 + $0xb8] sm:$0xff]   ;;  %v1243_v36 = vld [vmem:[%s1600_s1 + $0x140] sm:$0xff]  }
   0xd   :  { %1096 = vmatpush3.bf16.msra.mxu1 %v1216_v11  ;;  %1069 = vmatprep.subr.bf16.mxu0 %v1217_v12  ;;  %v1242_v35 = vld [vmem:[%s1601_s0 + $0xc] ss:$36 sps:$4 sm:$0xff]   ;;  %v1244_v37 = vld [vmem:[%s1600_s1 + $0x100] sm:$0xff]   ;;  %v1255_v48 = vld [vmem:[%s1600_s1 + $0x158] sm:$0xff]  }
   0xe   :  { %1097 = vmatprep.subr.bf16.mxu1 %v1218_v13  ;;  %781 = vmatprep.mubr.bf16.mxu1 %v1242_v35  ;;  %v1245_v38 = vld [vmem:[%s1600_s1 + $0x1c0] sm:$0xff]   ;;  %v1247_v40 = vld [vmem:[%s1600_s1 + $0x148] sm:$0xff]   ;;  %v1251_v44 = vld [vmem:[%s1600_s1 + $0x150] sm:$0xff]  }
   0xf   :  { %v1246_v39 = vld [vmem:[%s1600_s1 + $0x180] sm:$0xff]   ;;  %v1248_v41 = vld [vmem:[%s1600_s1 + $0x108] sm:$0xff]   ;;  %v1252_v45 = vld [vmem:[%s1600_s1 + $0x110] sm:$0xff]  }
  0x10   :  { %1070 = vmatpush3.bf16.msra.mxu0 %v1219_v14  ;;  %v1249_v42 = vld [vmem:[%s1600_s1 + $0x1c8] sm:$0xff]   ;;  %v1253_v46 = vld [vmem:[%s1600_s1 + $0x1d0] sm:$0xff]   ;;  %v1256_v49 = vld [vmem:[%s1600_s1 + $0x118] sm:$0xff]  }
  0x11   :  { %1098 = vmatpush3.bf16.msra.mxu1 %v1220_v15  ;;  %1071 = vmatprep.subr.bf16.mxu0 %v1221_v16  ;;  %v1250_v43 = vld [vmem:[%s1600_s1 + $0x188] sm:$0xff]   ;;  %v1254_v47 = vld [vmem:[%s1600_s1 + $0x190] sm:$0xff]   ;;  %v1257_v50 = vld [vmem:[%s1600_s1 + $0x1d8] sm:$0xff]  }
  0x12   :  { %1099 = vmatprep.subr.bf16.mxu1 %v1222_v17  ;;  %v1258_v51 = vld [vmem:[%s1600_s1 + $0x198] sm:$0xff]   ;;  %v1259_v52 = vld [vmem:[%s1600_s1 + $0x160] sm:$0xff]   ;;  %v1263_v56 = vld [vmem:[%s1600_s1 + $0x168] sm:$0xff]  }
  0x13   :  { %v1260_v53 = vld [vmem:[%s1600_s1 + $0x120] sm:$0xff]   ;;  %v1264_v57 = vld [vmem:[%s1601_s0 + $0x4c] ss:$36 sps:$4 sm:$0xff]   ;;  %v1266_v58 = vld [vmem:[%s1601_s0 + $0x54] ss:$36 sps:$4 sm:$0xff]  }
  0x14   :  { %1072 = vmatpush3.bf16.msra.mxu0 %v1223_v18  ;;  %v1261_v54 = vld [vmem:[%s1600_s1 + $0x1e0] sm:$0xff]   ;;  %v1268_v59 = vld [vmem:[%s1600_s1 + $0x128] sm:$0xff]   ;;  %v1270_v61 = vld [vmem:[%s1601_s0 + $0x50] ss:$36 sps:$4 sm:$0xff]  }
  0x15   :  { %1100 = vmatpush3.bf16.msra.mxu1 %v1224_v19  ;;  %1073 = vmatprep.subr.bf16.mxu0 %v1225_v20  ;;  %v1262_v55 = vld [vmem:[%s1600_s1 + $0x1a0] sm:$0xff]   ;;  %v1269_v60 = vld [vmem:[%s1601_s0 + $0x48] ss:$36 sps:$4 sm:$0xff]   ;;  %v1273_v0 = vld [vmem:[%s1600_s1 + $0x170] sm:$0xff]  }
  0x16   :  { %1101 = vmatprep.subr.bf16.mxu1 %v1226_v21  ;;  %v1271_v62 = vld [vmem:[%s1600_s1 + $0x1e8] sm:$0xff]   ;;  %v1274_v1 = vld [vmem:[%s1600_s1 + $0x130] sm:$0xff]   ;;  %v1277_v4 = vld [vmem:[%s1600_s1 + $0x178] sm:$0xff]  }
  0x17   :  { %v1272_v63 = vld [vmem:[%s1600_s1 + $0x1a8] sm:$0xff]   ;;  %v1275_v2 = vld [vmem:[%s1600_s1 + $0x1f0] sm:$0xff]   ;;  %v1278_v5 = vld [vmem:[%s1600_s1 + $0x138] sm:$0xff]  }
  0x18   :  { %1074 = vmatpush3.bf16.msra.mxu0 %v1227_v22  ;;  %v1276_v3 = vld [vmem:[%s1600_s1 + $0x1b0] sm:$0xff]   ;;  %v1279_v6 = vld [vmem:[%s1600_s1 + $0x1f8] sm:$0xff]   ;;  %v1284_v10 = vld [vmem:[%s1600_s1 + $0x200] sm:$0xff]  }
  0x19   :  { %1102 = vmatpush3.bf16.msra.mxu1 %v1228_v23  ;;  %1075 = vmatprep.subr.bf16.mxu0 %v1229_v24  ;;  %v1280_v7 = vld [vmem:[%s1601_s0 + $0x10] ss:$36 sps:$4 sm:$0xff]   ;;  %v1283_v9 = vld [vmem:[%s1600_s1 + $0x1b8] sm:$0xff]   ;;  %v1288_v13 = vld [vmem:[%s1600_s1 + $0x208] sm:$0xff]  }
  0x1a   :  { %1103 = vmatprep.subr.bf16.mxu1 %v1230_v25  ;;  %v1282_v8 = vld [vmem:[%s1601_s0 + $0x14] ss:$36 sps:$4 sm:$0xff]   ;;  %v1287_v12 = vld [vmem:[%s1601_s0 + $0x1c] ss:$36 sps:$4 sm:$0xff]   ;;  %v1293_v17 = vld [vmem:[%s1601_s0 + $0x64] ss:$36 sps:$4 sm:$0xff]  }
  0x1b   :  { %v1285_v11 = vld [vmem:[%s1601_s0 + $0x18] ss:$36 sps:$4 sm:$0xff]   ;;  %v1292_v16 = vld [vmem:[%s1600_s1 + $0x210] sm:$0xff]   ;;  %v1295_v18 = vld [vmem:[%s1601_s0 + $0x60] ss:$36 sps:$4 sm:$0xff]  }
  0x1c   :  { %1076 = vmatpush3.bf16.msra.mxu0 %v1231_v26  ;;  %v1289_v14 = vld [vmem:[%s1601_s0 + $0x5c] ss:$36 sps:$4 sm:$0xff]   ;;  %v1298_v22 = vld [vmem:[%s1600_s1 + $0x228] sm:$0xff]   ;;  %v1299_v23 = vld [vmem:[%s1600_s1 + $0x230] sm:$0xff]  }
  0x1d   :  { %1104 = vmatpush3.bf16.msra.mxu1 %v1232_v27  ;;  %1077 = vmatprep.subr.bf16.mxu0 %v1233_v28  ;;  %v1291_v15 = vld [vmem:[%s1601_s0 + $0x58] ss:$36 sps:$4 sm:$0xff]   ;;  %v1297_v20 = vld [vmem:[%s1600_s1 + $0x220] sm:$0xff]   ;;  %v1302_v25 = vld [vmem:[%s1601_s0 + $0x68] ss:$36 sps:$4 sm:$0xff]  }
  0x1e   :  { %1105 = vmatprep.subr.bf16.mxu1 %v1234_v29  ;;  %v1296_v19 = vld [vmem:[%s1600_s1 + $0x218] sm:$0xff]   ;;  %v1301_v21 = vld [vmem:[%s1601_s0 + $0x20] ss:$36 sps:$4 sm:$0xff]  }
  0x1f   :  { %v1300_v24 = vld [vmem:[%s1600_s1 + $0x238] sm:$0xff]  }
  0x20   :  { %1078 = vmatpush3.bf16.msra.mxu0 %v1235_v30 }
  0x21   :  { %1106 = vmatpush3.bf16.msra.mxu1 %v1236_v31  ;;  %1119 = vmatprep.subr.bf16.mxu0 %v1243_v36 }
  0x22   :  { %1147 = vmatprep.subr.bf16.mxu1 %v1245_v38 }
  0x23   :  { %733 = vmatmul.mubr.bf16.vlgmr.msra.gmra.mrb[0].mxu0 %v1237_v32 }
  0x24   :  { %782 = vmatmul.mubr.bf16.vlgmr.msra.gmra.mrb[0].mxu1 %v1240_v34  ;;  %1120 = vmatpush3.bf16.msra.mxu0 %v1244_v37 }
  0x25   :  { %1148 = vmatpush3.bf16.msra.mxu1 %v1246_v39  ;;  %1121 = vmatprep.subr.bf16.mxu0 %v1247_v40 }
  0x26   :  { %1149 = vmatprep.subr.bf16.mxu1 %v1249_v42  ;;  %740 = vmatprep.mubr.bf16.mxu0 %v1264_v57 }
  0x27   :  { %789 = vmatprep.mubr.bf16.mxu1 %v1266_v58 }
  0x28   :  { %1122 = vmatpush3.bf16.msra.mxu0 %v1248_v41 }
  0x29   :  { %1150 = vmatpush3.bf16.msra.mxu1 %v1250_v43  ;;  %1123 = vmatprep.subr.bf16.mxu0 %v1251_v44 }
  0x2a   :  { %1151 = vmatprep.subr.bf16.mxu1 %v1253_v46 }
  0x2b   :  { %741 = vmatmul.mubr.bf16.gmra.mrb[4].mxu0 %v1269_v60 }
  0x2c   :  { %1124 = vmatpush3.bf16.msra.mxu0 %v1252_v45  ;;  %790 = vmatmul.mubr.bf16.gmra.mrb[4].mxu1 %v1270_v61 }
  0x2d   :  { %1152 = vmatpush3.bf16.msra.mxu1 %v1254_v47  ;;  %1125 = vmatprep.subr.bf16.mxu0 %v1255_v48 }
  0x2e   :  { %1153 = vmatprep.subr.bf16.mxu1 %v1257_v50  ;;  %830 = vmatprep.mubr.bf16.mxu0 %v1282_v8 }
  0x2f   :  { %879 = vmatprep.mubr.bf16.mxu1 %v1287_v12 }
  0x30   :  { %1126 = vmatpush3.bf16.msra.mxu0 %v1256_v49 }
  0x31   :  { %1154 = vmatpush3.bf16.msra.mxu1 %v1258_v51  ;;  %1127 = vmatprep.subr.bf16.mxu0 %v1259_v52 }
  0x32   :  { %1155 = vmatprep.subr.bf16.mxu1 %v1261_v54 }
  0x34   :  { %1128 = vmatpush3.bf16.msra.mxu0 %v1260_v53 }
  0x35   :  { %1156 = vmatpush3.bf16.msra.mxu1 %v1262_v55  ;;  %1129 = vmatprep.subr.bf16.mxu0 %v1263_v56 }
  0x36   :  { %1157 = vmatprep.subr.bf16.mxu1 %v1271_v62 }
  0x38   :  { %1130 = vmatpush3.bf16.msra.mxu0 %v1268_v59 }
  0x39   :  { %1158 = vmatpush3.bf16.msra.mxu1 %v1272_v63  ;;  %1131 = vmatprep.subr.bf16.mxu0 %v1273_v0 }
  0x3a   :  { %1159 = vmatprep.subr.bf16.mxu1 %v1275_v2 }
  0x3c   :  { %1132 = vmatpush3.bf16.msra.mxu0 %v1274_v1 }
  0x3d   :  { %1160 = vmatpush3.bf16.msra.mxu1 %v1276_v3  ;;  %1133 = vmatprep.subr.bf16.mxu0 %v1277_v4 }
  0x3e   :  { %1161 = vmatprep.subr.bf16.mxu1 %v1279_v6 }
  0x40   :  { %1134 = vmatpush3.bf16.msra.mxu0 %v1278_v5 }
  0x41   :  { %1162 = vmatpush3.bf16.msra.mxu1 %v1283_v9  ;;  %1185 = vmatprep.subr.bf16.mxu0 %v1284_v10 }
  0x43   :  { %831 = vmatmul.mubr.bf16.vlgmr.msra.gmra.mrb[8].mxu0 %v1280_v7 }
  0x44   :  { %1186 = vmatpush3.bf16.msra.mxu0 %v1284_v10  ;;  %880 = vmatmul.mubr.bf16.vlgmr.msra.gmra.mrb[8].mxu1 %v1285_v11 }
  0x45   :  { %1187 = vmatprep.subr.bf16.mxu0 %v1288_v13  ;;  %838 = vmatprep.mubr.bf16.mxu0 %v1289_v14 }
  0x46   :  { %887 = vmatprep.mubr.bf16.mxu1 %v1293_v17 }
  0x48   :  { %1188 = vmatpush3.bf16.msra.mxu0 %v1288_v13 }
  0x49   :  { %1189 = vmatprep.subr.bf16.mxu0 %v1292_v16 }
  0x4b   :  { %839 = vmatmul.mubr.bf16.gmra.mrb[12].mxu0 %v1291_v15 }
  0x4c   :  { %1190 = vmatpush3.bf16.msra.mxu0 %v1292_v16  ;;  %888 = vmatmul.mubr.bf16.gmra.mrb[12].mxu1 %v1295_v18 }
  0x4d   :  { %1191 = vmatprep.subr.bf16.mxu0 %v1296_v19  ;;  %1201 = vmatprep.mubr.bf16.mxu0 %v1301_v21 }
  0x50   :  { %1192 = vmatpush3.bf16.msra.mxu0 %v1296_v19 }
  0x51   :  { %1193 = vmatprep.subr.bf16.mxu0 %v1297_v20 }
  0x54   :  { %1194 = vmatpush3.bf16.msra.mxu0 %v1297_v20 }
  0x55   :  { %1195 = vmatprep.subr.bf16.mxu0 %v1298_v22 }
  0x58   :  { %1196 = vmatpush3.bf16.msra.mxu0 %v1298_v22 }
  0x59   :  { %1197 = vmatprep.subr.bf16.mxu0 %v1299_v23 }
  0x5c   :  { %1198 = vmatpush3.bf16.msra.mxu0 %v1299_v23 }
  0x5d   :  { %1199 = vmatprep.subr.bf16.mxu0 %v1300_v24 }
  0x60   :  { %1200 = vmatpush3.bf16.msra.mxu0 %v1300_v24 }
  0x63   :  { %1202 = vmatmul.mubr.bf16.vlgmr.msra.gmra.mrb[16].mxu0 %v1302_v25 }
  0xf6   :  { %v1079_v26 = vpop.f32.mrb[0].mxu0 }
  0xf7   :  { %v1107_v27 = vpop.f32.mrb[0].mxu1  ;;  %v1080_v28 = vpop.f32.mrb[1].mxu0 }
  0xf8   :  { %v1081_v29 = vadd.f32 %v1080_v28, %v1079_v26  ;;  %v1108_v30 = vpop.f32.mrb[1].mxu1  ;;  %v1082_v31 = vpop.f32.mrb[2].mxu0 }
  0xf9   :  { %v1109_v32 = vadd.f32 %v1108_v30, %v1107_v27  ;;  %v1110_v33 = vpop.f32.mrb[2].mxu1  ;;  %v1083_v34 = vpop.f32.mrb[3].mxu0 }
  0xfa   :  { %v1084_v35 = vadd.f32 %v1083_v34, %v1082_v31  ;;  %v1111_v36 = vpop.f32.mrb[3].mxu1 }
  0xfb   :  { %v784_v37 = vadd.f32 %v1109_v32, %v1081_v29  ;;  %v1112_v38 = vadd.f32 %v1111_v36, %v1110_v33 }
  0xfd   :  { %v787_v39 = vadd.f32 %v1112_v38, %v1084_v35 }
  0xfe   :  { %v1085_v40 = vpop.f32.mrb[4].mxu0 }
  0xff   :  { %v1113_v41 = vpop.f32.mrb[4].mxu1  ;;  %v1086_v42 = vpop.f32.mrb[5].mxu0 }
 0x100   :  { %v1114_v43 = vpop.f32.mrb[5].mxu1  ;;  %v1087_v44 = vadd.f32 %v1086_v42, %v1085_v40  ;;  %v1088_v46 = vpop.f32.mrb[6].mxu0 }
 0x101   :  { %v1115_v45 = vadd.f32 %v1114_v43, %v1113_v41  ;;  %v1116_v47 = vpop.f32.mrb[6].mxu1  ;;  %v1089_v48 = vpop.f32.mrb[7].mxu0 }
 0x102   :  { %v1117_v49 = vpop.f32.mrb[7].mxu1  ;;  %v1090_v51 = vadd.f32 %v1089_v48, %v1088_v46 }
 0x103   :  { %v792_v50 = vadd.f32 %v1115_v45, %v1087_v44  ;;  %v1118_v52 = vadd.f32 %v1117_v49, %v1116_v47 }
 0x105   :  { %v795_v53 = vadd.f32 %v1118_v52, %v1090_v51 }
 0x116   :  { %v1135_v54 = vpop.f32.mrb[8].mxu0 }
 0x117   :  { %v1136_v55 = vpop.f32.mrb[9].mxu0  ;;  %v1163_v58 = vpop.f32.mrb[8].mxu1 }
 0x118   :  { %v1137_v56 = vadd.f32 %v1136_v55, %v1135_v54  ;;  %v1138_v57 = vpop.f32.mrb[10].mxu0  ;;  %v1164_v62 = vpop.f32.mrb[9].mxu1 }
 0x119   :  { %v1139_v59 = vpop.f32.mrb[11].mxu0  ;;  %v1165_v63 = vadd.f32 %v1164_v62, %v1163_v58  ;;  %v1166_v0 = vpop.f32.mrb[10].mxu1 }
 0x11a   :  { %v833_v60 = vadd.f32 %v1137_v56, %v784_v37  ;;  %v1140_v61 = vadd.f32 %v1139_v59, %v1138_v57  ;;  %v1167_v2 = vpop.f32.mrb[11].mxu1 }
 0x11b   :  { %v1168_v3 = vadd.f32 %v1167_v2, %v1166_v0 }
 0x11c   :  { %v836_v1 = vadd.f32 %v1140_v61, %v787_v39  ;;  %v882_v4 = vadd.f32 %v1165_v63, %v833_v60 }
 0x11e   :  { %v1141_v5 = vpop.f32.mrb[12].mxu0  ;;  %v885_v7 = vadd.f32 %v1168_v3, %v836_v1 }
 0x11f   :  { %v1142_v6 = vpop.f32.mrb[13].mxu0  ;;  %v1169_v10 = vpop.f32.mrb[12].mxu1 }
 0x120   :  { %v1143_v8 = vadd.f32 %v1142_v6, %v1141_v5  ;;  %v1144_v9 = vpop.f32.mrb[14].mxu0  ;;  %v1170_v14 = vpop.f32.mrb[13].mxu1 }
 0x121   :  { %v1145_v11 = vpop.f32.mrb[15].mxu0  ;;  %v1171_v15 = vadd.f32 %v1170_v14, %v1169_v10  ;;  %v1172_v16 = vpop.f32.mrb[14].mxu1 }
 0x122   :  { %v841_v12 = vadd.f32 %v1143_v8, %v792_v50  ;;  %v1146_v13 = vadd.f32 %v1145_v11, %v1144_v9  ;;  %v1173_v18 = vpop.f32.mrb[15].mxu1 }
 0x123   :  { %v1174_v19 = vadd.f32 %v1173_v18, %v1172_v16 }
 0x124   :  { %v844_v17 = vadd.f32 %v1146_v13, %v795_v53  ;;  %v890_v20 = vadd.f32 %v1171_v15, %v841_v12 }
 0x126   :  { %v893_v21 = vadd.f32 %v1174_v19, %v844_v17 }
 0x136   :  { %v1203_v22 = vpop.f32.mrb[16].mxu0 }
 0x137   :  { %v939_v23 = vadd.f32 %v1203_v22, %v890_v20  ;;  %v930_v24 = vpop.f32.mrb[17].mxu0 }
 0x138   :  { %v931_v25 = vadd.f32 %v930_v24, %v882_v4  ;;  %v1204_v26 = vpop.f32.mrb[18].mxu0 }
 0x139   :  { %951 = vst [vmem:[%s1602_s2 + $0x10] sm:$0xff] %v939_v23  ;;  %v942_v27 = vadd.f32 %v1204_v26, %v893_v21  ;;  %v933_v28 = vpop.f32.mrb[19].mxu0 }
 0x13a   :  { %949 = vst [vmem:[%s1602_s2] sm:$0xff] %v931_v25  ;;  %v934_v29 = vadd.f32 %v933_v28, %v885_v7 }
 0x13b   :  { %952 = vst [vmem:[%s1602_s2 + $0x18] sm:$0xff] %v942_v27 }
 0x13c   :  { %950 = vst [vmem:[%s1602_s2 + $0x8] sm:$0xff] %v934_v29 }

// kernel: mymodel_forward.16
= control target key start
LH: loop header
LB: loop body
LE: loop exit
PB: predicated region body
PF: predicated region fallthrough
CT: control target
= control target key end

     0   :  { %v34_v0 = vlaneseq  ;;  %s484_s1 = inlined_call_operand.vmem [shape: f32[1,2048], index: 1, kind: input, shape index: {}]   ;;  %s485_s2 = inlined_call_operand.vmem [shape: f32[1,2048], index: 2, kind: input, shape index: {}]   ;;  %s486_s0 = inlined_call_operand.vmem [shape: f32[8,2048], index: 0, kind: input, shape index: {}]   ;;  %s487_s3 = inlined_call_operand.vmem [shape: bf16[8,2048], index: 3, kind: output, shape index: {}]  }
   0x1   :  { %v30_v2 = vld [vmem:[%s484_s1] sm:$0xff]  ;;  %v15_v9 = vld [vmem:[%s486_s0 + $0x8] sm:$0xff]  ;;  %v16_v18 = vld [vmem:[%s486_s0 + $0x10] sm:$0xff] }
   0x2   :  { %v35_v1 = vshrl.u32 %v34_v0, 7  ;;  %v348_v3 = vld [vmem:[%s485_s2] sm:$0xff]  ;;  %v17_v19 = vld [vmem:[%s486_s0 + $0x18] sm:$0xff]  ;;  %v19_v25 = vld [vmem:[%s486_s0 + $0x28] sm:$0xff] }
   0x3   :  { %v14_v8 = vld [vmem:[%s486_s0] sm:$0xff]  ;;  %v20_v38 = vld [vmem:[%s486_s0 + $0x30] sm:$0xff]  ;;  %v21_v39 = vld [vmem:[%s486_s0 + $0x38] sm:$0xff] }
   0x4   :  { %v350_v4 = vsub.s32 0, %v35_v1  ;;  %v352_v5 = vsub.s32 1, %v35_v1  ;;  %v354_v6 = vsub.s32 2, %v35_v1  ;;  %v356_v7 = vsub.s32 3, %v35_v1  ;;  %v18_v24 = vld [vmem:[%s486_s0 + $0x20] sm:$0xff]  ;;  %v31_v44 = vld [vmem:[%s484_s1 + $0x8] sm:$0xff] }
   0x5   :  { %v364_v10 = vsub.s32 4, %v35_v1  ;;  %v366_v11 = vsub.s32 5, %v35_v1  ;;  %v368_v12 = vsub.s32 6, %v35_v1  ;;  %v370_v13 = vsub.s32 7, %v35_v1  ;;  %v131_v45 = vld [vmem:[%s485_s2 + $0x8] sm:$0xff]  ;;  %v22_v54 = vld [vmem:[%s486_s0 + $0x40] sm:$0xff] }
   0x6   :  { %v37_v14 = vrot.slane %v30_v2, %v350_v4  ;;  %v41_v15 = vrot.slane %v30_v2, %v352_v5  ;;  %v137_v16 = vrot.slane %v348_v3, %v350_v4  ;;  %v141_v17 = vrot.slane %v348_v3, %v352_v5  ;;  %v23_v55 = vld [vmem:[%s486_s0 + $0x48] sm:$0xff]  ;;  %v24_v60 = vld [vmem:[%s486_s0 + $0x50] sm:$0xff]  ;;  %v25_v0 = vld [vmem:[%s486_s0 + $0x58] sm:$0xff] }
   0x7   :  { %v45_v20 = vrot.slane %v30_v2, %v354_v6  ;;  %v49_v21 = vrot.slane %v30_v2, %v356_v7  ;;  %v145_v22 = vrot.slane %v348_v3, %v354_v6  ;;  %v149_v23 = vrot.slane %v348_v3, %v356_v7 }
   0x8   :  { %v114_v26 = vmul.f32 %v37_v14, %v14_v8  ;;  %v115_v27 = vmul.f32 %v41_v15, %v15_v9  ;;  %v53_v28 = vrot.slane %v30_v2, %v364_v10  ;;  %v57_v29 = vrot.slane %v30_v2, %v366_v11 }
   0x9   :  { %v116_v30 = vmul.f32 %v45_v20, %v16_v18  ;;  %v117_v31 = vmul.f32 %v49_v21, %v17_v19  ;;  %v153_v32 = vrot.slane %v348_v3, %v364_v10  ;;  %v157_v33 = vrot.slane %v348_v3, %v366_v11 }
   0xa   :  { %v214_v34 = vadd.f32 %v137_v16, %v114_v26  ;;  %v215_v35 = vadd.f32 %v141_v17, %v115_v27  ;;  %v118_v36 = vmul.f32 %v53_v28, %v18_v24  ;;  %v119_v37 = vmul.f32 %v57_v29, %v19_v25  ;;  %v27_v16 = vld [vmem:[%s486_s0 + $0x68] sm:$0xff]  ;;  %v28_v24 = vld [vmem:[%s486_s0 + $0x70] sm:$0xff]  ;;  %v29_v28 = vld [vmem:[%s486_s0 + $0x78] sm:$0xff] }
   0xb   :  { %v216_v40 = vadd.f32 %v145_v22, %v116_v30  ;;  %v217_v41 = vadd.f32 %v149_v23, %v117_v31  ;;  %v61_v42 = vrot.slane %v30_v2, %v368_v12  ;;  %v65_v43 = vrot.slane %v30_v2, %v370_v13 }
   0xc   :  { %v314_v46 = vpack.c.bf16 %v215_v35, %v214_v34  ;;  %v218_v47 = vadd.f32 %v153_v32, %v118_v36  ;;  %v219_v48 = vadd.f32 %v157_v33, %v119_v37  ;;  %v161_v49 = vrot.slane %v348_v3, %v368_v12 }
   0xd   :  { %v315_v50 = vpack.c.bf16 %v217_v41, %v216_v40  ;;  %v120_v51 = vmul.f32 %v61_v42, %v20_v38  ;;  %v121_v52 = vmul.f32 %v65_v43, %v21_v39  ;;  %v165_v53 = vrot.slane %v348_v3, %v370_v13 }
   0xe   :  { %294 = vst [vmem:[%s487_s3] sm:$0xff] %v314_v46  ;;  %v316_v56 = vpack.c.bf16 %v219_v48, %v218_v47  ;;  %v69_v57 = vrot.slane %v31_v44, %v350_v4  ;;  %v73_v58 = vrot.slane %v31_v44, %v352_v5  ;;  %v169_v59 = vrot.slane %v131_v45, %v350_v4 }
   0xf   :  { %295 = vst [vmem:[%s487_s3 + $0x8] sm:$0xff] %v315_v50  ;;  %v220_v61 = vadd.f32 %v161_v49, %v120_v51  ;;  %v221_v62 = vadd.f32 %v165_v53, %v121_v52  ;;  %v173_v63 = vrot.slane %v131_v45, %v352_v5  ;;  %v77_v1 = vrot.slane %v31_v44, %v354_v6  ;;  %v26_v5 = vld [vmem:[%s486_s0 + $0x60] sm:$0xff] }
  0x10   :  { %296 = vst [vmem:[%s487_s3 + $0x10] sm:$0xff] %v316_v56  ;;  %v122_v2 = vmul.f32 %v69_v57, %v22_v54  ;;  %v123_v3 = vmul.f32 %v73_v58, %v23_v55  ;;  %v81_v4 = vrot.slane %v31_v44, %v356_v7  ;;  %v177_v8 = vrot.slane %v131_v45, %v354_v6 }
  0x11   :  { %v317_v9 = vpack.c.bf16 %v221_v62, %v220_v61  ;;  %v124_v14 = vmul.f32 %v77_v1, %v24_v60  ;;  %v181_v15 = vrot.slane %v131_v45, %v356_v7  ;;  %v85_v17 = vrot.slane %v31_v44, %v364_v10 }
  0x12   :  { %v222_v18 = vadd.f32 %v169_v59, %v122_v2  ;;  %v223_v19 = vadd.f32 %v173_v63, %v123_v3  ;;  %v125_v20 = vmul.f32 %v81_v4, %v25_v0  ;;  %v89_v21 = vrot.slane %v31_v44, %v366_v11 }
  0x13   :  { %297 = vst [vmem:[%s487_s3 + $0x18] sm:$0xff] %v317_v9  ;;  %v224_v6 = vadd.f32 %v177_v8, %v124_v14  ;;  %v126_v22 = vmul.f32 %v85_v17, %v26_v5  ;;  %v185_v23 = vrot.slane %v131_v45, %v364_v10  ;;  %v189_v7 = vrot.slane %v131_v45, %v366_v11 }
  0x14   :  { %v318_v25 = vpack.c.bf16 %v223_v19, %v222_v18  ;;  %v225_v26 = vadd.f32 %v181_v15, %v125_v20  ;;  %v127_v27 = vmul.f32 %v89_v21, %v27_v16  ;;  %v93_v29 = vrot.slane %v31_v44, %v368_v12 }
  0x15   :  { %v226_v30 = vadd.f32 %v185_v23, %v126_v22  ;;  %v97_v31 = vrot.slane %v31_v44, %v370_v13  ;;  %v193_v10 = vrot.slane %v131_v45, %v368_v12  ;;  %v197_v11 = vrot.slane %v131_v45, %v370_v13 }
  0x16   :  { %298 = vst [vmem:[%s487_s3 + $0x20] sm:$0xff] %v318_v25  ;;  %v319_v32 = vpack.c.bf16 %v225_v26, %v224_v6  ;;  %v227_v33 = vadd.f32 %v189_v7, %v127_v27  ;;  %v128_v34 = vmul.f32 %v93_v29, %v28_v24 }
  0x17   :  { %v129_v35 = vmul.f32 %v97_v31, %v29_v28 }
  0x18   :  { %299 = vst [vmem:[%s487_s3 + $0x28] sm:$0xff] %v319_v32  ;;  %v320_v36 = vpack.c.bf16 %v227_v33, %v226_v30  ;;  %v228_v37 = vadd.f32 %v193_v10, %v128_v34 }
  0x19   :  { %v229_v38 = vadd.f32 %v197_v11, %v129_v35 }
  0x1a   :  { %300 = vst [vmem:[%s487_s3 + $0x30] sm:$0xff] %v320_v36 }
  0x1b   :  { %v321_v12 = vpack.c.bf16 %v229_v38, %v228_v37 }
  0x1d   :  { %301 = vst [vmem:[%s487_s3 + $0x38] sm:$0xff] %v321_v12 }

// kernel: mymodel_forward.17
= control target key start
LH: loop header
LB: loop body
LE: loop exit
PB: predicated region body
PF: predicated region fallthrough
CT: control target
= control target key end

     0   :  { %s2351_s1 = inlined_call_operand.vmem [shape: bf16[2048,128], index: 1, kind: input, shape index: {}]   ;;  %s2352_s0 = inlined_call_operand.vmem [shape: bf16[8,2048], index: 0, kind: input, shape index: {}]   ;;  %s2353_s2 = inlined_call_operand.vmem [shape: f32[1,128], index: 2, kind: input, shape index: {}]   ;;  %s2354_s3 = inlined_call_operand.vmem [shape: f32[8,128], index: 3, kind: output, shape index: {}]  }
   0x1   :  { %v1773_v0 = vld [vmem:[%s2351_s1 + $0x40] sm:$0xff]   ;;  %v1777_v4 = vld [vmem:[%s2351_s1 + $0x48] sm:$0xff]   ;;  %v1781_v8 = vld [vmem:[%s2351_s1 + $0x50] sm:$0xff]  }
   0x2   :  { %v1774_v1 = vld [vmem:[%s2351_s1 + $0xc0] sm:$0xff]   ;;  %1597 = vmatprep.subr.bf16.mxu0 %v1773_v0  ;;  %v1778_v5 = vld [vmem:[%s2351_s1 + $0xc8] sm:$0xff]   ;;  %v1782_v9 = vld [vmem:[%s2351_s1 + $0xd0] sm:$0xff]  }
   0x3   :  { %v1775_v2 = vld [vmem:[%s2351_s1] sm:$0xff]   ;;  %1619 = vmatprep.subr.bf16.mxu1 %v1774_v1  ;;  %v1779_v6 = vld [vmem:[%s2351_s1 + $0x8] sm:$0xff]   ;;  %v1783_v10 = vld [vmem:[%s2351_s1 + $0x10] sm:$0xff]  }
   0x4   :  { %v1776_v3 = vld [vmem:[%s2351_s1 + $0x80] sm:$0xff]   ;;  %1598 = vmatpush3.bf16.msra.mxu0 %v1775_v2  ;;  %v1780_v7 = vld [vmem:[%s2351_s1 + $0x88] sm:$0xff]   ;;  %v1784_v11 = vld [vmem:[%s2351_s1 + $0x90] sm:$0xff]  }
   0x5   :  { %1620 = vmatpush3.bf16.msra.mxu1 %v1776_v3  ;;  %1599 = vmatprep.subr.bf16.mxu0 %v1777_v4  ;;  %v1785_v12 = vld [vmem:[%s2351_s1 + $0x58] sm:$0xff]   ;;  %v1789_v16 = vld [vmem:[%s2351_s1 + $0x60] sm:$0xff]   ;;  %v1793_v20 = vld [vmem:[%s2351_s1 + $0x68] sm:$0xff]  }
   0x6   :  { %1621 = vmatprep.subr.bf16.mxu1 %v1778_v5  ;;  %v1786_v13 = vld [vmem:[%s2351_s1 + $0xd8] sm:$0xff]   ;;  %v1790_v17 = vld [vmem:[%s2351_s1 + $0xe0] sm:$0xff]   ;;  %v1794_v21 = vld [vmem:[%s2351_s1 + $0xe8] sm:$0xff]  }
   0x7   :  { %v1787_v14 = vld [vmem:[%s2351_s1 + $0x18] sm:$0xff]   ;;  %v1791_v18 = vld [vmem:[%s2351_s1 + $0x20] sm:$0xff]   ;;  %v1795_v22 = vld [vmem:[%s2351_s1 + $0x28] sm:$0xff]  }
   0x8   :  { %1600 = vmatpush3.bf16.msra.mxu0 %v1779_v6  ;;  %v1788_v15 = vld [vmem:[%s2351_s1 + $0x98] sm:$0xff]   ;;  %v1792_v19 = vld [vmem:[%s2351_s1 + $0xa0] sm:$0xff]   ;;  %v1796_v23 = vld [vmem:[%s2351_s1 + $0xa8] sm:$0xff]  }
   0x9   :  { %1622 = vmatpush3.bf16.msra.mxu1 %v1780_v7  ;;  %1601 = vmatprep.subr.bf16.mxu0 %v1781_v8  ;;  %v1797_v24 = vld [vmem:[%s2351_s1 + $0x70] sm:$0xff]   ;;  %v1801_v28 = vld [vmem:[%s2351_s1 + $0x78] sm:$0xff]   ;;  %v15_v32 = vld [vmem:[%s2352_s0] sm:$0xff] }
   0xa   :  { %1623 = vmatprep.subr.bf16.mxu1 %v1782_v9  ;;  %v1798_v25 = vld [vmem:[%s2351_s1 + $0xf0] sm:$0xff]   ;;  %v1802_v29 = vld [vmem:[%s2351_s1 + $0xf8] sm:$0xff]   ;;  %v16_v33 = vld [vmem:[%s2352_s0 + $0x8] sm:$0xff]  ;;  %v1452_v34 = vcombine.low %v15_v32, %v15_v32  ;;  %v1453_v35 = vcombine.high %v15_v32, %v15_v32 }
   0xb   :  { %v1799_v26 = vld [vmem:[%s2351_s1 + $0x30] sm:$0xff]   ;;  %v1803_v30 = vld [vmem:[%s2351_s1 + $0x38] sm:$0xff]   ;;  %v1454_v36 = vcombine.low %v16_v33, %v16_v33  ;;  %v1455_v37 = vcombine.high %v16_v33, %v16_v33  ;;  %v1809_v38 = vld [vmem:[%s2351_s1 + $0x140] sm:$0xff]  }
   0xc   :  { %1602 = vmatpush3.bf16.msra.mxu0 %v1783_v10  ;;  %v1800_v27 = vld [vmem:[%s2351_s1 + $0xb0] sm:$0xff]   ;;  %v1804_v31 = vld [vmem:[%s2351_s1 + $0xb8] sm:$0xff]   ;;  %v1810_v39 = vld [vmem:[%s2351_s1 + $0x1c0] sm:$0xff]   ;;  %1135 = vmatprep.mubr.bf16.mxu0 %v1453_v35 }
   0xd   :  { %1624 = vmatpush3.bf16.msra.mxu1 %v1784_v11  ;;  %1603 = vmatprep.subr.bf16.mxu0 %v1785_v12  ;;  %v1811_v40 = vld [vmem:[%s2351_s1 + $0x100] sm:$0xff]   ;;  %v1813_v42 = vld [vmem:[%s2351_s1 + $0x148] sm:$0xff]   ;;  %v1817_v46 = vld [vmem:[%s2351_s1 + $0x150] sm:$0xff]  }
   0xe   :  { %1625 = vmatprep.subr.bf16.mxu1 %v1786_v13  ;;  %1175 = vmatprep.mubr.bf16.mxu1 %v1455_v37  ;;  %v1812_v41 = vld [vmem:[%s2351_s1 + $0x180] sm:$0xff]   ;;  %v1814_v43 = vld [vmem:[%s2351_s1 + $0x1c8] sm:$0xff]   ;;  %v1818_v47 = vld [vmem:[%s2351_s1 + $0x1d0] sm:$0xff]  }
   0xf   :  { %v1815_v44 = vld [vmem:[%s2351_s1 + $0x108] sm:$0xff]   ;;  %v1819_v48 = vld [vmem:[%s2351_s1 + $0x110] sm:$0xff]   ;;  %v1821_v50 = vld [vmem:[%s2351_s1 + $0x158] sm:$0xff]  }
  0x10   :  { %1604 = vmatpush3.bf16.msra.mxu0 %v1787_v14  ;;  %v1816_v45 = vld [vmem:[%s2351_s1 + $0x188] sm:$0xff]   ;;  %v1820_v49 = vld [vmem:[%s2351_s1 + $0x190] sm:$0xff]   ;;  %v1822_v51 = vld [vmem:[%s2351_s1 + $0x1d8] sm:$0xff]  }
  0x11   :  { %1626 = vmatpush3.bf16.msra.mxu1 %v1788_v15  ;;  %1605 = vmatprep.subr.bf16.mxu0 %v1789_v16  ;;  %v1823_v52 = vld [vmem:[%s2351_s1 + $0x118] sm:$0xff]   ;;  %v1825_v54 = vld [vmem:[%s2351_s1 + $0x160] sm:$0xff]   ;;  %v1829_v58 = vld [vmem:[%s2351_s1 + $0x168] sm:$0xff]  }
  0x12   :  { %1627 = vmatprep.subr.bf16.mxu1 %v1790_v17  ;;  %v1824_v53 = vld [vmem:[%s2351_s1 + $0x198] sm:$0xff]   ;;  %v1826_v55 = vld [vmem:[%s2351_s1 + $0x1e0] sm:$0xff]   ;;  %v1830_v59 = vld [vmem:[%s2351_s1 + $0x1e8] sm:$0xff]  }
  0x13   :  { %v1827_v56 = vld [vmem:[%s2351_s1 + $0x120] sm:$0xff]   ;;  %v1831_v60 = vld [vmem:[%s2351_s1 + $0x128] sm:$0xff]   ;;  %v1833_v62 = vld [vmem:[%s2351_s1 + $0x170] sm:$0xff]  }
  0x14   :  { %1606 = vmatpush3.bf16.msra.mxu0 %v1791_v18  ;;  %v1828_v57 = vld [vmem:[%s2351_s1 + $0x1a0] sm:$0xff]   ;;  %v1832_v61 = vld [vmem:[%s2351_s1 + $0x1a8] sm:$0xff]   ;;  %v1834_v63 = vld [vmem:[%s2351_s1 + $0x1f0] sm:$0xff]  }
  0x15   :  { %1628 = vmatpush3.bf16.msra.mxu1 %v1792_v19  ;;  %1607 = vmatprep.subr.bf16.mxu0 %v1793_v20  ;;  %v1835_v0 = vld [vmem:[%s2351_s1 + $0x130] sm:$0xff]   ;;  %v1837_v2 = vld [vmem:[%s2351_s1 + $0x178] sm:$0xff]   ;;  %v1845_v12 = vld [vmem:[%s2351_s1 + $0x240] sm:$0xff]  }
  0x16   :  { %1629 = vmatprep.subr.bf16.mxu1 %v1794_v21  ;;  %v1836_v1 = vld [vmem:[%s2351_s1 + $0x1b0] sm:$0xff]   ;;  %v1838_v3 = vld [vmem:[%s2351_s1 + $0x1f8] sm:$0xff]   ;;  %v1846_v13 = vld [vmem:[%s2351_s1 + $0x2c0] sm:$0xff]  }
  0x17   :  { %v1839_v4 = vld [vmem:[%s2351_s1 + $0x138] sm:$0xff]   ;;  %v17_v6 = vld [vmem:[%s2352_s0 + $0x10] sm:$0xff]  ;;  %v1847_v14 = vld [vmem:[%s2351_s1 + $0x200] sm:$0xff]  }
  0x18   :  { %1608 = vmatpush3.bf16.msra.mxu0 %v1795_v22  ;;  %v1840_v5 = vld [vmem:[%s2351_s1 + $0x1b8] sm:$0xff]   ;;  %v1456_v7 = vcombine.low %v17_v6, %v17_v6  ;;  %v1457_v8 = vcombine.high %v17_v6, %v17_v6  ;;  %v1848_v15 = vld [vmem:[%s2351_s1 + $0x280] sm:$0xff]   ;;  %v1849_v16 = vld [vmem:[%s2351_s1 + $0x248] sm:$0xff]  }
  0x19   :  { %1630 = vmatpush3.bf16.msra.mxu1 %v1796_v23  ;;  %1609 = vmatprep.subr.bf16.mxu0 %v1797_v24  ;;  %v18_v9 = vld [vmem:[%s2352_s0 + $0x18] sm:$0xff]  ;;  %v1850_v17 = vld [vmem:[%s2351_s1 + $0x2c8] sm:$0xff]   ;;  %v1853_v20 = vld [vmem:[%s2351_s1 + $0x250] sm:$0xff]  }
  0x1a   :  { %1631 = vmatprep.subr.bf16.mxu1 %v1798_v25  ;;  %v1458_v10 = vcombine.low %v18_v9, %v18_v9  ;;  %v1459_v11 = vcombine.high %v18_v9, %v18_v9  ;;  %v1851_v18 = vld [vmem:[%s2351_s1 + $0x208] sm:$0xff]   ;;  %v1854_v21 = vld [vmem:[%s2351_s1 + $0x2d0] sm:$0xff]   ;;  %v1857_v24 = vld [vmem:[%s2351_s1 + $0x258] sm:$0xff]  }
  0x1b   :  { %v1852_v19 = vld [vmem:[%s2351_s1 + $0x288] sm:$0xff]   ;;  %v1855_v22 = vld [vmem:[%s2351_s1 + $0x210] sm:$0xff]   ;;  %v1858_v25 = vld [vmem:[%s2351_s1 + $0x2d8] sm:$0xff]  }
  0x1c   :  { %1610 = vmatpush3.bf16.msra.mxu0 %v1799_v26  ;;  %v1856_v23 = vld [vmem:[%s2351_s1 + $0x290] sm:$0xff]   ;;  %v1859_v26 = vld [vmem:[%s2351_s1 + $0x218] sm:$0xff]   ;;  %v1865_v32 = vld [vmem:[%s2351_s1 + $0x268] sm:$0xff]  }
  0x1d   :  { %1632 = vmatpush3.bf16.msra.mxu1 %v1800_v27  ;;  %1611 = vmatprep.subr.bf16.mxu0 %v1801_v28  ;;  %v1860_v27 = vld [vmem:[%s2351_s1 + $0x298] sm:$0xff]   ;;  %v1861_v28 = vld [vmem:[%s2351_s1 + $0x260] sm:$0xff]   ;;  %v1866_v33 = vld [vmem:[%s2351_s1 + $0x2e8] sm:$0xff]  }
  0x1e   :  { %1633 = vmatprep.subr.bf16.mxu1 %v1802_v29  ;;  %v1862_v29 = vld [vmem:[%s2351_s1 + $0x2e0] sm:$0xff]   ;;  %v1868_v35 = vld [vmem:[%s2351_s1 + $0x2a8] sm:$0xff]   ;;  %v1870_v37 = vld [vmem:[%s2351_s1 + $0x2f0] sm:$0xff]  }
  0x1f   :  { %v1901_v6 = vld [vmem:[%s2351_s1 + $0x368] sm:$0xff]  }
  0x20   :  { %1612 = vmatpush3.bf16.msra.mxu0 %v1803_v30  ;;  %v1863_v30 = vld [vmem:[%s2351_s1 + $0x220] sm:$0xff]   ;;  %v1904_v9 = vld [vmem:[%s2351_s1 + $0x3a8] sm:$0xff]  }
  0x21   :  { %1634 = vmatpush3.bf16.msra.mxu1 %v1804_v31  ;;  %1641 = vmatprep.subr.bf16.mxu0 %v1809_v38  ;;  %v1864_v31 = vld [vmem:[%s2351_s1 + $0x2a0] sm:$0xff]   ;;  %v1871_v38 = vld [vmem:[%s2351_s1 + $0x230] sm:$0xff]  }
  0x22   :  { %1663 = vmatprep.subr.bf16.mxu1 %v1810_v39  ;;  %v1872_v39 = vld [vmem:[%s2351_s1 + $0x2b0] sm:$0xff]  }
  0x23   :  { %1136 = vmatmul.mubr.bf16.vlgmr.msra.gmra.mrb[0].mxu0 %v1452_v34  ;;  %v1867_v34 = vld [vmem:[%s2351_s1 + $0x228] sm:$0xff]  }
  0x24   :  { %1176 = vmatmul.mubr.bf16.vlgmr.msra.gmra.mrb[0].mxu1 %v1454_v36  ;;  %1642 = vmatpush3.bf16.msra.mxu0 %v1811_v40  ;;  %v1869_v36 = vld [vmem:[%s2351_s1 + $0x270] sm:$0xff]   ;;  %v1873_v40 = vld [vmem:[%s2351_s1 + $0x278] sm:$0xff]  }
  0x25   :  { %1664 = vmatpush3.bf16.msra.mxu1 %v1812_v41  ;;  %1643 = vmatprep.subr.bf16.mxu0 %v1813_v42  ;;  %v1874_v41 = vld [vmem:[%s2351_s1 + $0x2f8] sm:$0xff]  }
  0x26   :  { %1665 = vmatprep.subr.bf16.mxu1 %v1814_v43  ;;  %1215 = vmatprep.mubr.bf16.mxu0 %v1457_v8  ;;  %v1875_v42 = vld [vmem:[%s2351_s1 + $0x238] sm:$0xff]   ;;  %v1903_v8 = vld [vmem:[%s2351_s1 + $0x328] sm:$0xff]  }
  0x27   :  { %1255 = vmatprep.mubr.bf16.mxu1 %v1459_v11  ;;  %v1876_v43 = vld [vmem:[%s2351_s1 + $0x2b8] sm:$0xff]   ;;  %v1906_v11 = vld [vmem:[%s2351_s1 + $0x3f0] sm:$0xff]  }
  0x28   :  { %1644 = vmatpush3.bf16.msra.mxu0 %v1815_v44  ;;  %v19_v44 = vld [vmem:[%s2352_s0 + $0x20] sm:$0xff] }
  0x29   :  { %1666 = vmatpush3.bf16.msra.mxu1 %v1816_v45  ;;  %1645 = vmatprep.subr.bf16.mxu0 %v1817_v46  ;;  %v20_v45 = vld [vmem:[%s2352_s0 + $0x28] sm:$0xff]  ;;  %v1460_v46 = vcombine.low %v19_v44, %v19_v44 }
  0x2a   :  { %1667 = vmatprep.subr.bf16.mxu1 %v1818_v47  ;;  %v1461_v47 = vcombine.high %v19_v44, %v19_v44 }
  0x2c   :  { %1646 = vmatpush3.bf16.msra.mxu0 %v1819_v48  ;;  %v1462_v48 = vcombine.low %v20_v45, %v20_v45 }
  0x2d   :  { %1668 = vmatpush3.bf16.msra.mxu1 %v1820_v49  ;;  %1647 = vmatprep.subr.bf16.mxu0 %v1821_v50  ;;  %v1463_v49 = vcombine.high %v20_v45, %v20_v45  ;;  %v1881_v50 = vld [vmem:[%s2351_s1 + $0x340] sm:$0xff]  }
  0x2e   :  { %1669 = vmatprep.subr.bf16.mxu1 %v1822_v51  ;;  %v1882_v51 = vld [vmem:[%s2351_s1 + $0x3c0] sm:$0xff]  }
  0x30   :  { %1648 = vmatpush3.bf16.msra.mxu0 %v1823_v52  ;;  %v1883_v52 = vld [vmem:[%s2351_s1 + $0x300] sm:$0xff]  }
  0x31   :  { %1670 = vmatpush3.bf16.msra.mxu1 %v1824_v53  ;;  %1649 = vmatprep.subr.bf16.mxu0 %v1825_v54  ;;  %v1884_v53 = vld [vmem:[%s2351_s1 + $0x380] sm:$0xff]   ;;  %v1885_v54 = vld [vmem:[%s2351_s1 + $0x348] sm:$0xff]  }
  0x32   :  { %1671 = vmatprep.subr.bf16.mxu1 %v1826_v55  ;;  %v1886_v55 = vld [vmem:[%s2351_s1 + $0x3c8] sm:$0xff]  }
  0x34   :  { %1650 = vmatpush3.bf16.msra.mxu0 %v1827_v56  ;;  %v1887_v56 = vld [vmem:[%s2351_s1 + $0x308] sm:$0xff]  }
  0x35   :  { %1672 = vmatpush3.bf16.msra.mxu1 %v1828_v57  ;;  %1651 = vmatprep.subr.bf16.mxu0 %v1829_v58  ;;  %v1888_v57 = vld [vmem:[%s2351_s1 + $0x388] sm:$0xff]   ;;  %v1889_v58 = vld [vmem:[%s2351_s1 + $0x350] sm:$0xff]  }
  0x36   :  { %1673 = vmatprep.subr.bf16.mxu1 %v1830_v59  ;;  %v1890_v59 = vld [vmem:[%s2351_s1 + $0x3d0] sm:$0xff]  }
  0x38   :  { %1652 = vmatpush3.bf16.msra.mxu0 %v1831_v60  ;;  %v1891_v60 = vld [vmem:[%s2351_s1 + $0x310] sm:$0xff]  }
  0x39   :  { %1674 = vmatpush3.bf16.msra.mxu1 %v1832_v61  ;;  %1653 = vmatprep.subr.bf16.mxu0 %v1833_v62  ;;  %v1892_v61 = vld [vmem:[%s2351_s1 + $0x390] sm:$0xff]   ;;  %v1893_v62 = vld [vmem:[%s2351_s1 + $0x358] sm:$0xff]  }
  0x3a   :  { %1675 = vmatprep.subr.bf16.mxu1 %v1834_v63  ;;  %v1894_v63 = vld [vmem:[%s2351_s1 + $0x3d8] sm:$0xff]  }
  0x3c   :  { %1654 = vmatpush3.bf16.msra.mxu0 %v1835_v0  ;;  %v1895_v0 = vld [vmem:[%s2351_s1 + $0x318] sm:$0xff]  }
  0x3d   :  { %1676 = vmatpush3.bf16.msra.mxu1 %v1836_v1  ;;  %1655 = vmatprep.subr.bf16.mxu0 %v1837_v2  ;;  %v1896_v1 = vld [vmem:[%s2351_s1 + $0x398] sm:$0xff]   ;;  %v1897_v2 = vld [vmem:[%s2351_s1 + $0x360] sm:$0xff]  }
  0x3e   :  { %1677 = vmatprep.subr.bf16.mxu1 %v1838_v3  ;;  %v1898_v3 = vld [vmem:[%s2351_s1 + $0x3e0] sm:$0xff]  }
  0x40   :  { %1656 = vmatpush3.bf16.msra.mxu0 %v1839_v4  ;;  %v1899_v4 = vld [vmem:[%s2351_s1 + $0x320] sm:$0xff]  }
  0x41   :  { %1678 = vmatpush3.bf16.msra.mxu1 %v1840_v5  ;;  %1685 = vmatprep.subr.bf16.mxu0 %v1845_v12  ;;  %v1900_v5 = vld [vmem:[%s2351_s1 + $0x3a0] sm:$0xff]   ;;  %v1907_v12 = vld [vmem:[%s2351_s1 + $0x330] sm:$0xff]  }
  0x42   :  { %1707 = vmatprep.subr.bf16.mxu1 %v1846_v13  ;;  %v1908_v13 = vld [vmem:[%s2351_s1 + $0x3b0] sm:$0xff]  }
  0x43   :  { %1216 = vmatmul.mubr.bf16.vlgmr.msra.gmra.mrb[4].mxu0 %v1456_v7  ;;  %v1902_v7 = vld [vmem:[%s2351_s1 + $0x3e8] sm:$0xff]  }
  0x44   :  { %1256 = vmatmul.mubr.bf16.vlgmr.msra.gmra.mrb[4].mxu1 %v1458_v10  ;;  %1686 = vmatpush3.bf16.msra.mxu0 %v1847_v14  ;;  %v1905_v10 = vld [vmem:[%s2351_s1 + $0x370] sm:$0xff]   ;;  %v1909_v14 = vld [vmem:[%s2351_s1 + $0x378] sm:$0xff]  }
  0x45   :  { %1708 = vmatpush3.bf16.msra.mxu1 %v1848_v15  ;;  %1687 = vmatprep.subr.bf16.mxu0 %v1849_v16  ;;  %v1910_v15 = vld [vmem:[%s2351_s1 + $0x3f8] sm:$0xff]  }
  0x46   :  { %1709 = vmatprep.subr.bf16.mxu1 %v1850_v17  ;;  %1295 = vmatprep.mubr.bf16.mxu0 %v1461_v47  ;;  %v1911_v16 = vld [vmem:[%s2351_s1 + $0x338] sm:$0xff]  }
  0x47   :  { %1335 = vmatprep.mubr.bf16.mxu1 %v1463_v49  ;;  %v1912_v17 = vld [vmem:[%s2351_s1 + $0x3b8] sm:$0xff]  }
  0x48   :  { %1688 = vmatpush3.bf16.msra.mxu0 %v1851_v18  ;;  %v21_v18 = vld [vmem:[%s2352_s0 + $0x30] sm:$0xff] }
  0x49   :  { %1710 = vmatpush3.bf16.msra.mxu1 %v1852_v19  ;;  %1689 = vmatprep.subr.bf16.mxu0 %v1853_v20  ;;  %v22_v19 = vld [vmem:[%s2352_s0 + $0x38] sm:$0xff]  ;;  %v1464_v20 = vcombine.low %v21_v18, %v21_v18 }
  0x4a   :  { %1711 = vmatprep.subr.bf16.mxu1 %v1854_v21  ;;  %v1465_v21 = vcombine.high %v21_v18, %v21_v18 }
  0x4c   :  { %1690 = vmatpush3.bf16.msra.mxu0 %v1855_v22  ;;  %v1466_v22 = vcombine.low %v22_v19, %v22_v19 }
  0x4d   :  { %1712 = vmatpush3.bf16.msra.mxu1 %v1856_v23  ;;  %1691 = vmatprep.subr.bf16.mxu0 %v1857_v24  ;;  %v1467_v23 = vcombine.high %v22_v19, %v22_v19 }
  0x4e   :  { %1713 = vmatprep.subr.bf16.mxu1 %v1858_v25 }
  0x50   :  { %1692 = vmatpush3.bf16.msra.mxu0 %v1859_v26 }
  0x51   :  { %1714 = vmatpush3.bf16.msra.mxu1 %v1860_v27  ;;  %1693 = vmatprep.subr.bf16.mxu0 %v1861_v28 }
  0x52   :  { %1715 = vmatprep.subr.bf16.mxu1 %v1862_v29 }
  0x54   :  { %1694 = vmatpush3.bf16.msra.mxu0 %v1863_v30 }
  0x55   :  { %1716 = vmatpush3.bf16.msra.mxu1 %v1864_v31  ;;  %1695 = vmatprep.subr.bf16.mxu0 %v1865_v32 }
  0x56   :  { %1717 = vmatprep.subr.bf16.mxu1 %v1866_v33 }
  0x58   :  { %1696 = vmatpush3.bf16.msra.mxu0 %v1867_v34 }
  0x59   :  { %1718 = vmatpush3.bf16.msra.mxu1 %v1868_v35  ;;  %1697 = vmatprep.subr.bf16.mxu0 %v1869_v36 }
  0x5a   :  { %1719 = vmatprep.subr.bf16.mxu1 %v1870_v37 }
  0x5c   :  { %1698 = vmatpush3.bf16.msra.mxu0 %v1871_v38 }
  0x5d   :  { %1720 = vmatpush3.bf16.msra.mxu1 %v1872_v39  ;;  %1699 = vmatprep.subr.bf16.mxu0 %v1873_v40 }
  0x5e   :  { %1721 = vmatprep.subr.bf16.mxu1 %v1874_v41 }
  0x60   :  { %1700 = vmatpush3.bf16.msra.mxu0 %v1875_v42 }
  0x61   :  { %1722 = vmatpush3.bf16.msra.mxu1 %v1876_v43  ;;  %1729 = vmatprep.subr.bf16.mxu0 %v1881_v50 }
  0x62   :  { %1751 = vmatprep.subr.bf16.mxu1 %v1882_v51 }
  0x63   :  { %1296 = vmatmul.mubr.bf16.vlgmr.msra.gmra.mrb[8].mxu0 %v1460_v46 }
  0x64   :  { %1336 = vmatmul.mubr.bf16.vlgmr.msra.gmra.mrb[8].mxu1 %v1462_v48  ;;  %1730 = vmatpush3.bf16.msra.mxu0 %v1883_v52 }
  0x65   :  { %1752 = vmatpush3.bf16.msra.mxu1 %v1884_v53  ;;  %1731 = vmatprep.subr.bf16.mxu0 %v1885_v54 }
  0x66   :  { %1753 = vmatprep.subr.bf16.mxu1 %v1886_v55  ;;  %1375 = vmatprep.mubr.bf16.mxu0 %v1465_v21 }
  0x67   :  { %1415 = vmatprep.mubr.bf16.mxu1 %v1467_v23 }
  0x68   :  { %1732 = vmatpush3.bf16.msra.mxu0 %v1887_v56 }
  0x69   :  { %1754 = vmatpush3.bf16.msra.mxu1 %v1888_v57  ;;  %1733 = vmatprep.subr.bf16.mxu0 %v1889_v58 }
  0x6a   :  { %1755 = vmatprep.subr.bf16.mxu1 %v1890_v59 }
  0x6c   :  { %1734 = vmatpush3.bf16.msra.mxu0 %v1891_v60 }
  0x6d   :  { %1756 = vmatpush3.bf16.msra.mxu1 %v1892_v61  ;;  %1735 = vmatprep.subr.bf16.mxu0 %v1893_v62 }
  0x6e   :  { %1757 = vmatprep.subr.bf16.mxu1 %v1894_v63 }
  0x70   :  { %1736 = vmatpush3.bf16.msra.mxu0 %v1895_v0 }
  0x71   :  { %1758 = vmatpush3.bf16.msra.mxu1 %v1896_v1  ;;  %1737 = vmatprep.subr.bf16.mxu0 %v1897_v2 }
  0x72   :  { %1759 = vmatprep.subr.bf16.mxu1 %v1898_v3 }
  0x74   :  { %1738 = vmatpush3.bf16.msra.mxu0 %v1899_v4 }
  0x75   :  { %1760 = vmatpush3.bf16.msra.mxu1 %v1900_v5  ;;  %1739 = vmatprep.subr.bf16.mxu0 %v1901_v6  ;;  %v1596_v6 = vld [vmem:[%s2353_s2] ss:$0 sm:$0xff] }
  0x76   :  { %1761 = vmatprep.subr.bf16.mxu1 %v1902_v7 }
  0x78   :  { %1740 = vmatpush3.bf16.msra.mxu0 %v1903_v8 }
  0x79   :  { %1762 = vmatpush3.bf16.msra.mxu1 %v1904_v9  ;;  %1741 = vmatprep.subr.bf16.mxu0 %v1905_v10 }
  0x7a   :  { %1763 = vmatprep.subr.bf16.mxu1 %v1906_v11 }
  0x7c   :  { %1742 = vmatpush3.bf16.msra.mxu0 %v1907_v12 }
  0x7d   :  { %1764 = vmatpush3.bf16.msra.mxu1 %v1908_v13  ;;  %1743 = vmatprep.subr.bf16.mxu0 %v1909_v14 }
  0x7e   :  { %1765 = vmatprep.subr.bf16.mxu1 %v1910_v15 }
  0x80   :  { %1744 = vmatpush3.bf16.msra.mxu0 %v1911_v16 }
  0x81   :  { %1766 = vmatpush3.bf16.msra.mxu1 %v1912_v17 }
  0x83   :  { %1376 = vmatmul.mubr.bf16.vlgmr.msra.gmra.mrb[12].mxu0 %v1464_v20 }
  0x84   :  { %1416 = vmatmul.mubr.bf16.vlgmr.msra.gmra.mrb[12].mxu1 %v1466_v22 }
  0xf6   :  { %v1613_v24 = vpop.f32.mrb[0].mxu0 }
  0xf7   :  { %v1635_v25 = vpop.f32.mrb[0].mxu1  ;;  %v1614_v26 = vpop.f32.mrb[1].mxu0 }
  0xf8   :  { %v1636_v27 = vpop.f32.mrb[1].mxu1  ;;  %v1615_v28 = vadd.f32 %v1614_v26, %v1613_v24  ;;  %v1616_v30 = vpop.f32.mrb[2].mxu0 }
  0xf9   :  { %v1637_v29 = vadd.f32 %v1636_v27, %v1635_v25  ;;  %v1638_v31 = vpop.f32.mrb[2].mxu1  ;;  %v1617_v32 = vpop.f32.mrb[3].mxu0 }
  0xfa   :  { %v1639_v33 = vpop.f32.mrb[3].mxu1 }
  0xfb   :  { %v1178_v34 = vadd.f32 %v1637_v29, %v1615_v28 }
 0x116   :  { %v1657_v35 = vpop.f32.mrb[4].mxu0 }
 0x117   :  { %v1679_v36 = vpop.f32.mrb[4].mxu1  ;;  %v1658_v37 = vpop.f32.mrb[5].mxu0 }
 0x118   :  { %v1680_v38 = vpop.f32.mrb[5].mxu1  ;;  %v1659_v39 = vadd.f32 %v1658_v37, %v1657_v35  ;;  %v1660_v41 = vpop.f32.mrb[6].mxu0 }
 0x119   :  { %v1681_v40 = vadd.f32 %v1680_v38, %v1679_v36  ;;  %v1682_v42 = vpop.f32.mrb[6].mxu1  ;;  %v1661_v43 = vpop.f32.mrb[7].mxu0 }
 0x11a   :  { %v1683_v44 = vpop.f32.mrb[7].mxu1  ;;  %v1218_v45 = vadd.f32 %v1659_v39, %v1178_v34 }
 0x11c   :  { %v1258_v46 = vadd.f32 %v1681_v40, %v1218_v45 }
 0x136   :  { %v1701_v47 = vpop.f32.mrb[8].mxu0 }
 0x137   :  { %v1723_v48 = vpop.f32.mrb[8].mxu1  ;;  %v1702_v49 = vpop.f32.mrb[9].mxu0 }
 0x138   :  { %v1703_v50 = vadd.f32 %v1702_v49, %v1701_v47  ;;  %v1724_v51 = vpop.f32.mrb[9].mxu1  ;;  %v1704_v52 = vpop.f32.mrb[10].mxu0 }
 0x139   :  { %v1725_v53 = vadd.f32 %v1724_v51, %v1723_v48  ;;  %v1726_v54 = vpop.f32.mrb[10].mxu1  ;;  %v1705_v55 = vpop.f32.mrb[11].mxu0 }
 0x13a   :  { %v1298_v56 = vadd.f32 %v1703_v50, %v1258_v46  ;;  %v1727_v57 = vpop.f32.mrb[11].mxu1 }
 0x13c   :  { %v1338_v58 = vadd.f32 %v1725_v53, %v1298_v56 }
 0x156   :  { %v1745_v59 = vpop.f32.mrb[12].mxu0 }
 0x157   :  { %v1767_v60 = vpop.f32.mrb[12].mxu1  ;;  %v1746_v61 = vpop.f32.mrb[13].mxu0 }
 0x158   :  { %v1747_v62 = vadd.f32 %v1746_v61, %v1745_v59  ;;  %v1768_v63 = vpop.f32.mrb[13].mxu1  ;;  %v1748_v0 = vpop.f32.mrb[14].mxu0 }
 0x159   :  { %v1769_v1 = vadd.f32 %v1768_v63, %v1767_v60  ;;  %v1770_v2 = vpop.f32.mrb[14].mxu1  ;;  %v1749_v3 = vpop.f32.mrb[15].mxu0 }
 0x15a   :  { %v1378_v4 = vadd.f32 %v1747_v62, %v1338_v58  ;;  %v1771_v5 = vpop.f32.mrb[15].mxu1 }
 0x15c   :  { %v1418_v7 = vadd.f32 %v1769_v1, %v1378_v4 }
 0x15e   :  { %v1446_v8 = vadd.f32 %v1596_v6, %v1418_v7 }
 0x160   :  { %1447 = vst [vmem:[%s2354_s3] sm:$0xff] %v1446_v8 }

</bundles_post_ra>
